<compile_context>
chip_gen: v7x
topology: tpu7x:2x2x1
jax: 0.10.0
libtpu: 0.0.40
codegen_flags: <defaults>
</compile_context>

<pallas_src>
import functools

import jax
import jax.numpy as jnp
from jax.experimental import pallas as pl


# Matmul input dtype for the encoder kernels. Set to jnp.bfloat16 at production
# shapes to use the bf16 MXU path on v5e/v6e/v7x (accumulation stays f32 via
# preferred_element_type). Kept float32 here because at these toy sizes the
# kernels are launch/latency-bound (not MXU-throughput-bound) and f32 keeps the
# validation tolerance tight; the LSTM recurrence is always f32 since rounding
# compounds over time steps.
ENC_MATMUL_DTYPE = jnp.float32


# --------------------------------------------------------------------------
# Kernel 1: bidirectional LSTM — whole batch in one invocation
# --------------------------------------------------------------------------
def bilstm_kernel(x_ref, wih_f_ref, whh_f_ref, b_f_ref,
                  wih_b_ref, whh_b_ref, b_b_ref, out_ref):
    B, T, D = x_ref.shape
    H = whh_f_ref.shape[0]                           # whh is (H, 4H)

    # Input contribution to all gates, all timesteps, both directions: two big
    # (B*T, D) @ (D, 4H) matmuls instead of per-batch / per-step ones.
    x2d = x_ref[...].reshape(B * T, D)
    gx_f = (jnp.dot(x2d, wih_f_ref[...], preferred_element_type=jnp.float32)
            + b_f_ref[...]).reshape(B, T, 4 * H)
    gx_b = (jnp.dot(x2d, wih_b_ref[...], preferred_element_type=jnp.float32)
            + b_b_ref[...]).reshape(B, T, 4 * H)

    # Hoist recurrent weights out of the time loop.
    whh_f = whh_f_ref[...]
    whh_b = whh_b_ref[...]

    def cell(g, c):
        i = jax.nn.sigmoid(g[:, 0 * H:1 * H])
        f = jax.nn.sigmoid(g[:, 1 * H:2 * H])
        gg = jnp.tanh(g[:, 2 * H:3 * H])
        o = jax.nn.sigmoid(g[:, 3 * H:4 * H])
        c_new = f * c + i * gg
        h_new = o * jnp.tanh(c_new)
        return h_new, c_new

    hf = jnp.zeros((B, H), jnp.float32)
    cf = jnp.zeros((B, H), jnp.float32)
    hb = jnp.zeros((B, H), jnp.float32)
    cb = jnp.zeros((B, H), jnp.float32)

    # Fused forward + backward recurrence, fully unrolled (T is small & static).
    # The two direction chains are independent, so the scheduler can interleave
    # their MXU pushes and EUP (sigmoid/tanh) work.
    # Per-step stores go to the VMEM output block; the HBM writeback of
    # out_ref is still a single lane-dense DMA at the end of the invocation.
    for s in range(T):
        tb = T - 1 - s
        gf = gx_f[:, s, :] + jnp.dot(hf, whh_f, preferred_element_type=jnp.float32)
        gb = gx_b[:, tb, :] + jnp.dot(hb, whh_b, preferred_element_type=jnp.float32)
        hf, cf = cell(gf, cf)
        hb, cb = cell(gb, cb)
        out_ref[:, s, 0:H] = hf
        out_ref[:, tb, H:2 * H] = hb


def run_bilstm(x, p):
    B, T, _ = x.shape
    H = p["whh_f"].shape[0]
    # No grid: whole arrays map to VMEM blocks (all operands are KB-scale).
    return pl.pallas_call(
        bilstm_kernel,
        out_shape=jax.ShapeDtypeStruct((B, T, 2 * H), jnp.float32),
    )(x, p["wih_f"], p["whh_f"], p["b_f"], p["wih_b"], p["whh_b"], p["b_b"])


# --------------------------------------------------------------------------
# Kernel 2: fused dual EncoderLayer (pre-LN multi-head cross-attention x2)
# --------------------------------------------------------------------------
def _mha(x, kv, gamma, beta, wq_s, wkv, wfc, n_head, d_k, d_v, compute_dtype):
    """One MultiHeadAttention block on in-VMEM values.

    wq_s already has 1/sqrt(d_k) folded in (ReLU is positively homogeneous,
    so relu(x @ (wq/temp)) == relu(x @ wq)/temp). wkv is the fused (wk | wv)
    weight. Returns (output_with_residual, list_of_presoftmax_scores_per_head).
    """
    B, T, dm = x.shape
    L = kv.shape[1]
    residual = x

    # LayerNorm in f32 — biased variance, eps=1e-6 (matches nn.LayerNorm).
    mean = jnp.mean(x, axis=-1, keepdims=True)
    var = jnp.mean((x - mean) ** 2, axis=-1, keepdims=True)
    xn = (x - mean) * jax.lax.rsqrt(var + 1e-6) * gamma + beta

    cd = lambda t: t.astype(compute_dtype)

    # ReLU(Linear) projections (bias=False); q and fused kv, batch folded in.
    qp = jax.nn.relu(jnp.dot(cd(xn.reshape(B * T, dm)), wq_s,
                             preferred_element_type=jnp.float32))
    kvp = jax.nn.relu(jnp.dot(cd(kv.reshape(B * L, dm)), wkv,
                              preferred_element_type=jnp.float32))

    qp = qp.reshape(B, T, n_head * d_k)
    kp = kvp[:, :n_head * d_k].reshape(B, L, n_head * d_k)
    vp = kvp[:, n_head * d_k:].reshape(B, L, n_head * d_v)

    scores_per_head = []
    head_outs = []
    for h in range(n_head):                          # static, n_head is tiny
        qh = cd(qp[:, :, h * d_k:(h + 1) * d_k])
        kh = cd(kp[:, :, h * d_k:(h + 1) * d_k])
        vh = cd(vp[:, :, h * d_v:(h + 1) * d_v])
        # batched over B (single batch dim) -> one MXU call per head
        s = jnp.einsum("bqd,bkd->bqk", qh, kh,
                       preferred_element_type=jnp.float32)          # (B, T, L)
        probs = jax.nn.softmax(s, axis=-1)                          # f32
        o = jnp.einsum("bqk,bkd->bqd", cd(probs), vh,
                       preferred_element_type=jnp.float32)          # (B, T, d_v)
        scores_per_head.append(s)                    # pre-softmax (as in reference)
        head_outs.append(o)

    o = jnp.concatenate(head_outs, axis=-1).reshape(B * T, n_head * d_v)
    o = jnp.dot(cd(o), wfc, preferred_element_type=jnp.float32).reshape(B, T, dm)
    return o + residual, scores_per_head


def dual_encoder_kernel(x_ref, p_kv_ref, c_kv_ref,
                        p_gamma_ref, p_beta_ref, p_wq_ref, p_wkv_ref, p_wfc_ref,
                        c_gamma_ref, c_beta_ref, c_wq_ref, c_wkv_ref, c_wfc_ref,
                        out_ref, c_attn_ref, *, n_head, d_k, d_v, compute_dtype):
    # p_encoder: its attention map is discarded by the module, only the output
    # is needed. Intermediate stays in VMEM (no HBM round-trip between layers).
    h1, _ = _mha(x_ref[...], p_kv_ref[...], p_gamma_ref[...], p_beta_ref[...],
                 p_wq_ref[...], p_wkv_ref[...], p_wfc_ref[...],
                 n_head, d_k, d_v, compute_dtype)
    # c_encoder: output + pre-softmax attention scores.
    h2, c_scores = _mha(h1, c_kv_ref[...], c_gamma_ref[...], c_beta_ref[...],
                        c_wq_ref[...], c_wkv_ref[...], c_wfc_ref[...],
                        n_head, d_k, d_v, compute_dtype)
    out_ref[...] = h2
    for h in range(n_head):
        c_attn_ref[:, h, :, :] = c_scores[h]


def run_dual_encoder(q, p_label, c_label, p_enc, c_enc, n_head, d_k, d_v,
                     compute_dtype=ENC_MATMUL_DTYPE):
    B, T, dm = q.shape
    Lc = c_label.shape[1]
    inv_temp = 1.0 / (d_k ** 0.5)

    def prep(p):
        # Fold the 1/sqrt(d_k) attention scale into wq (one-time transform) and
        # fuse wk|wv into a single projection weight.
        wq_s = (p["wq"] * inv_temp).astype(compute_dtype)
        wkv = jnp.concatenate([p["wk"], p["wv"]], axis=1).astype(compute_dtype)
        wfc = p["wfc"].astype(compute_dtype)
        return wq_s, wkv, wfc

    p_wq, p_wkv, p_wfc = prep(p_enc)
    c_wq, c_wkv, c_wfc = prep(c_enc)

    kernel = functools.partial(dual_encoder_kernel, n_head=n_head, d_k=d_k,
                               d_v=d_v, compute_dtype=compute_dtype)
    out, c_att = pl.pallas_call(
        kernel,
        out_shape=(jax.ShapeDtypeStruct((B, T, dm), jnp.float32),
                   jax.ShapeDtypeStruct((B, n_head, T, Lc), jnp.float32)),
    )(q, p_label, c_label,
      p_enc["gamma"], p_enc["beta"], p_wq, p_wkv, p_wfc,
      c_enc["gamma"], c_enc["beta"], c_wq, c_wkv, c_wfc)
    return out, c_att


# --------------------------------------------------------------------------
# Kernel 3: co_attention — all B*T query rows in one invocation
# --------------------------------------------------------------------------
def coattn_kernel(a_ref, b_ref, out_ref, attn_ref):
    a = a_ref[...]                                   # (N, 1, dm)
    b = b_ref[...]                                   # (N, S, dm)
    scores = jnp.einsum("nqd,nsd->nqs", a, b,
                        preferred_element_type=jnp.float32)         # (N, 1, S)
    probs = jax.nn.softmax(scores, axis=-1)
    attn_ref[...] = probs                            # post-softmax (as in co_attention)
    out_ref[...] = jnp.einsum("nqs,nsd->nqd", probs, b,
                              preferred_element_type=jnp.float32)   # (N, 1, dm)


def run_co_attention(A, Bm):
    N, _, dm = A.shape
    S = Bm.shape[1]
    return pl.pallas_call(
        coattn_kernel,
        out_shape=(jax.ShapeDtypeStruct((N, 1, dm), jnp.float32),
                   jax.ShapeDtypeStruct((N, 1, S), jnp.float32)),
    )(A, Bm)


# --------------------------------------------------------------------------
# Full forward pass (glue in plain JAX; jit'ed by the caller)
# --------------------------------------------------------------------------
def lstm_attention_forward(params, lstm_in, p_label, c_label, sen_embed,
                           *, n_head, d_k, d_v):
    B, T, _ = lstm_in.shape
    dm = 2 * params["whh_f"].shape[0]

    # TODO(synk): droplstm / attention dropouts run in eval mode (identity).
    lstm_out = run_bilstm(lstm_in, params)                               # (B,T,2H)
    label_attn, c_att = run_dual_encoder(lstm_out, p_label, c_label,
                                         params["p_enc"], params["c_enc"],
                                         n_head, d_k, d_v)
    A = label_attn.reshape(B * T, 1, dm)
    # TODO(synk): co-attention + final concat could also be fused into the
    # dual-encoder kernel to drop one more launch; kept separate for clarity.
    sen_out, sen_att = run_co_attention(A, sen_embed)
    sen_out = sen_out.reshape(B, T, dm)
    out = jnp.concatenate([sen_out, lstm_out, label_attn], axis=-1)      # (B,T,6H)
    return out, c_att, c_att, sen_att


# --------------------------------------------------------------------------
# Pure-JAX reference (for correctness check)
# --------------------------------------------------------------------------
def ref_forward(params, lstm_in, p_label, c_label, sen_embed, n_head, d_k, d_v):
    HI = jax.lax.Precision.HIGHEST
    H = params["whh_f"].shape[0]
    B, T, _ = lstm_in.shape
    dm = 2 * H

    def lstm_dir(x, wih, whh, b, reverse):
        def step(carry, xt):
            h, c = carry
            g = jnp.dot(xt, wih, precision=HI) + jnp.dot(h, whh, precision=HI) + b[0]
            i = jax.nn.sigmoid(g[:H]); f = jax.nn.sigmoid(g[H:2 * H])
            gg = jnp.tanh(g[2 * H:3 * H]); o = jax.nn.sigmoid(g[3 * H:])
            c = f * c + i * gg
            h = o * jnp.tanh(c)
            return (h, c), h
        _, hs = jax.lax.scan(step, (jnp.zeros(H), jnp.zeros(H)), x, reverse=reverse)
        return hs

    def bilstm_one(x):
        fwd = lstm_dir(x, params["wih_f"], params["whh_f"], params["b_f"], False)
        bwd = lstm_dir(x, params["wih_b"], params["whh_b"], params["b_b"], True)
        return jnp.concatenate([fwd, bwd], axis=-1)

    lstm_out = jax.vmap(bilstm_one)(lstm_in)

    def encoder(q, kv, p):
        residual = q
        mean = q.mean(-1, keepdims=True)
        var = ((q - mean) ** 2).mean(-1, keepdims=True)
        xn = (q - mean) * jax.lax.rsqrt(var + 1e-6) * p["gamma"][0] + p["beta"][0]
        qp = jax.nn.relu(jnp.einsum("btd,de->bte", xn, p["wq"], precision=HI))
        kp = jax.nn.relu(jnp.einsum("bld,de->ble", kv, p["wk"], precision=HI))
        vp = jax.nn.relu(jnp.einsum("bld,de->ble", kv, p["wv"], precision=HI))
        Tq, L = q.shape[1], kv.shape[1]
        qh = qp.reshape(B, Tq, n_head, d_k).transpose(0, 2, 1, 3)
        kh = kp.reshape(B, L, n_head, d_k).transpose(0, 2, 1, 3)
        vh = vp.reshape(B, L, n_head, d_v).transpose(0, 2, 1, 3)
        scores = jnp.einsum("bhqd,bhkd->bhqk", qh / (d_k ** 0.5), kh, precision=HI)
        probs = jax.nn.softmax(scores, -1)
        o = jnp.einsum("bhqk,bhkd->bhqd", probs, vh, precision=HI)
        o = o.transpose(0, 2, 1, 3).reshape(B, Tq, n_head * d_v)
        out = jnp.einsum("bte,ed->btd", o, p["wfc"], precision=HI) + residual
        return out, scores

    label_attn, _ = encoder(lstm_out, p_label, params["p_enc"])
    label_attn, c_att = encoder(label_attn, c_label, params["c_enc"])

    A = label_attn.reshape(B * T, 1, dm)
    scores = jnp.einsum("nqd,nsd->nqs", A, sen_embed, precision=HI)
    sen_att = jax.nn.softmax(scores, -1)
    sen_out = jnp.einsum("nqs,nsd->nqd", sen_att, sen_embed, precision=HI)
    sen_out = sen_out.reshape(B, T, dm)
    out = jnp.concatenate([sen_out, lstm_out, label_attn], axis=-1)
    return out, c_att, c_att, sen_att


# --------------------------------------------------------------------------
# Parameter init (deterministic, synthetic)
# --------------------------------------------------------------------------
def init_params(key, input_size, hidden, dm, n_head, d_k, d_v):
    ks = iter(jax.random.split(key, 24))

    def w(shape, scale=0.1):
        return (scale * jax.random.normal(next(ks), shape)).astype(jnp.float32)

    # TODO(synk): orthogonal init of LSTM weights replaced with deterministic
    # normal init — forward semantics are unaffected, only the values differ.
    params = {
        "wih_f": w((input_size, 4 * hidden)),
        "whh_f": w((hidden, 4 * hidden)),
        "b_f": w((1, 4 * hidden)),     # combined b_ih + b_hh
        "wih_b": w((input_size, 4 * hidden)),
        "whh_b": w((hidden, 4 * hidden)),
        "b_b": w((1, 4 * hidden)),
    }
    for name in ("p_enc", "c_enc"):
        params[name] = {
            "gamma": jnp.ones((1, dm), jnp.float32),
            "beta": jnp.zeros((1, dm), jnp.float32),
            "wq": w((dm, n_head * d_k)),
            "wk": w((dm, n_head * d_k)),
            "wv": w((dm, n_head * d_v)),
            "wfc": w((n_head * d_v, dm)),
        }
    return params


if __name__ == "__main__":
    B, T = 2, 8
    input_size = 64
    hidden = 32
    dm = 2 * hidden                 # d_model = 2*hidden = 64
    n_head, d_k, d_v = 2, 16, 16
    Lp, Lc, S = 8, 8, 8

    key = jax.random.PRNGKey(0)
    kx, kp, kc, ks, kw = jax.random.split(key, 5)

    lstm_in = jax.random.normal(kx, (B, T, input_size), jnp.float32)
    p_label = jax.random.normal(kp, (B, Lp, dm), jnp.float32)
    c_label = jax.random.normal(kc, (B, Lc, dm), jnp.float32)
    sen_embed = jax.random.normal(ks, (B * T, S, dm), jnp.float32)

    params = init_params(kw, input_size, hidden, dm, n_head, d_k, d_v)

    fwd = jax.jit(functools.partial(lstm_attention_forward,
                                    n_head=n_head, d_k=d_k, d_v=d_v))
    out, c_att, _, sen_att = fwd(params, lstm_in, p_label, c_label, sen_embed)
    jax.block_until_ready((out, c_att, sen_att))

    ref_out, ref_c_att, _, ref_sen_att = ref_forward(
        params, lstm_in, p_label, c_label, sen_embed, n_head, d_k, d_v)

    assert out.shape == (B, T, 6 * hidden)
    assert c_att.shape == (B, n_head, T, Lc)
    assert sen_att.shape == (B * T, 1, S)
    assert jnp.allclose(out, ref_out, rtol=1e-2, atol=1e-2)
    assert jnp.allclose(c_att, ref_c_att, rtol=1e-2, atol=1e-2)
    assert jnp.allclose(sen_att, ref_sen_att, rtol=1e-2, atol=1e-2)

    print("KERNEL_OK")
</pallas_src>

<mosaic_0001>
module attributes {stable_mosaic.version = 11 : i64} {
  func.func @bilstm_kernel(%arg0: memref<2x8x64xf32, #tpu.memory_space<vmem>>, %arg1: memref<64x128xf32, #tpu.memory_space<vmem>>, %arg2: memref<32x128xf32, #tpu.memory_space<vmem>>, %arg3: memref<1x128xf32, #tpu.memory_space<vmem>>, %arg4: memref<64x128xf32, #tpu.memory_space<vmem>>, %arg5: memref<32x128xf32, #tpu.memory_space<vmem>>, %arg6: memref<1x128xf32, #tpu.memory_space<vmem>>, %arg7: memref<2x8x64xf32, #tpu.memory_space<vmem>>) attributes {dimension_semantics = [], scalar_prefetch = 0 : i64, scratch_operands = 0 : i64, tpu.core_type = #tpu.core_type<tc>} {
    %c0 = arith.constant 0 : index
    %c0_0 = arith.constant 0 : index
    %c0_1 = arith.constant 0 : index
    %0 = vector.load %arg0[%c0, %c0_0, %c0_1] : memref<2x8x64xf32, #tpu.memory_space<vmem>>, vector<2x8x64xf32>
    %1 = vector.shape_cast %0 : vector<2x8x64xf32> to vector<16x64xf32>
    %c0_2 = arith.constant 0 : index
    %c0_3 = arith.constant 0 : index
    %2 = vector.load %arg1[%c0_2, %c0_3] : memref<64x128xf32, #tpu.memory_space<vmem>>, vector<64x128xf32>
    %cst = arith.constant dense<0.000000e+00> : vector<16x128xf32>
    %3 = tpu.matmul %1, %2, %cst {dimension_numbers = #tpu.dot_dimension_numbers<[1], [0], [0], [1], [0, 0, 1, 1], [], []>} : vector<16x64xf32>, vector<64x128xf32>, vector<16x128xf32> -> vector<16x128xf32>
    %c0_4 = arith.constant 0 : index
    %c0_5 = arith.constant 0 : index
    %4 = vector.load %arg3[%c0_4, %c0_5] : memref<1x128xf32, #tpu.memory_space<vmem>>, vector<1x128xf32>
    %5 = vector.broadcast %4 : vector<1x128xf32> to vector<16x128xf32>
    %6 = arith.addf %3, %5 : vector<16x128xf32>
    %7 = vector.shape_cast %6 : vector<16x128xf32> to vector<2x8x128xf32>
    %c0_6 = arith.constant 0 : index
    %c0_7 = arith.constant 0 : index
    %8 = vector.load %arg4[%c0_6, %c0_7] : memref<64x128xf32, #tpu.memory_space<vmem>>, vector<64x128xf32>
    %cst_8 = arith.constant dense<0.000000e+00> : vector<16x128xf32>
    %9 = tpu.matmul %1, %8, %cst_8 {dimension_numbers = #tpu.dot_dimension_numbers<[1], [0], [0], [1], [0, 0, 1, 1], [], []>} : vector<16x64xf32>, vector<64x128xf32>, vector<16x128xf32> -> vector<16x128xf32>
    %c0_9 = arith.constant 0 : index
    %c0_10 = arith.constant 0 : index
    %10 = vector.load %arg6[%c0_9, %c0_10] : memref<1x128xf32, #tpu.memory_space<vmem>>, vector<1x128xf32>
    %11 = vector.broadcast %10 : vector<1x128xf32> to vector<16x128xf32>
    %12 = arith.addf %9, %11 : vector<16x128xf32>
    %13 = vector.shape_cast %12 : vector<16x128xf32> to vector<2x8x128xf32>
    %c0_11 = arith.constant 0 : index
    %c0_12 = arith.constant 0 : index
    %14 = vector.load %arg2[%c0_11, %c0_12] : memref<32x128xf32, #tpu.memory_space<vmem>>, vector<32x128xf32>
    %c0_13 = arith.constant 0 : index
    %c0_14 = arith.constant 0 : index
    %15 = vector.load %arg5[%c0_13, %c0_14] : memref<32x128xf32, #tpu.memory_space<vmem>>, vector<32x128xf32>
    %cst_15 = arith.constant 0.000000e+00 : f32
    %16 = vector.broadcast %cst_15 : f32 to vector<2x32xf32>
    %cst_16 = arith.constant 0.000000e+00 : f32
    %17 = vector.broadcast %cst_16 : f32 to vector<2x32xf32>
    %cst_17 = arith.constant 0.000000e+00 : f32
    %18 = vector.broadcast %cst_17 : f32 to vector<2x32xf32>
    %cst_18 = arith.constant 0.000000e+00 : f32
    %19 = vector.broadcast %cst_18 : f32 to vector<2x32xf32>
    %20 = vector.extract_strided_slice %7 {offsets = [0, 0, 0], sizes = [2, 1, 128], strides = [1, 1, 1]} : vector<2x8x128xf32> to vector<2x1x128xf32>
    %21 = vector.shape_cast %20 : vector<2x1x128xf32> to vector<2x128xf32>
    %cst_19 = arith.constant dense<0.000000e+00> : vector<2x128xf32>
    %22 = tpu.matmul %16, %14, %cst_19 {dimension_numbers = #tpu.dot_dimension_numbers<[1], [0], [0], [1], [0, 0, 1, 1], [], []>} : vector<2x32xf32>, vector<32x128xf32>, vector<2x128xf32> -> vector<2x128xf32>
    %23 = arith.addf %21, %22 : vector<2x128xf32>
    %24 = vector.extract_strided_slice %13 {offsets = [0, 7, 0], sizes = [2, 1, 128], strides = [1, 1, 1]} : vector<2x8x128xf32> to vector<2x1x128xf32>
    %25 = vector.shape_cast %24 : vector<2x1x128xf32> to vector<2x128xf32>
    %cst_20 = arith.constant dense<0.000000e+00> : vector<2x128xf32>
    %26 = tpu.matmul %18, %15, %cst_20 {dimension_numbers = #tpu.dot_dimension_numbers<[1], [0], [0], [1], [0, 0, 1, 1], [], []>} : vector<2x32xf32>, vector<32x128xf32>, vector<2x128xf32> -> vector<2x128xf32>
    %27 = arith.addf %25, %26 : vector<2x128xf32>
    %28 = vector.extract_strided_slice %23 {offsets = [0, 0], sizes = [2, 32], strides = [1, 1]} : vector<2x128xf32> to vector<2x32xf32>
    %29 = arith.negf %28 : vector<2x32xf32>
    %30 = math.exp %29 : vector<2x32xf32>
    %cst_21 = arith.constant 1.000000e+00 : f32
    %31 = vector.broadcast %cst_21 : f32 to vector<2x32xf32>
    %32 = arith.addf %31, %30 : vector<2x32xf32>
    %33 = arith.divf %31, %32 : vector<2x32xf32>
    %34 = vector.extract_strided_slice %23 {offsets = [0, 32], sizes = [2, 32], strides = [1, 1]} : vector<2x128xf32> to vector<2x32xf32>
    %35 = arith.negf %34 : vector<2x32xf32>
    %36 = math.exp %35 : vector<2x32xf32>
    %cst_22 = arith.constant 1.000000e+00 : f32
    %37 = vector.broadcast %cst_22 : f32 to vector<2x32xf32>
    %38 = arith.addf %37, %36 : vector<2x32xf32>
    %39 = arith.divf %37, %38 : vector<2x32xf32>
    %40 = vector.extract_strided_slice %23 {offsets = [0, 64], sizes = [2, 32], strides = [1, 1]} : vector<2x128xf32> to vector<2x32xf32>
    %41 = math.tanh %40 : vector<2x32xf32>
    %42 = vector.extract_strided_slice %23 {offsets = [0, 96], sizes = [2, 32], strides = [1, 1]} : vector<2x128xf32> to vector<2x32xf32>
    %43 = arith.negf %42 : vector<2x32xf32>
    %44 = math.exp %43 : vector<2x32xf32>
    %cst_23 = arith.constant 1.000000e+00 : f32
    %45 = vector.broadcast %cst_23 : f32 to vector<2x32xf32>
    %46 = arith.addf %45, %44 : vector<2x32xf32>
    %47 = arith.divf %45, %46 : vector<2x32xf32>
    %48 = arith.mulf %39, %17 : vector<2x32xf32>
    %49 = arith.mulf %33, %41 : vector<2x32xf32>
    %50 = arith.addf %48, %49 : vector<2x32xf32>
    %51 = math.tanh %50 : vector<2x32xf32>
    %52 = arith.mulf %47, %51 : vector<2x32xf32>
    %53 = vector.extract_strided_slice %27 {offsets = [0, 0], sizes = [2, 32], strides = [1, 1]} : vector<2x128xf32> to vector<2x32xf32>
    %54 = arith.negf %53 : vector<2x32xf32>
    %55 = math.exp %54 : vector<2x32xf32>
    %cst_24 = arith.constant 1.000000e+00 : f32
    %56 = vector.broadcast %cst_24 : f32 to vector<2x32xf32>
    %57 = arith.addf %56, %55 : vector<2x32xf32>
    %58 = arith.divf %56, %57 : vector<2x32xf32>
    %59 = vector.extract_strided_slice %27 {offsets = [0, 32], sizes = [2, 32], strides = [1, 1]} : vector<2x128xf32> to vector<2x32xf32>
    %60 = arith.negf %59 : vector<2x32xf32>
    %61 = math.exp %60 : vector<2x32xf32>
    %cst_25 = arith.constant 1.000000e+00 : f32
    %62 = vector.broadcast %cst_25 : f32 to vector<2x32xf32>
    %63 = arith.addf %62, %61 : vector<2x32xf32>
    %64 = arith.divf %62, %63 : vector<2x32xf32>
    %65 = vector.extract_strided_slice %27 {offsets = [0, 64], sizes = [2, 32], strides = [1, 1]} : vector<2x128xf32> to vector<2x32xf32>
    %66 = math.tanh %65 : vector<2x32xf32>
    %67 = vector.extract_strided_slice %27 {offsets = [0, 96], sizes = [2, 32], strides = [1, 1]} : vector<2x128xf32> to vector<2x32xf32>
    %68 = arith.negf %67 : vector<2x32xf32>
    %69 = math.exp %68 : vector<2x32xf32>
    %cst_26 = arith.constant 1.000000e+00 : f32
    %70 = vector.broadcast %cst_26 : f32 to vector<2x32xf32>
    %71 = arith.addf %70, %69 : vector<2x32xf32>
    %72 = arith.divf %70, %71 : vector<2x32xf32>
    %73 = arith.mulf %64, %19 : vector<2x32xf32>
    %74 = arith.mulf %58, %66 : vector<2x32xf32>
    %75 = arith.addf %73, %74 : vector<2x32xf32>
    %76 = math.tanh %75 : vector<2x32xf32>
    %77 = arith.mulf %72, %76 : vector<2x32xf32>
    %c0_27 = arith.constant 0 : index
    %c0_28 = arith.constant 0 : index
    %c0_29 = arith.constant 0 : index
    %78 = vector.load %arg7[%c0_27, %c0_28, %c0_29] : memref<2x8x64xf32, #tpu.memory_space<vmem>>, vector<2x1x32xf32>
    %79 = vector.shape_cast %78 : vector<2x1x32xf32> to vector<2x32xf32>
    %80 = vector.shape_cast %52 : vector<2x32xf32> to vector<2x1x32xf32>
    tpu.vector_store %arg7[%c0_27, %c0_28, %c0_29], %80 {strides = array<i32>} : memref<2x8x64xf32, #tpu.memory_space<vmem>>, vector<2x1x32xf32>,
    %c0_30 = arith.constant 0 : index
    %c7 = arith.constant 7 : index
    %c32 = arith.constant 32 : index
    %81 = vector.load %arg7[%c0_30, %c7, %c32] : memref<2x8x64xf32, #tpu.memory_space<vmem>>, vector<2x1x32xf32>
    %82 = vector.shape_cast %81 : vector<2x1x32xf32> to vector<2x32xf32>
    %83 = vector.shape_cast %77 : vector<2x32xf32> to vector<2x1x32xf32>
    tpu.vector_store %arg7[%c0_30, %c7, %c32], %83 {strides = array<i32>} : memref<2x8x64xf32, #tpu.memory_space<vmem>>, vector<2x1x32xf32>,
    %84 = vector.extract_strided_slice %7 {offsets = [0, 1, 0], sizes = [2, 1, 128], strides = [1, 1, 1]} : vector<2x8x128xf32> to vector<2x1x128xf32>
    %85 = vector.shape_cast %84 : vector<2x1x128xf32> to vector<2x128xf32>
    %cst_31 = arith.constant dense<0.000000e+00> : vector<2x128xf32>
    %86 = tpu.matmul %52, %14, %cst_31 {dimension_numbers = #tpu.dot_dimension_numbers<[1], [0], [0], [1], [0, 0, 1, 1], [], []>} : vector<2x32xf32>, vector<32x128xf32>, vector<2x128xf32> -> vector<2x128xf32>
    %87 = arith.addf %85, %86 : vector<2x128xf32>
    %88 = vector.extract_strided_slice %13 {offsets = [0, 6, 0], sizes = [2, 1, 128], strides = [1, 1, 1]} : vector<2x8x128xf32> to vector<2x1x128xf32>
    %89 = vector.shape_cast %88 : vector<2x1x128xf32> to vector<2x128xf32>
    %cst_32 = arith.constant dense<0.000000e+00> : vector<2x128xf32>
    %90 = tpu.matmul %77, %15, %cst_32 {dimension_numbers = #tpu.dot_dimension_numbers<[1], [0], [0], [1], [0, 0, 1, 1], [], []>} : vector<2x32xf32>, vector<32x128xf32>, vector<2x128xf32> -> vector<2x128xf32>
    %91 = arith.addf %89, %90 : vector<2x128xf32>
    %92 = vector.extract_strided_slice %87 {offsets = [0, 0], sizes = [2, 32], strides = [1, 1]} : vector<2x128xf32> to vector<2x32xf32>
    %93 = arith.negf %92 : vector<2x32xf32>
    %94 = math.exp %93 : vector<2x32xf32>
    %cst_33 = arith.constant 1.000000e+00 : f32
    %95 = vector.broadcast %cst_33 : f32 to vector<2x32xf32>
    %96 = arith.addf %95, %94 : vector<2x32xf32>
    %97 = arith.divf %95, %96 : vector<2x32xf32>
    %98 = vector.extract_strided_slice %87 {offsets = [0, 32], sizes = [2, 32], strides = [1, 1]} : vector<2x128xf32> to vector<2x32xf32>
    %99 = arith.negf %98 : vector<2x32xf32>
    %100 = math.exp %99 : vector<2x32xf32>
    %cst_34 = arith.constant 1.000000e+00 : f32
    %101 = vector.broadcast %cst_34 : f32 to vector<2x32xf32>
    %102 = arith.addf %101, %100 : vector<2x32xf32>
    %103 = arith.divf %101, %102 : vector<2x32xf32>
    %104 = vector.extract_strided_slice %87 {offsets = [0, 64], sizes = [2, 32], strides = [1, 1]} : vector<2x128xf32> to vector<2x32xf32>
    %105 = math.tanh %104 : vector<2x32xf32>
    %106 = vector.extract_strided_slice %87 {offsets = [0, 96], sizes = [2, 32], strides = [1, 1]} : vector<2x128xf32> to vector<2x32xf32>
    %107 = arith.negf %106 : vector<2x32xf32>
    %108 = math.exp %107 : vector<2x32xf32>
    %cst_35 = arith.constant 1.000000e+00 : f32
    %109 = vector.broadcast %cst_35 : f32 to vector<2x32xf32>
    %110 = arith.addf %109, %108 : vector<2x32xf32>
    %111 = arith.divf %109, %110 : vector<2x32xf32>
    %112 = arith.mulf %103, %50 : vector<2x32xf32>
    %113 = arith.mulf %97, %105 : vector<2x32xf32>
    %114 = arith.addf %112, %113 : vector<2x32xf32>
    %115 = math.tanh %114 : vector<2x32xf32>
    %116 = arith.mulf %111, %115 : vector<2x32xf32>
    %117 = vector.extract_strided_slice %91 {offsets = [0, 0], sizes = [2, 32], strides = [1, 1]} : vector<2x128xf32> to vector<2x32xf32>
    %118 = arith.negf %117 : vector<2x32xf32>
    %119 = math.exp %118 : vector<2x32xf32>
    %cst_36 = arith.constant 1.000000e+00 : f32
    %120 = vector.broadcast %cst_36 : f32 to vector<2x32xf32>
    %121 = arith.addf %120, %119 : vector<2x32xf32>
    %122 = arith.divf %120, %121 : vector<2x32xf32>
    %123 = vector.extract_strided_slice %91 {offsets = [0, 32], sizes = [2, 32], strides = [1, 1]} : vector<2x128xf32> to vector<2x32xf32>
    %124 = arith.negf %123 : vector<2x32xf32>
    %125 = math.exp %124 : vector<2x32xf32>
    %cst_37 = arith.constant 1.000000e+00 : f32
    %126 = vector.broadcast %cst_37 : f32 to vector<2x32xf32>
    %127 = arith.addf %126, %125 : vector<2x32xf32>
    %128 = arith.divf %126, %127 : vector<2x32xf32>
    %129 = vector.extract_strided_slice %91 {offsets = [0, 64], sizes = [2, 32], strides = [1, 1]} : vector<2x128xf32> to vector<2x32xf32>
    %130 = math.tanh %129 : vector<2x32xf32>
    %131 = vector.extract_strided_slice %91 {offsets = [0, 96], sizes = [2, 32], strides = [1, 1]} : vector<2x128xf32> to vector<2x32xf32>
    %132 = arith.negf %131 : vector<2x32xf32>
    %133 = math.exp %132 : vector<2x32xf32>
    %cst_38 = arith.constant 1.000000e+00 : f32
    %134 = vector.broadcast %cst_38 : f32 to vector<2x32xf32>
    %135 = arith.addf %134, %133 : vector<2x32xf32>
    %136 = arith.divf %134, %135 : vector<2x32xf32>
    %137 = arith.mulf %128, %75 : vector<2x32xf32>
    %138 = arith.mulf %122, %130 : vector<2x32xf32>
    %139 = arith.addf %137, %138 : vector<2x32xf32>
    %140 = math.tanh %139 : vector<2x32xf32>
    %141 = arith.mulf %136, %140 : vector<2x32xf32>
    %c0_39 = arith.constant 0 : index
    %c1 = arith.constant 1 : index
    %c0_40 = arith.constant 0 : index
    %142 = vector.load %arg7[%c0_39, %c1, %c0_40] : memref<2x8x64xf32, #tpu.memory_space<vmem>>, vector<2x1x32xf32>
    %143 = vector.shape_cast %142 : vector<2x1x32xf32> to vector<2x32xf32>
    %144 = vector.shape_cast %116 : vector<2x32xf32> to vector<2x1x32xf32>
    tpu.vector_store %arg7[%c0_39, %c1, %c0_40], %144 {strides = array<i32>} : memref<2x8x64xf32, #tpu.memory_space<vmem>>, vector<2x1x32xf32>,
    %c0_41 = arith.constant 0 : index
    %c6 = arith.constant 6 : index
    %c32_42 = arith.constant 32 : index
    %145 = vector.load %arg7[%c0_41, %c6, %c32_42] : memref<2x8x64xf32, #tpu.memory_space<vmem>>, vector<2x1x32xf32>
    %146 = vector.shape_cast %145 : vector<2x1x32xf32> to vector<2x32xf32>
    %147 = vector.shape_cast %141 : vector<2x32xf32> to vector<2x1x32xf32>
    tpu.vector_store %arg7[%c0_41, %c6, %c32_42], %147 {strides = array<i32>} : memref<2x8x64xf32, #tpu.memory_space<vmem>>, vector<2x1x32xf32>,
    %148 = vector.extract_strided_slice %7 {offsets = [0, 2, 0], sizes = [2, 1, 128], strides = [1, 1, 1]} : vector<2x8x128xf32> to vector<2x1x128xf32>
    %149 = vector.shape_cast %148 : vector<2x1x128xf32> to vector<2x128xf32>
    %cst_43 = arith.constant dense<0.000000e+00> : vector<2x128xf32>
    %150 = tpu.matmul %116, %14, %cst_43 {dimension_numbers = #tpu.dot_dimension_numbers<[1], [0], [0], [1], [0, 0, 1, 1], [], []>} : vector<2x32xf32>, vector<32x128xf32>, vector<2x128xf32> -> vector<2x128xf32>
    %151 = arith.addf %149, %150 : vector<2x128xf32>
    %152 = vector.extract_strided_slice %13 {offsets = [0, 5, 0], sizes = [2, 1, 128], strides = [1, 1, 1]} : vector<2x8x128xf32> to vector<2x1x128xf32>
    %153 = vector.shape_cast %152 : vector<2x1x128xf32> to vector<2x128xf32>
    %cst_44 = arith.constant dense<0.000000e+00> : vector<2x128xf32>
    %154 = tpu.matmul %141, %15, %cst_44 {dimension_numbers = #tpu.dot_dimension_numbers<[1], [0], [0], [1], [0, 0, 1, 1], [], []>} : vector<2x32xf32>, vector<32x128xf32>, vector<2x128xf32> -> vector<2x128xf32>
    %155 = arith.addf %153, %154 : vector<2x128xf32>
    %156 = vector.extract_strided_slice %151 {offsets = [0, 0], sizes = [2, 32], strides = [1, 1]} : vector<2x128xf32> to vector<2x32xf32>
    %157 = arith.negf %156 : vector<2x32xf32>
    %158 = math.exp %157 : vector<2x32xf32>
    %cst_45 = arith.constant 1.000000e+00 : f32
    %159 = vector.broadcast %cst_45 : f32 to vector<2x32xf32>
    %160 = arith.addf %159, %158 : vector<2x32xf32>
    %161 = arith.divf %159, %160 : vector<2x32xf32>
    %162 = vector.extract_strided_slice %151 {offsets = [0, 32], sizes = [2, 32], strides = [1, 1]} : vector<2x128xf32> to vector<2x32xf32>
    %163 = arith.negf %162 : vector<2x32xf32>
    %164 = math.exp %163 : vector<2x32xf32>
    %cst_46 = arith.constant 1.000000e+00 : f32
    %165 = vector.broadcast %cst_46 : f32 to vector<2x32xf32>
    %166 = arith.addf %165, %164 : vector<2x32xf32>
    %167 = arith.divf %165, %166 : vector<2x32xf32>
    %168 = vector.extract_strided_slice %151 {offsets = [0, 64], sizes = [2, 32], strides = [1, 1]} : vector<2x128xf32> to vector<2x32xf32>
    %169 = math.tanh %168 : vector<2x32xf32>
    %170 = vector.extract_strided_slice %151 {offsets = [0, 96], sizes = [2, 32], strides = [1, 1]} : vector<2x128xf32> to vector<2x32xf32>
    %171 = arith.negf %170 : vector<2x32xf32>
    %172 = math.exp %171 : vector<2x32xf32>
    %cst_47 = arith.constant 1.000000e+00 : f32
    %173 = vector.broadcast %cst_47 : f32 to vector<2x32xf32>
    %174 = arith.addf %173, %172 : vector<2x32xf32>
    %175 = arith.divf %173, %174 : vector<2x32xf32>
    %176 = arith.mulf %167, %114 : vector<2x32xf32>
    %177 = arith.mulf %161, %169 : vector<2x32xf32>
    %178 = arith.addf %176, %177 : vector<2x32xf32>
    %179 = math.tanh %178 : vector<2x32xf32>
    %180 = arith.mulf %175, %179 : vector<2x32xf32>
    %181 = vector.extract_strided_slice %155 {offsets = [0, 0], sizes = [2, 32], strides = [1, 1]} : vector<2x128xf32> to vector<2x32xf32>
    %182 = arith.negf %181 : vector<2x32xf32>
    %183 = math.exp %182 : vector<2x32xf32>
    %cst_48 = arith.constant 1.000000e+00 : f32
    %184 = vector.broadcast %cst_48 : f32 to vector<2x32xf32>
    %185 = arith.addf %184, %183 : vector<2x32xf32>
    %186 = arith.divf %184, %185 : vector<2x32xf32>
    %187 = vector.extract_strided_slice %155 {offsets = [0, 32], sizes = [2, 32], strides = [1, 1]} : vector<2x128xf32> to vector<2x32xf32>
    %188 = arith.negf %187 : vector<2x32xf32>
    %189 = math.exp %188 : vector<2x32xf32>
    %cst_49 = arith.constant 1.000000e+00 : f32
    %190 = vector.broadcast %cst_49 : f32 to vector<2x32xf32>
    %191 = arith.addf %190, %189 : vector<2x32xf32>
    %192 = arith.divf %190, %191 : vector<2x32xf32>
    %193 = vector.extract_strided_slice %155 {offsets = [0, 64], sizes = [2, 32], strides = [1, 1]} : vector<2x128xf32> to vector<2x32xf32>
    %194 = math.tanh %193 : vector<2x32xf32>
    %195 = vector.extract_strided_slice %155 {offsets = [0, 96], sizes = [2, 32], strides = [1, 1]} : vector<2x128xf32> to vector<2x32xf32>
    %196 = arith.negf %195 : vector<2x32xf32>
    %197 = math.exp %196 : vector<2x32xf32>
    %cst_50 = arith.constant 1.000000e+00 : f32
    %198 = vector.broadcast %cst_50 : f32 to vector<2x32xf32>
    %199 = arith.addf %198, %197 : vector<2x32xf32>
    %200 = arith.divf %198, %199 : vector<2x32xf32>
    %201 = arith.mulf %192, %139 : vector<2x32xf32>
    %202 = arith.mulf %186, %194 : vector<2x32xf32>
    %203 = arith.addf %201, %202 : vector<2x32xf32>
    %204 = math.tanh %203 : vector<2x32xf32>
    %205 = arith.mulf %200, %204 : vector<2x32xf32>
    %c0_51 = arith.constant 0 : index
    %c2 = arith.constant 2 : index
    %c0_52 = arith.constant 0 : index
    %206 = vector.load %arg7[%c0_51, %c2, %c0_52] : memref<2x8x64xf32, #tpu.memory_space<vmem>>, vector<2x1x32xf32>
    %207 = vector.shape_cast %206 : vector<2x1x32xf32> to vector<2x32xf32>
    %208 = vector.shape_cast %180 : vector<2x32xf32> to vector<2x1x32xf32>
    tpu.vector_store %arg7[%c0_51, %c2, %c0_52], %208 {strides = array<i32>} : memref<2x8x64xf32, #tpu.memory_space<vmem>>, vector<2x1x32xf32>,
    %c0_53 = arith.constant 0 : index
    %c5 = arith.constant 5 : index
    %c32_54 = arith.constant 32 : index
    %209 = vector.load %arg7[%c0_53, %c5, %c32_54] : memref<2x8x64xf32, #tpu.memory_space<vmem>>, vector<2x1x32xf32>
    %210 = vector.shape_cast %209 : vector<2x1x32xf32> to vector<2x32xf32>
    %211 = vector.shape_cast %205 : vector<2x32xf32> to vector<2x1x32xf32>
    tpu.vector_store %arg7[%c0_53, %c5, %c32_54], %211 {strides = array<i32>} : memref<2x8x64xf32, #tpu.memory_space<vmem>>, vector<2x1x32xf32>,
    %212 = vector.extract_strided_slice %7 {offsets = [0, 3, 0], sizes = [2, 1, 128], strides = [1, 1, 1]} : vector<2x8x128xf32> to vector<2x1x128xf32>
    %213 = vector.shape_cast %212 : vector<2x1x128xf32> to vector<2x128xf32>
    %cst_55 = arith.constant dense<0.000000e+00> : vector<2x128xf32>
    %214 = tpu.matmul %180, %14, %cst_55 {dimension_numbers = #tpu.dot_dimension_numbers<[1], [0], [0], [1], [0, 0, 1, 1], [], []>} : vector<2x32xf32>, vector<32x128xf32>, vector<2x128xf32> -> vector<2x128xf32>
    %215 = arith.addf %213, %214 : vector<2x128xf32>
    %216 = vector.extract_strided_slice %13 {offsets = [0, 4, 0], sizes = [2, 1, 128], strides = [1, 1, 1]} : vector<2x8x128xf32> to vector<2x1x128xf32>
    %217 = vector.shape_cast %216 : vector<2x1x128xf32> to vector<2x128xf32>
    %cst_56 = arith.constant dense<0.000000e+00> : vector<2x128xf32>
    %218 = tpu.matmul %205, %15, %cst_56 {dimension_numbers = #tpu.dot_dimension_numbers<[1], [0], [0], [1], [0, 0, 1, 1], [], []>} : vector<2x32xf32>, vector<32x128xf32>, vector<2x128xf32> -> vector<2x128xf32>
    %219 = arith.addf %217, %218 : vector<2x128xf32>
    %220 = vector.extract_strided_slice %215 {offsets = [0, 0], sizes = [2, 32], strides = [1, 1]} : vector<2x128xf32> to vector<2x32xf32>
    %221 = arith.negf %220 : vector<2x32xf32>
    %222 = math.exp %221 : vector<2x32xf32>
    %cst_57 = arith.constant 1.000000e+00 : f32
    %223 = vector.broadcast %cst_57 : f32 to vector<2x32xf32>
    %224 = arith.addf %223, %222 : vector<2x32xf32>
    %225 = arith.divf %223, %224 : vector<2x32xf32>
    %226 = vector.extract_strided_slice %215 {offsets = [0, 32], sizes = [2, 32], strides = [1, 1]} : vector<2x128xf32> to vector<2x32xf32>
    %227 = arith.negf %226 : vector<2x32xf32>
    %228 = math.exp %227 : vector<2x32xf32>
    %cst_58 = arith.constant 1.000000e+00 : f32
    %229 = vector.broadcast %cst_58 : f32 to vector<2x32xf32>
    %230 = arith.addf %229, %228 : vector<2x32xf32>
    %231 = arith.divf %229, %230 : vector<2x32xf32>
    %232 = vector.extract_strided_slice %215 {offsets = [0, 64], sizes = [2, 32], strides = [1, 1]} : vector<2x128xf32> to vector<2x32xf32>
    %233 = math.tanh %232 : vector<2x32xf32>
    %234 = vector.extract_strided_slice %215 {offsets = [0, 96], sizes = [2, 32], strides = [1, 1]} : vector<2x128xf32> to vector<2x32xf32>
    %235 = arith.negf %234 : vector<2x32xf32>
    %236 = math.exp %235 : vector<2x32xf32>
    %cst_59 = arith.constant 1.000000e+00 : f32
    %237 = vector.broadcast %cst_59 : f32 to vector<2x32xf32>
    %238 = arith.addf %237, %236 : vector<2x32xf32>
    %239 = arith.divf %237, %238 : vector<2x32xf32>
    %240 = arith.mulf %231, %178 : vector<2x32xf32>
    %241 = arith.mulf %225, %233 : vector<2x32xf32>
    %242 = arith.addf %240, %241 : vector<2x32xf32>
    %243 = math.tanh %242 : vector<2x32xf32>
    %244 = arith.mulf %239, %243 : vector<2x32xf32>
    %245 = vector.extract_strided_slice %219 {offsets = [0, 0], sizes = [2, 32], strides = [1, 1]} : vector<2x128xf32> to vector<2x32xf32>
    %246 = arith.negf %245 : vector<2x32xf32>
    %247 = math.exp %246 : vector<2x32xf32>
    %cst_60 = arith.constant 1.000000e+00 : f32
    %248 = vector.broadcast %cst_60 : f32 to vector<2x32xf32>
    %249 = arith.addf %248, %247 : vector<2x32xf32>
    %250 = arith.divf %248, %249 : vector<2x32xf32>
    %251 = vector.extract_strided_slice %219 {offsets = [0, 32], sizes = [2, 32], strides = [1, 1]} : vector<2x128xf32> to vector<2x32xf32>
    %252 = arith.negf %251 : vector<2x32xf32>
    %253 = math.exp %252 : vector<2x32xf32>
    %cst_61 = arith.constant 1.000000e+00 : f32
    %254 = vector.broadcast %cst_61 : f32 to vector<2x32xf32>
    %255 = arith.addf %254, %253 : vector<2x32xf32>
    %256 = arith.divf %254, %255 : vector<2x32xf32>
    %257 = vector.extract_strided_slice %219 {offsets = [0, 64], sizes = [2, 32], strides = [1, 1]} : vector<2x128xf32> to vector<2x32xf32>
    %258 = math.tanh %257 : vector<2x32xf32>
    %259 = vector.extract_strided_slice %219 {offsets = [0, 96], sizes = [2, 32], strides = [1, 1]} : vector<2x128xf32> to vector<2x32xf32>
    %260 = arith.negf %259 : vector<2x32xf32>
    %261 = math.exp %260 : vector<2x32xf32>
    %cst_62 = arith.constant 1.000000e+00 : f32
    %262 = vector.broadcast %cst_62 : f32 to vector<2x32xf32>
    %263 = arith.addf %262, %261 : vector<2x32xf32>
    %264 = arith.divf %262, %263 : vector<2x32xf32>
    %265 = arith.mulf %256, %203 : vector<2x32xf32>
    %266 = arith.mulf %250, %258 : vector<2x32xf32>
    %267 = arith.addf %265, %266 : vector<2x32xf32>
    %268 = math.tanh %267 : vector<2x32xf32>
    %269 = arith.mulf %264, %268 : vector<2x32xf32>
    %c0_63 = arith.constant 0 : index
    %c3 = arith.constant 3 : index
    %c0_64 = arith.constant 0 : index
    %270 = vector.load %arg7[%c0_63, %c3, %c0_64] : memref<2x8x64xf32, #tpu.memory_space<vmem>>, vector<2x1x32xf32>
    %271 = vector.shape_cast %270 : vector<2x1x32xf32> to vector<2x32xf32>
    %272 = vector.shape_cast %244 : vector<2x32xf32> to vector<2x1x32xf32>
    tpu.vector_store %arg7[%c0_63, %c3, %c0_64], %272 {strides = array<i32>} : memref<2x8x64xf32, #tpu.memory_space<vmem>>, vector<2x1x32xf32>,
    %c0_65 = arith.constant 0 : index
    %c4 = arith.constant 4 : index
    %c32_66 = arith.constant 32 : index
    %273 = vector.load %arg7[%c0_65, %c4, %c32_66] : memref<2x8x64xf32, #tpu.memory_space<vmem>>, vector<2x1x32xf32>
    %274 = vector.shape_cast %273 : vector<2x1x32xf32> to vector<2x32xf32>
    %275 = vector.shape_cast %269 : vector<2x32xf32> to vector<2x1x32xf32>
    tpu.vector_store %arg7[%c0_65, %c4, %c32_66], %275 {strides = array<i32>} : memref<2x8x64xf32, #tpu.memory_space<vmem>>, vector<2x1x32xf32>,
    %276 = vector.extract_strided_slice %7 {offsets = [0, 4, 0], sizes = [2, 1, 128], strides = [1, 1, 1]} : vector<2x8x128xf32> to vector<2x1x128xf32>
    %277 = vector.shape_cast %276 : vector<2x1x128xf32> to vector<2x128xf32>
    %cst_67 = arith.constant dense<0.000000e+00> : vector<2x128xf32>
    %278 = tpu.matmul %244, %14, %cst_67 {dimension_numbers = #tpu.dot_dimension_numbers<[1], [0], [0], [1], [0, 0, 1, 1], [], []>} : vector<2x32xf32>, vector<32x128xf32>, vector<2x128xf32> -> vector<2x128xf32>
    %279 = arith.addf %277, %278 : vector<2x128xf32>
    %280 = vector.extract_strided_slice %13 {offsets = [0, 3, 0], sizes = [2, 1, 128], strides = [1, 1, 1]} : vector<2x8x128xf32> to vector<2x1x128xf32>
    %281 = vector.shape_cast %280 : vector<2x1x128xf32> to vector<2x128xf32>
    %cst_68 = arith.constant dense<0.000000e+00> : vector<2x128xf32>
    %282 = tpu.matmul %269, %15, %cst_68 {dimension_numbers = #tpu.dot_dimension_numbers<[1], [0], [0], [1], [0, 0, 1, 1], [], []>} : vector<2x32xf32>, vector<32x128xf32>, vector<2x128xf32> -> vector<2x128xf32>
    %283 = arith.addf %281, %282 : vector<2x128xf32>
    %284 = vector.extract_strided_slice %279 {offsets = [0, 0], sizes = [2, 32], strides = [1, 1]} : vector<2x128xf32> to vector<2x32xf32>
    %285 = arith.negf %284 : vector<2x32xf32>
    %286 = math.exp %285 : vector<2x32xf32>
    %cst_69 = arith.constant 1.000000e+00 : f32
    %287 = vector.broadcast %cst_69 : f32 to vector<2x32xf32>
    %288 = arith.addf %287, %286 : vector<2x32xf32>
    %289 = arith.divf %287, %288 : vector<2x32xf32>
    %290 = vector.extract_strided_slice %279 {offsets = [0, 32], sizes = [2, 32], strides = [1, 1]} : vector<2x128xf32> to vector<2x32xf32>
    %291 = arith.negf %290 : vector<2x32xf32>
    %292 = math.exp %291 : vector<2x32xf32>
    %cst_70 = arith.constant 1.000000e+00 : f32
    %293 = vector.broadcast %cst_70 : f32 to vector<2x32xf32>
    %294 = arith.addf %293, %292 : vector<2x32xf32>
    %295 = arith.divf %293, %294 : vector<2x32xf32>
    %296 = vector.extract_strided_slice %279 {offsets = [0, 64], sizes = [2, 32], strides = [1, 1]} : vector<2x128xf32> to vector<2x32xf32>
    %297 = math.tanh %296 : vector<2x32xf32>
    %298 = vector.extract_strided_slice %279 {offsets = [0, 96], sizes = [2, 32], strides = [1, 1]} : vector<2x128xf32> to vector<2x32xf32>
    %299 = arith.negf %298 : vector<2x32xf32>
    %300 = math.exp %299 : vector<2x32xf32>
    %cst_71 = arith.constant 1.000000e+00 : f32
    %301 = vector.broadcast %cst_71 : f32 to vector<2x32xf32>
    %302 = arith.addf %301, %300 : vector<2x32xf32>
    %303 = arith.divf %301, %302 : vector<2x32xf32>
    %304 = arith.mulf %295, %242 : vector<2x32xf32>
    %305 = arith.mulf %289, %297 : vector<2x32xf32>
    %306 = arith.addf %304, %305 : vector<2x32xf32>
    %307 = math.tanh %306 : vector<2x32xf32>
    %308 = arith.mulf %303, %307 : vector<2x32xf32>
    %309 = vector.extract_strided_slice %283 {offsets = [0, 0], sizes = [2, 32], strides = [1, 1]} : vector<2x128xf32> to vector<2x32xf32>
    %310 = arith.negf %309 : vector<2x32xf32>
    %311 = math.exp %310 : vector<2x32xf32>
    %cst_72 = arith.constant 1.000000e+00 : f32
    %312 = vector.broadcast %cst_72 : f32 to vector<2x32xf32>
    %313 = arith.addf %312, %311 : vector<2x32xf32>
    %314 = arith.divf %312, %313 : vector<2x32xf32>
    %315 = vector.extract_strided_slice %283 {offsets = [0, 32], sizes = [2, 32], strides = [1, 1]} : vector<2x128xf32> to vector<2x32xf32>
    %316 = arith.negf %315 : vector<2x32xf32>
    %317 = math.exp %316 : vector<2x32xf32>
    %cst_73 = arith.constant 1.000000e+00 : f32
    %318 = vector.broadcast %cst_73 : f32 to vector<2x32xf32>
    %319 = arith.addf %318, %317 : vector<2x32xf32>
    %320 = arith.divf %318, %319 : vector<2x32xf32>
    %321 = vector.extract_strided_slice %283 {offsets = [0, 64], sizes = [2, 32], strides = [1, 1]} : vector<2x128xf32> to vector<2x32xf32>
    %322 = math.tanh %321 : vector<2x32xf32>
    %323 = vector.extract_strided_slice %283 {offsets = [0, 96], sizes = [2, 32], strides = [1, 1]} : vector<2x128xf32> to vector<2x32xf32>
    %324 = arith.negf %323 : vector<2x32xf32>
    %325 = math.exp %324 : vector<2x32xf32>
    %cst_74 = arith.constant 1.000000e+00 : f32
    %326 = vector.broadcast %cst_74 : f32 to vector<2x32xf32>
    %327 = arith.addf %326, %325 : vector<2x32xf32>
    %328 = arith.divf %326, %327 : vector<2x32xf32>
    %329 = arith.mulf %320, %267 : vector<2x32xf32>
    %330 = arith.mulf %314, %322 : vector<2x32xf32>
    %331 = arith.addf %329, %330 : vector<2x32xf32>
    %332 = math.tanh %331 : vector<2x32xf32>
    %333 = arith.mulf %328, %332 : vector<2x32xf32>
    %c0_75 = arith.constant 0 : index
    %c4_76 = arith.constant 4 : index
    %c0_77 = arith.constant 0 : index
    %334 = vector.load %arg7[%c0_75, %c4_76, %c0_77] : memref<2x8x64xf32, #tpu.memory_space<vmem>>, vector<2x1x32xf32>
    %335 = vector.shape_cast %334 : vector<2x1x32xf32> to vector<2x32xf32>
    %336 = vector.shape_cast %308 : vector<2x32xf32> to vector<2x1x32xf32>
    tpu.vector_store %arg7[%c0_75, %c4_76, %c0_77], %336 {strides = array<i32>} : memref<2x8x64xf32, #tpu.memory_space<vmem>>, vector<2x1x32xf32>,
    %c0_78 = arith.constant 0 : index
    %c3_79 = arith.constant 3 : index
    %c32_80 = arith.constant 32 : index
    %337 = vector.load %arg7[%c0_78, %c3_79, %c32_80] : memref<2x8x64xf32, #tpu.memory_space<vmem>>, vector<2x1x32xf32>
    %338 = vector.shape_cast %337 : vector<2x1x32xf32> to vector<2x32xf32>
    %339 = vector.shape_cast %333 : vector<2x32xf32> to vector<2x1x32xf32>
    tpu.vector_store %arg7[%c0_78, %c3_79, %c32_80], %339 {strides = array<i32>} : memref<2x8x64xf32, #tpu.memory_space<vmem>>, vector<2x1x32xf32>,
    %340 = vector.extract_strided_slice %7 {offsets = [0, 5, 0], sizes = [2, 1, 128], strides = [1, 1, 1]} : vector<2x8x128xf32> to vector<2x1x128xf32>
    %341 = vector.shape_cast %340 : vector<2x1x128xf32> to vector<2x128xf32>
    %cst_81 = arith.constant dense<0.000000e+00> : vector<2x128xf32>
    %342 = tpu.matmul %308, %14, %cst_81 {dimension_numbers = #tpu.dot_dimension_numbers<[1], [0], [0], [1], [0, 0, 1, 1], [], []>} : vector<2x32xf32>, vector<32x128xf32>, vector<2x128xf32> -> vector<2x128xf32>
    %343 = arith.addf %341, %342 : vector<2x128xf32>
    %344 = vector.extract_strided_slice %13 {offsets = [0, 2, 0], sizes = [2, 1, 128], strides = [1, 1, 1]} : vector<2x8x128xf32> to vector<2x1x128xf32>
    %345 = vector.shape_cast %344 : vector<2x1x128xf32> to vector<2x128xf32>
    %cst_82 = arith.constant dense<0.000000e+00> : vector<2x128xf32>
    %346 = tpu.matmul %333, %15, %cst_82 {dimension_numbers = #tpu.dot_dimension_numbers<[1], [0], [0], [1], [0, 0, 1, 1], [], []>} : vector<2x32xf32>, vector<32x128xf32>, vector<2x128xf32> -> vector<2x128xf32>
    %347 = arith.addf %345, %346 : vector<2x128xf32>
    %348 = vector.extract_strided_slice %343 {offsets = [0, 0], sizes = [2, 32], strides = [1, 1]} : vector<2x128xf32> to vector<2x32xf32>
    %349 = arith.negf %348 : vector<2x32xf32>
    %350 = math.exp %349 : vector<2x32xf32>
    %cst_83 = arith.constant 1.000000e+00 : f32
    %351 = vector.broadcast %cst_83 : f32 to vector<2x32xf32>
    %352 = arith.addf %351, %350 : vector<2x32xf32>
    %353 = arith.divf %351, %352 : vector<2x32xf32>
    %354 = vector.extract_strided_slice %343 {offsets = [0, 32], sizes = [2, 32], strides = [1, 1]} : vector<2x128xf32> to vector<2x32xf32>
    %355 = arith.negf %354 : vector<2x32xf32>
    %356 = math.exp %355 : vector<2x32xf32>
    %cst_84 = arith.constant 1.000000e+00 : f32
    %357 = vector.broadcast %cst_84 : f32 to vector<2x32xf32>
    %358 = arith.addf %357, %356 : vector<2x32xf32>
    %359 = arith.divf %357, %358 : vector<2x32xf32>
    %360 = vector.extract_strided_slice %343 {offsets = [0, 64], sizes = [2, 32], strides = [1, 1]} : vector<2x128xf32> to vector<2x32xf32>
    %361 = math.tanh %360 : vector<2x32xf32>
    %362 = vector.extract_strided_slice %343 {offsets = [0, 96], sizes = [2, 32], strides = [1, 1]} : vector<2x128xf32> to vector<2x32xf32>
    %363 = arith.negf %362 : vector<2x32xf32>
    %364 = math.exp %363 : vector<2x32xf32>
    %cst_85 = arith.constant 1.000000e+00 : f32
    %365 = vector.broadcast %cst_85 : f32 to vector<2x32xf32>
    %366 = arith.addf %365, %364 : vector<2x32xf32>
    %367 = arith.divf %365, %366 : vector<2x32xf32>
    %368 = arith.mulf %359, %306 : vector<2x32xf32>
    %369 = arith.mulf %353, %361 : vector<2x32xf32>
    %370 = arith.addf %368, %369 : vector<2x32xf32>
    %371 = math.tanh %370 : vector<2x32xf32>
    %372 = arith.mulf %367, %371 : vector<2x32xf32>
    %373 = vector.extract_strided_slice %347 {offsets = [0, 0], sizes = [2, 32], strides = [1, 1]} : vector<2x128xf32> to vector<2x32xf32>
    %374 = arith.negf %373 : vector<2x32xf32>
    %375 = math.exp %374 : vector<2x32xf32>
    %cst_86 = arith.constant 1.000000e+00 : f32
    %376 = vector.broadcast %cst_86 : f32 to vector<2x32xf32>
    %377 = arith.addf %376, %375 : vector<2x32xf32>
    %378 = arith.divf %376, %377 : vector<2x32xf32>
    %379 = vector.extract_strided_slice %347 {offsets = [0, 32], sizes = [2, 32], strides = [1, 1]} : vector<2x128xf32> to vector<2x32xf32>
    %380 = arith.negf %379 : vector<2x32xf32>
    %381 = math.exp %380 : vector<2x32xf32>
    %cst_87 = arith.constant 1.000000e+00 : f32
    %382 = vector.broadcast %cst_87 : f32 to vector<2x32xf32>
    %383 = arith.addf %382, %381 : vector<2x32xf32>
    %384 = arith.divf %382, %383 : vector<2x32xf32>
    %385 = vector.extract_strided_slice %347 {offsets = [0, 64], sizes = [2, 32], strides = [1, 1]} : vector<2x128xf32> to vector<2x32xf32>
    %386 = math.tanh %385 : vector<2x32xf32>
    %387 = vector.extract_strided_slice %347 {offsets = [0, 96], sizes = [2, 32], strides = [1, 1]} : vector<2x128xf32> to vector<2x32xf32>
    %388 = arith.negf %387 : vector<2x32xf32>
    %389 = math.exp %388 : vector<2x32xf32>
    %cst_88 = arith.constant 1.000000e+00 : f32
    %390 = vector.broadcast %cst_88 : f32 to vector<2x32xf32>
    %391 = arith.addf %390, %389 : vector<2x32xf32>
    %392 = arith.divf %390, %391 : vector<2x32xf32>
    %393 = arith.mulf %384, %331 : vector<2x32xf32>
    %394 = arith.mulf %378, %386 : vector<2x32xf32>
    %395 = arith.addf %393, %394 : vector<2x32xf32>
    %396 = math.tanh %395 : vector<2x32xf32>
    %397 = arith.mulf %392, %396 : vector<2x32xf32>
    %c0_89 = arith.constant 0 : index
    %c5_90 = arith.constant 5 : index
    %c0_91 = arith.constant 0 : index
    %398 = vector.load %arg7[%c0_89, %c5_90, %c0_91] : memref<2x8x64xf32, #tpu.memory_space<vmem>>, vector<2x1x32xf32>
    %399 = vector.shape_cast %398 : vector<2x1x32xf32> to vector<2x32xf32>
    %400 = vector.shape_cast %372 : vector<2x32xf32> to vector<2x1x32xf32>
    tpu.vector_store %arg7[%c0_89, %c5_90, %c0_91], %400 {strides = array<i32>} : memref<2x8x64xf32, #tpu.memory_space<vmem>>, vector<2x1x32xf32>,
    %c0_92 = arith.constant 0 : index
    %c2_93 = arith.constant 2 : index
    %c32_94 = arith.constant 32 : index
    %401 = vector.load %arg7[%c0_92, %c2_93, %c32_94] : memref<2x8x64xf32, #tpu.memory_space<vmem>>, vector<2x1x32xf32>
    %402 = vector.shape_cast %401 : vector<2x1x32xf32> to vector<2x32xf32>
    %403 = vector.shape_cast %397 : vector<2x32xf32> to vector<2x1x32xf32>
    tpu.vector_store %arg7[%c0_92, %c2_93, %c32_94], %403 {strides = array<i32>} : memref<2x8x64xf32, #tpu.memory_space<vmem>>, vector<2x1x32xf32>,
    %404 = vector.extract_strided_slice %7 {offsets = [0, 6, 0], sizes = [2, 1, 128], strides = [1, 1, 1]} : vector<2x8x128xf32> to vector<2x1x128xf32>
    %405 = vector.shape_cast %404 : vector<2x1x128xf32> to vector<2x128xf32>
    %cst_95 = arith.constant dense<0.000000e+00> : vector<2x128xf32>
    %406 = tpu.matmul %372, %14, %cst_95 {dimension_numbers = #tpu.dot_dimension_numbers<[1], [0], [0], [1], [0, 0, 1, 1], [], []>} : vector<2x32xf32>, vector<32x128xf32>, vector<2x128xf32> -> vector<2x128xf32>
    %407 = arith.addf %405, %406 : vector<2x128xf32>
    %408 = vector.extract_strided_slice %13 {offsets = [0, 1, 0], sizes = [2, 1, 128], strides = [1, 1, 1]} : vector<2x8x128xf32> to vector<2x1x128xf32>
    %409 = vector.shape_cast %408 : vector<2x1x128xf32> to vector<2x128xf32>
    %cst_96 = arith.constant dense<0.000000e+00> : vector<2x128xf32>
    %410 = tpu.matmul %397, %15, %cst_96 {dimension_numbers = #tpu.dot_dimension_numbers<[1], [0], [0], [1], [0, 0, 1, 1], [], []>} : vector<2x32xf32>, vector<32x128xf32>, vector<2x128xf32> -> vector<2x128xf32>
    %411 = arith.addf %409, %410 : vector<2x128xf32>
    %412 = vector.extract_strided_slice %407 {offsets = [0, 0], sizes = [2, 32], strides = [1, 1]} : vector<2x128xf32> to vector<2x32xf32>
    %413 = arith.negf %412 : vector<2x32xf32>
    %414 = math.exp %413 : vector<2x32xf32>
    %cst_97 = arith.constant 1.000000e+00 : f32
    %415 = vector.broadcast %cst_97 : f32 to vector<2x32xf32>
    %416 = arith.addf %415, %414 : vector<2x32xf32>
    %417 = arith.divf %415, %416 : vector<2x32xf32>
    %418 = vector.extract_strided_slice %407 {offsets = [0, 32], sizes = [2, 32], strides = [1, 1]} : vector<2x128xf32> to vector<2x32xf32>
    %419 = arith.negf %418 : vector<2x32xf32>
    %420 = math.exp %419 : vector<2x32xf32>
    %cst_98 = arith.constant 1.000000e+00 : f32
    %421 = vector.broadcast %cst_98 : f32 to vector<2x32xf32>
    %422 = arith.addf %421, %420 : vector<2x32xf32>
    %423 = arith.divf %421, %422 : vector<2x32xf32>
    %424 = vector.extract_strided_slice %407 {offsets = [0, 64], sizes = [2, 32], strides = [1, 1]} : vector<2x128xf32> to vector<2x32xf32>
    %425 = math.tanh %424 : vector<2x32xf32>
    %426 = vector.extract_strided_slice %407 {offsets = [0, 96], sizes = [2, 32], strides = [1, 1]} : vector<2x128xf32> to vector<2x32xf32>
    %427 = arith.negf %426 : vector<2x32xf32>
    %428 = math.exp %427 : vector<2x32xf32>
    %cst_99 = arith.constant 1.000000e+00 : f32
    %429 = vector.broadcast %cst_99 : f32 to vector<2x32xf32>
    %430 = arith.addf %429, %428 : vector<2x32xf32>
    %431 = arith.divf %429, %430 : vector<2x32xf32>
    %432 = arith.mulf %423, %370 : vector<2x32xf32>
    %433 = arith.mulf %417, %425 : vector<2x32xf32>
    %434 = arith.addf %432, %433 : vector<2x32xf32>
    %435 = math.tanh %434 : vector<2x32xf32>
    %436 = arith.mulf %431, %435 : vector<2x32xf32>
    %437 = vector.extract_strided_slice %411 {offsets = [0, 0], sizes = [2, 32], strides = [1, 1]} : vector<2x128xf32> to vector<2x32xf32>
    %438 = arith.negf %437 : vector<2x32xf32>
    %439 = math.exp %438 : vector<2x32xf32>
    %cst_100 = arith.constant 1.000000e+00 : f32
    %440 = vector.broadcast %cst_100 : f32 to vector<2x32xf32>
    %441 = arith.addf %440, %439 : vector<2x32xf32>
    %442 = arith.divf %440, %441 : vector<2x32xf32>
    %443 = vector.extract_strided_slice %411 {offsets = [0, 32], sizes = [2, 32], strides = [1, 1]} : vector<2x128xf32> to vector<2x32xf32>
    %444 = arith.negf %443 : vector<2x32xf32>
    %445 = math.exp %444 : vector<2x32xf32>
    %cst_101 = arith.constant 1.000000e+00 : f32
    %446 = vector.broadcast %cst_101 : f32 to vector<2x32xf32>
    %447 = arith.addf %446, %445 : vector<2x32xf32>
    %448 = arith.divf %446, %447 : vector<2x32xf32>
    %449 = vector.extract_strided_slice %411 {offsets = [0, 64], sizes = [2, 32], strides = [1, 1]} : vector<2x128xf32> to vector<2x32xf32>
    %450 = math.tanh %449 : vector<2x32xf32>
    %451 = vector.extract_strided_slice %411 {offsets = [0, 96], sizes = [2, 32], strides = [1, 1]} : vector<2x128xf32> to vector<2x32xf32>
    %452 = arith.negf %451 : vector<2x32xf32>
    %453 = math.exp %452 : vector<2x32xf32>
    %cst_102 = arith.constant 1.000000e+00 : f32
    %454 = vector.broadcast %cst_102 : f32 to vector<2x32xf32>
    %455 = arith.addf %454, %453 : vector<2x32xf32>
    %456 = arith.divf %454, %455 : vector<2x32xf32>
    %457 = arith.mulf %448, %395 : vector<2x32xf32>
    %458 = arith.mulf %442, %450 : vector<2x32xf32>
    %459 = arith.addf %457, %458 : vector<2x32xf32>
    %460 = math.tanh %459 : vector<2x32xf32>
    %461 = arith.mulf %456, %460 : vector<2x32xf32>
    %c0_103 = arith.constant 0 : index
    %c6_104 = arith.constant 6 : index
    %c0_105 = arith.constant 0 : index
    %462 = vector.load %arg7[%c0_103, %c6_104, %c0_105] : memref<2x8x64xf32, #tpu.memory_space<vmem>>, vector<2x1x32xf32>
    %463 = vector.shape_cast %462 : vector<2x1x32xf32> to vector<2x32xf32>
    %464 = vector.shape_cast %436 : vector<2x32xf32> to vector<2x1x32xf32>
    tpu.vector_store %arg7[%c0_103, %c6_104, %c0_105], %464 {strides = array<i32>} : memref<2x8x64xf32, #tpu.memory_space<vmem>>, vector<2x1x32xf32>,
    %c0_106 = arith.constant 0 : index
    %c1_107 = arith.constant 1 : index
    %c32_108 = arith.constant 32 : index
    %465 = vector.load %arg7[%c0_106, %c1_107, %c32_108] : memref<2x8x64xf32, #tpu.memory_space<vmem>>, vector<2x1x32xf32>
    %466 = vector.shape_cast %465 : vector<2x1x32xf32> to vector<2x32xf32>
    %467 = vector.shape_cast %461 : vector<2x32xf32> to vector<2x1x32xf32>
    tpu.vector_store %arg7[%c0_106, %c1_107, %c32_108], %467 {strides = array<i32>} : memref<2x8x64xf32, #tpu.memory_space<vmem>>, vector<2x1x32xf32>,
    %468 = vector.extract_strided_slice %7 {offsets = [0, 7, 0], sizes = [2, 1, 128], strides = [1, 1, 1]} : vector<2x8x128xf32> to vector<2x1x128xf32>
    %469 = vector.shape_cast %468 : vector<2x1x128xf32> to vector<2x128xf32>
    %cst_109 = arith.constant dense<0.000000e+00> : vector<2x128xf32>
    %470 = tpu.matmul %436, %14, %cst_109 {dimension_numbers = #tpu.dot_dimension_numbers<[1], [0], [0], [1], [0, 0, 1, 1], [], []>} : vector<2x32xf32>, vector<32x128xf32>, vector<2x128xf32> -> vector<2x128xf32>
    %471 = arith.addf %469, %470 : vector<2x128xf32>
    %472 = vector.extract_strided_slice %13 {offsets = [0, 0, 0], sizes = [2, 1, 128], strides = [1, 1, 1]} : vector<2x8x128xf32> to vector<2x1x128xf32>
    %473 = vector.shape_cast %472 : vector<2x1x128xf32> to vector<2x128xf32>
    %cst_110 = arith.constant dense<0.000000e+00> : vector<2x128xf32>
    %474 = tpu.matmul %461, %15, %cst_110 {dimension_numbers = #tpu.dot_dimension_numbers<[1], [0], [0], [1], [0, 0, 1, 1], [], []>} : vector<2x32xf32>, vector<32x128xf32>, vector<2x128xf32> -> vector<2x128xf32>
    %475 = arith.addf %473, %474 : vector<2x128xf32>
    %476 = vector.extract_strided_slice %471 {offsets = [0, 0], sizes = [2, 32], strides = [1, 1]} : vector<2x128xf32> to vector<2x32xf32>
    %477 = arith.negf %476 : vector<2x32xf32>
    %478 = math.exp %477 : vector<2x32xf32>
    %cst_111 = arith.constant 1.000000e+00 : f32
    %479 = vector.broadcast %cst_111 : f32 to vector<2x32xf32>
    %480 = arith.addf %479, %478 : vector<2x32xf32>
    %481 = arith.divf %479, %480 : vector<2x32xf32>
    %482 = vector.extract_strided_slice %471 {offsets = [0, 32], sizes = [2, 32], strides = [1, 1]} : vector<2x128xf32> to vector<2x32xf32>
    %483 = arith.negf %482 : vector<2x32xf32>
    %484 = math.exp %483 : vector<2x32xf32>
    %cst_112 = arith.constant 1.000000e+00 : f32
    %485 = vector.broadcast %cst_112 : f32 to vector<2x32xf32>
    %486 = arith.addf %485, %484 : vector<2x32xf32>
    %487 = arith.divf %485, %486 : vector<2x32xf32>
    %488 = vector.extract_strided_slice %471 {offsets = [0, 64], sizes = [2, 32], strides = [1, 1]} : vector<2x128xf32> to vector<2x32xf32>
    %489 = math.tanh %488 : vector<2x32xf32>
    %490 = vector.extract_strided_slice %471 {offsets = [0, 96], sizes = [2, 32], strides = [1, 1]} : vector<2x128xf32> to vector<2x32xf32>
    %491 = arith.negf %490 : vector<2x32xf32>
    %492 = math.exp %491 : vector<2x32xf32>
    %cst_113 = arith.constant 1.000000e+00 : f32
    %493 = vector.broadcast %cst_113 : f32 to vector<2x32xf32>
    %494 = arith.addf %493, %492 : vector<2x32xf32>
    %495 = arith.divf %493, %494 : vector<2x32xf32>
    %496 = arith.mulf %487, %434 : vector<2x32xf32>
    %497 = arith.mulf %481, %489 : vector<2x32xf32>
    %498 = arith.addf %496, %497 : vector<2x32xf32>
    %499 = math.tanh %498 : vector<2x32xf32>
    %500 = arith.mulf %495, %499 : vector<2x32xf32>
    %501 = vector.extract_strided_slice %475 {offsets = [0, 0], sizes = [2, 32], strides = [1, 1]} : vector<2x128xf32> to vector<2x32xf32>
    %502 = arith.negf %501 : vector<2x32xf32>
    %503 = math.exp %502 : vector<2x32xf32>
    %cst_114 = arith.constant 1.000000e+00 : f32
    %504 = vector.broadcast %cst_114 : f32 to vector<2x32xf32>
    %505 = arith.addf %504, %503 : vector<2x32xf32>
    %506 = arith.divf %504, %505 : vector<2x32xf32>
    %507 = vector.extract_strided_slice %475 {offsets = [0, 32], sizes = [2, 32], strides = [1, 1]} : vector<2x128xf32> to vector<2x32xf32>
    %508 = arith.negf %507 : vector<2x32xf32>
    %509 = math.exp %508 : vector<2x32xf32>
    %cst_115 = arith.constant 1.000000e+00 : f32
    %510 = vector.broadcast %cst_115 : f32 to vector<2x32xf32>
    %511 = arith.addf %510, %509 : vector<2x32xf32>
    %512 = arith.divf %510, %511 : vector<2x32xf32>
    %513 = vector.extract_strided_slice %475 {offsets = [0, 64], sizes = [2, 32], strides = [1, 1]} : vector<2x128xf32> to vector<2x32xf32>
    %514 = math.tanh %513 : vector<2x32xf32>
    %515 = vector.extract_strided_slice %475 {offsets = [0, 96], sizes = [2, 32], strides = [1, 1]} : vector<2x128xf32> to vector<2x32xf32>
    %516 = arith.negf %515 : vector<2x32xf32>
    %517 = math.exp %516 : vector<2x32xf32>
    %cst_116 = arith.constant 1.000000e+00 : f32
    %518 = vector.broadcast %cst_116 : f32 to vector<2x32xf32>
    %519 = arith.addf %518, %517 : vector<2x32xf32>
    %520 = arith.divf %518, %519 : vector<2x32xf32>
    %521 = arith.mulf %512, %459 : vector<2x32xf32>
    %522 = arith.mulf %506, %514 : vector<2x32xf32>
    %523 = arith.addf %521, %522 : vector<2x32xf32>
    %524 = math.tanh %523 : vector<2x32xf32>
    %525 = arith.mulf %520, %524 : vector<2x32xf32>
    %c0_117 = arith.constant 0 : index
    %c7_118 = arith.constant 7 : index
    %c0_119 = arith.constant 0 : index
    %526 = vector.load %arg7[%c0_117, %c7_118, %c0_119] : memref<2x8x64xf32, #tpu.memory_space<vmem>>, vector<2x1x32xf32>
    %527 = vector.shape_cast %526 : vector<2x1x32xf32> to vector<2x32xf32>
    %528 = vector.shape_cast %500 : vector<2x32xf32> to vector<2x1x32xf32>
    tpu.vector_store %arg7[%c0_117, %c7_118, %c0_119], %528 {strides = array<i32>} : memref<2x8x64xf32, #tpu.memory_space<vmem>>, vector<2x1x32xf32>,
    %c0_120 = arith.constant 0 : index
    %c0_121 = arith.constant 0 : index
    %c32_122 = arith.constant 32 : index
    %529 = vector.load %arg7[%c0_120, %c0_121, %c32_122] : memref<2x8x64xf32, #tpu.memory_space<vmem>>, vector<2x1x32xf32>
    %530 = vector.shape_cast %529 : vector<2x1x32xf32> to vector<2x32xf32>
    %531 = vector.shape_cast %525 : vector<2x32xf32> to vector<2x1x32xf32>
    tpu.vector_store %arg7[%c0_120, %c0_121, %c32_122], %531 {strides = array<i32>} : memref<2x8x64xf32, #tpu.memory_space<vmem>>, vector<2x1x32xf32>,
    return
  }
}

module attributes {stable_mosaic.version = 11 : i64} {
  func.func @coattn_kernel(%arg0: memref<16x1x64xf32, #tpu.memory_space<vmem>>, %arg1: memref<16x8x64xf32, #tpu.memory_space<vmem>>, %arg2: memref<16x1x64xf32, #tpu.memory_space<vmem>>, %arg3: memref<16x1x8xf32, #tpu.memory_space<vmem>>) attributes {dimension_semantics = [], scalar_prefetch = 0 : i64, scratch_operands = 0 : i64, tpu.core_type = #tpu.core_type<tc>} {
    %c0 = arith.constant 0 : index
    %c0_0 = arith.constant 0 : index
    %c0_1 = arith.constant 0 : index
    %0 = vector.load %arg0[%c0, %c0_0, %c0_1] : memref<16x1x64xf32, #tpu.memory_space<vmem>>, vector<16x1x64xf32>
    %c0_2 = arith.constant 0 : index
    %c0_3 = arith.constant 0 : index
    %c0_4 = arith.constant 0 : index
    %1 = vector.load %arg1[%c0_2, %c0_3, %c0_4] : memref<16x8x64xf32, #tpu.memory_space<vmem>>, vector<16x8x64xf32>
    "tpu.trace_start"() <{level = 10 : i32, message = "nqd,nsd->nqs"}> : () -> ()
    %cst = arith.constant dense<0.000000e+00> : vector<16x1x8xf32>
    %2 = tpu.matmul %0, %1, %cst {dimension_numbers = #tpu.dot_dimension_numbers<[2], [2], [1], [1], [0, 0, 0, 1, 1, 1], [0], [0]>} : vector<16x1x64xf32>, vector<16x8x64xf32>, vector<16x1x8xf32> -> vector<16x1x8xf32>
    "tpu.trace_stop"() : () -> ()
    %cst_5 = arith.constant dense<0xFF800000> : vector<16x1xf32>
    %3 = vector.multi_reduction <maximumf>, %2, %cst_5 [2] : vector<16x1x8xf32> to vector<16x1xf32>
    %cst_6 = arith.constant 0xFF800000 : f32
    %4 = vector.broadcast %cst_6 : f32 to vector<16x1xf32>
    %5 = arith.maximumf %4, %3 : vector<16x1xf32>
    %6 = vector.shape_cast %5 : vector<16x1xf32> to vector<16x1x1xf32>
    %7 = vector.broadcast %6 : vector<16x1x1xf32> to vector<16x1x8xf32>
    %8 = arith.subf %2, %7 : vector<16x1x8xf32>
    %9 = math.exp %8 : vector<16x1x8xf32>
    %cst_7 = arith.constant dense<0.000000e+00> : vector<16x1xf32>
    %10 = vector.multi_reduction <add>, %9, %cst_7 [2] : vector<16x1x8xf32> to vector<16x1xf32>
    %11 = vector.shape_cast %10 : vector<16x1xf32> to vector<16x1x1xf32>
    %12 = vector.broadcast %11 : vector<16x1x1xf32> to vector<16x1x8xf32>
    %13 = arith.divf %9, %12 : vector<16x1x8xf32>
    %c0_8 = arith.constant 0 : index
    %c0_9 = arith.constant 0 : index
    %c0_10 = arith.constant 0 : index
    %14 = vector.load %arg3[%c0_8, %c0_9, %c0_10] : memref<16x1x8xf32, #tpu.memory_space<vmem>>, vector<16x1x8xf32>
    tpu.vector_store %arg3[%c0_8, %c0_9, %c0_10], %13 {strides = array<i32>} : memref<16x1x8xf32, #tpu.memory_space<vmem>>, vector<16x1x8xf32>,
    "tpu.trace_start"() <{level = 10 : i32, message = "nqs,nsd->nqd"}> : () -> ()
    %cst_11 = arith.constant dense<0.000000e+00> : vector<16x1x64xf32>
    %15 = tpu.matmul %13, %1, %cst_11 {dimension_numbers = #tpu.dot_dimension_numbers<[2], [1], [1], [2], [0, 0, 0, 1, 1, 2], [0], [0]>} : vector<16x1x8xf32>, vector<16x8x64xf32>, vector<16x1x64xf32> -> vector<16x1x64xf32>
    "tpu.trace_stop"() : () -> ()
    %c0_12 = arith.constant 0 : index
    %c0_13 = arith.constant 0 : index
    %c0_14 = arith.constant 0 : index
    %16 = vector.load %arg2[%c0_12, %c0_13, %c0_14] : memref<16x1x64xf32, #tpu.memory_space<vmem>>, vector<16x1x64xf32>
    tpu.vector_store %arg2[%c0_12, %c0_13, %c0_14], %15 {strides = array<i32>} : memref<16x1x64xf32, #tpu.memory_space<vmem>>, vector<16x1x64xf32>,
    return
  }
}

module attributes {stable_mosaic.version = 11 : i64} {
  func.func @dual_encoder_kernel(%arg0: memref<2x8x64xf32, #tpu.memory_space<vmem>>, %arg1: memref<2x8x64xf32, #tpu.memory_space<vmem>>, %arg2: memref<2x8x64xf32, #tpu.memory_space<vmem>>, %arg3: memref<1x64xf32, #tpu.memory_space<vmem>>, %arg4: memref<1x64xf32, #tpu.memory_space<vmem>>, %arg5: memref<64x32xf32, #tpu.memory_space<vmem>>, %arg6: memref<64x64xf32, #tpu.memory_space<vmem>>, %arg7: memref<32x64xf32, #tpu.memory_space<vmem>>, %arg8: memref<1x64xf32, #tpu.memory_space<vmem>>, %arg9: memref<1x64xf32, #tpu.memory_space<vmem>>, %arg10: memref<64x32xf32, #tpu.memory_space<vmem>>, %arg11: memref<64x64xf32, #tpu.memory_space<vmem>>, %arg12: memref<32x64xf32, #tpu.memory_space<vmem>>, %arg13: memref<2x8x64xf32, #tpu.memory_space<vmem>>, %arg14: memref<2x2x8x8xf32, #tpu.memory_space<vmem>>) attributes {dimension_semantics = [], scalar_prefetch = 0 : i64, scratch_operands = 0 : i64, tpu.core_type = #tpu.core_type<tc>} {
    %c0 = arith.constant 0 : index
    %c0_0 = arith.constant 0 : index
    %c0_1 = arith.constant 0 : index
    %0 = vector.load %arg0[%c0, %c0_0, %c0_1] : memref<2x8x64xf32, #tpu.memory_space<vmem>>, vector<2x8x64xf32>
    %c0_2 = arith.constant 0 : index
    %c0_3 = arith.constant 0 : index
    %c0_4 = arith.constant 0 : index
    %1 = vector.load %arg1[%c0_2, %c0_3, %c0_4] : memref<2x8x64xf32, #tpu.memory_space<vmem>>, vector<2x8x64xf32>
    %c0_5 = arith.constant 0 : index
    %c0_6 = arith.constant 0 : index
    %2 = vector.load %arg3[%c0_5, %c0_6] : memref<1x64xf32, #tpu.memory_space<vmem>>, vector<1x64xf32>
    %c0_7 = arith.constant 0 : index
    %c0_8 = arith.constant 0 : index
    %3 = vector.load %arg4[%c0_7, %c0_8] : memref<1x64xf32, #tpu.memory_space<vmem>>, vector<1x64xf32>
    %c0_9 = arith.constant 0 : index
    %c0_10 = arith.constant 0 : index
    %4 = vector.load %arg5[%c0_9, %c0_10] : memref<64x32xf32, #tpu.memory_space<vmem>>, vector<64x32xf32>
    %c0_11 = arith.constant 0 : index
    %c0_12 = arith.constant 0 : index
    %5 = vector.load %arg6[%c0_11, %c0_12] : memref<64x64xf32, #tpu.memory_space<vmem>>, vector<64x64xf32>
    %c0_13 = arith.constant 0 : index
    %c0_14 = arith.constant 0 : index
    %6 = vector.load %arg7[%c0_13, %c0_14] : memref<32x64xf32, #tpu.memory_space<vmem>>, vector<32x64xf32>
    %cst = arith.constant dense<0.000000e+00> : vector<2x8xf32>
    %7 = vector.multi_reduction <add>, %0, %cst [2] : vector<2x8x64xf32> to vector<2x8xf32>
    %8 = vector.shape_cast %7 : vector<2x8xf32> to vector<2x8x1xf32>
    %cst_15 = arith.constant 6.400000e+01 : f32
    %9 = vector.broadcast %cst_15 : f32 to vector<2x8x1xf32>
    %10 = arith.divf %8, %9 : vector<2x8x1xf32>
    %11 = vector.broadcast %10 : vector<2x8x1xf32> to vector<2x8x64xf32>
    %12 = arith.subf %0, %11 : vector<2x8x64xf32>
    %13 = arith.mulf %12, %12 : vector<2x8x64xf32>
    %cst_16 = arith.constant dense<0.000000e+00> : vector<2x8xf32>
    %14 = vector.multi_reduction <add>, %13, %cst_16 [2] : vector<2x8x64xf32> to vector<2x8xf32>
    %15 = vector.shape_cast %14 : vector<2x8xf32> to vector<2x8x1xf32>
    %cst_17 = arith.constant 6.400000e+01 : f32
    %16 = vector.broadcast %cst_17 : f32 to vector<2x8x1xf32>
    %17 = arith.divf %15, %16 : vector<2x8x1xf32>
    %18 = vector.broadcast %10 : vector<2x8x1xf32> to vector<2x8x64xf32>
    %19 = arith.subf %0, %18 : vector<2x8x64xf32>
    %cst_18 = arith.constant 9.99999997E-7 : f32
    %20 = vector.broadcast %cst_18 : f32 to vector<2x8x1xf32>
    %21 = arith.addf %17, %20 : vector<2x8x1xf32>
    %22 = math.rsqrt %21 : vector<2x8x1xf32>
    %23 = vector.broadcast %22 : vector<2x8x1xf32> to vector<2x8x64xf32>
    %24 = arith.mulf %19, %23 : vector<2x8x64xf32>
    %25 = vector.shape_cast %2 : vector<1x64xf32> to vector<1x1x64xf32>
    %26 = vector.broadcast %25 : vector<1x1x64xf32> to vector<2x8x64xf32>
    %27 = arith.mulf %24, %26 : vector<2x8x64xf32>
    %28 = vector.shape_cast %3 : vector<1x64xf32> to vector<1x1x64xf32>
    %29 = vector.broadcast %28 : vector<1x1x64xf32> to vector<2x8x64xf32>
    %30 = arith.addf %27, %29 : vector<2x8x64xf32>
    %31 = vector.shape_cast %30 : vector<2x8x64xf32> to vector<16x64xf32>
    %cst_19 = arith.constant dense<0.000000e+00> : vector<16x32xf32>
    %32 = tpu.matmul %31, %4, %cst_19 {dimension_numbers = #tpu.dot_dimension_numbers<[1], [0], [0], [1], [0, 0, 1, 1], [], []>} : vector<16x64xf32>, vector<64x32xf32>, vector<16x32xf32> -> vector<16x32xf32>
    %cst_20 = arith.constant 0.000000e+00 : f32
    %33 = vector.broadcast %cst_20 : f32 to vector<16x32xf32>
    %34 = arith.maximumf %32, %33 : vector<16x32xf32>
    %35 = vector.shape_cast %1 : vector<2x8x64xf32> to vector<16x64xf32>
    %cst_21 = arith.constant dense<0.000000e+00> : vector<16x64xf32>
    %36 = tpu.matmul %35, %5, %cst_21 {dimension_numbers = #tpu.dot_dimension_numbers<[1], [0], [0], [1], [0, 0, 1, 1], [], []>} : vector<16x64xf32>, vector<64x64xf32>, vector<16x64xf32> -> vector<16x64xf32>
    %cst_22 = arith.constant 0.000000e+00 : f32
    %37 = vector.broadcast %cst_22 : f32 to vector<16x64xf32>
    %38 = arith.maximumf %36, %37 : vector<16x64xf32>
    %39 = vector.shape_cast %34 : vector<16x32xf32> to vector<2x8x32xf32>
    %40 = vector.extract_strided_slice %38 {offsets = [0, 0], sizes = [16, 32], strides = [1, 1]} : vector<16x64xf32> to vector<16x32xf32>
    %41 = vector.shape_cast %40 : vector<16x32xf32> to vector<2x8x32xf32>
    %42 = vector.extract_strided_slice %38 {offsets = [0, 32], sizes = [16, 32], strides = [1, 1]} : vector<16x64xf32> to vector<16x32xf32>
    %43 = vector.shape_cast %42 : vector<16x32xf32> to vector<2x8x32xf32>
    %44 = vector.extract_strided_slice %39 {offsets = [0, 0, 0], sizes = [2, 8, 16], strides = [1, 1, 1]} : vector<2x8x32xf32> to vector<2x8x16xf32>
    %45 = vector.extract_strided_slice %41 {offsets = [0, 0, 0], sizes = [2, 8, 16], strides = [1, 1, 1]} : vector<2x8x32xf32> to vector<2x8x16xf32>
    %46 = vector.extract_strided_slice %43 {offsets = [0, 0, 0], sizes = [2, 8, 16], strides = [1, 1, 1]} : vector<2x8x32xf32> to vector<2x8x16xf32>
    "tpu.trace_start"() <{level = 10 : i32, message = "bqd,bkd->bqk"}> : () -> ()
    %cst_23 = arith.constant dense<0.000000e+00> : vector<2x8x8xf32>
    %47 = tpu.matmul %44, %45, %cst_23 {dimension_numbers = #tpu.dot_dimension_numbers<[2], [2], [1], [1], [0, 0, 0, 1, 1, 1], [0], [0]>} : vector<2x8x16xf32>, vector<2x8x16xf32>, vector<2x8x8xf32> -> vector<2x8x8xf32>
    "tpu.trace_stop"() : () -> ()
    %cst_24 = arith.constant dense<0xFF800000> : vector<2x8xf32>
    %48 = vector.multi_reduction <maximumf>, %47, %cst_24 [2] : vector<2x8x8xf32> to vector<2x8xf32>
    %cst_25 = arith.constant 0xFF800000 : f32
    %49 = vector.broadcast %cst_25 : f32 to vector<2x8xf32>
    %50 = arith.maximumf %49, %48 : vector<2x8xf32>
    %51 = vector.shape_cast %50 : vector<2x8xf32> to vector<2x8x1xf32>
    %52 = vector.broadcast %51 : vector<2x8x1xf32> to vector<2x8x8xf32>
    %53 = arith.subf %47, %52 : vector<2x8x8xf32>
    %54 = math.exp %53 : vector<2x8x8xf32>
    %cst_26 = arith.constant dense<0.000000e+00> : vector<2x8xf32>
    %55 = vector.multi_reduction <add>, %54, %cst_26 [2] : vector<2x8x8xf32> to vector<2x8xf32>
    %56 = vector.shape_cast %55 : vector<2x8xf32> to vector<2x8x1xf32>
    %57 = vector.broadcast %56 : vector<2x8x1xf32> to vector<2x8x8xf32>
    %58 = arith.divf %54, %57 : vector<2x8x8xf32>
    "tpu.trace_start"() <{level = 10 : i32, message = "bqk,bkd->bqd"}> : () -> ()
    %cst_27 = arith.constant dense<0.000000e+00> : vector<2x8x16xf32>
    %59 = tpu.matmul %58, %46, %cst_27 {dimension_numbers = #tpu.dot_dimension_numbers<[2], [1], [1], [2], [0, 0, 0, 1, 1, 2], [0], [0]>} : vector<2x8x8xf32>, vector<2x8x16xf32>, vector<2x8x16xf32> -> vector<2x8x16xf32>
    "tpu.trace_stop"() : () -> ()
    %60 = vector.extract_strided_slice %39 {offsets = [0, 0, 16], sizes = [2, 8, 16], strides = [1, 1, 1]} : vector<2x8x32xf32> to vector<2x8x16xf32>
    %61 = vector.extract_strided_slice %41 {offsets = [0, 0, 16], sizes = [2, 8, 16], strides = [1, 1, 1]} : vector<2x8x32xf32> to vector<2x8x16xf32>
    %62 = vector.extract_strided_slice %43 {offsets = [0, 0, 16], sizes = [2, 8, 16], strides = [1, 1, 1]} : vector<2x8x32xf32> to vector<2x8x16xf32>
    "tpu.trace_start"() <{level = 10 : i32, message = "bqd,bkd->bqk"}> : () -> ()
    %cst_28 = arith.constant dense<0.000000e+00> : vector<2x8x8xf32>
    %63 = tpu.matmul %60, %61, %cst_28 {dimension_numbers = #tpu.dot_dimension_numbers<[2], [2], [1], [1], [0, 0, 0, 1, 1, 1], [0], [0]>} : vector<2x8x16xf32>, vector<2x8x16xf32>, vector<2x8x8xf32> -> vector<2x8x8xf32>
    "tpu.trace_stop"() : () -> ()
    %cst_29 = arith.constant dense<0xFF800000> : vector<2x8xf32>
    %64 = vector.multi_reduction <maximumf>, %63, %cst_29 [2] : vector<2x8x8xf32> to vector<2x8xf32>
    %cst_30 = arith.constant 0xFF800000 : f32
    %65 = vector.broadcast %cst_30 : f32 to vector<2x8xf32>
    %66 = arith.maximumf %65, %64 : vector<2x8xf32>
    %67 = vector.shape_cast %66 : vector<2x8xf32> to vector<2x8x1xf32>
    %68 = vector.broadcast %67 : vector<2x8x1xf32> to vector<2x8x8xf32>
    %69 = arith.subf %63, %68 : vector<2x8x8xf32>
    %70 = math.exp %69 : vector<2x8x8xf32>
    %cst_31 = arith.constant dense<0.000000e+00> : vector<2x8xf32>
    %71 = vector.multi_reduction <add>, %70, %cst_31 [2] : vector<2x8x8xf32> to vector<2x8xf32>
    %72 = vector.shape_cast %71 : vector<2x8xf32> to vector<2x8x1xf32>
    %73 = vector.broadcast %72 : vector<2x8x1xf32> to vector<2x8x8xf32>
    %74 = arith.divf %70, %73 : vector<2x8x8xf32>
    "tpu.trace_start"() <{level = 10 : i32, message = "bqk,bkd->bqd"}> : () -> ()
    %cst_32 = arith.constant dense<0.000000e+00> : vector<2x8x16xf32>
    %75 = tpu.matmul %74, %62, %cst_32 {dimension_numbers = #tpu.dot_dimension_numbers<[2], [1], [1], [2], [0, 0, 0, 1, 1, 2], [0], [0]>} : vector<2x8x8xf32>, vector<2x8x16xf32>, vector<2x8x16xf32> -> vector<2x8x16xf32>
    "tpu.trace_stop"() : () -> ()
    %76 = tpu.concatenate %59, %75 in 2 : vector<2x8x16xf32>, vector<2x8x16xf32> -> vector<2x8x32xf32>
    %77 = vector.shape_cast %76 : vector<2x8x32xf32> to vector<16x32xf32>
    %cst_33 = arith.constant dense<0.000000e+00> : vector<16x64xf32>
    %78 = tpu.matmul %77, %6, %cst_33 {dimension_numbers = #tpu.dot_dimension_numbers<[1], [0], [0], [1], [0, 0, 1, 1], [], []>} : vector<16x32xf32>, vector<32x64xf32>, vector<16x64xf32> -> vector<16x64xf32>
    %79 = vector.shape_cast %78 : vector<16x64xf32> to vector<2x8x64xf32>
    %80 = arith.addf %79, %0 : vector<2x8x64xf32>
    %c0_34 = arith.constant 0 : index
    %c0_35 = arith.constant 0 : index
    %c0_36 = arith.constant 0 : index
    %81 = vector.load %arg2[%c0_34, %c0_35, %c0_36] : memref<2x8x64xf32, #tpu.memory_space<vmem>>, vector<2x8x64xf32>
    %c0_37 = arith.constant 0 : index
    %c0_38 = arith.constant 0 : index
    %82 = vector.load %arg8[%c0_37, %c0_38] : memref<1x64xf32, #tpu.memory_space<vmem>>, vector<1x64xf32>
    %c0_39 = arith.constant 0 : index
    %c0_40 = arith.constant 0 : index
    %83 = vector.load %arg9[%c0_39, %c0_40] : memref<1x64xf32, #tpu.memory_space<vmem>>, vector<1x64xf32>
    %c0_41 = arith.constant 0 : index
    %c0_42 = arith.constant 0 : index
    %84 = vector.load %arg10[%c0_41, %c0_42] : memref<64x32xf32, #tpu.memory_space<vmem>>, vector<64x32xf32>
    %c0_43 = arith.constant 0 : index
    %c0_44 = arith.constant 0 : index
    %85 = vector.load %arg11[%c0_43, %c0_44] : memref<64x64xf32, #tpu.memory_space<vmem>>, vector<64x64xf32>
    %c0_45 = arith.constant 0 : index
    %c0_46 = arith.constant 0 : index
    %86 = vector.load %arg12[%c0_45, %c0_46] : memref<32x64xf32, #tpu.memory_space<vmem>>, vector<32x64xf32>
    %cst_47 = arith.constant dense<0.000000e+00> : vector<2x8xf32>
    %87 = vector.multi_reduction <add>, %80, %cst_47 [2] : vector<2x8x64xf32> to vector<2x8xf32>
    %88 = vector.shape_cast %87 : vector<2x8xf32> to vector<2x8x1xf32>
    %cst_48 = arith.constant 6.400000e+01 : f32
    %89 = vector.broadcast %cst_48 : f32 to vector<2x8x1xf32>
    %90 = arith.divf %88, %89 : vector<2x8x1xf32>
    %91 = vector.broadcast %90 : vector<2x8x1xf32> to vector<2x8x64xf32>
    %92 = arith.subf %80, %91 : vector<2x8x64xf32>
    %93 = arith.mulf %92, %92 : vector<2x8x64xf32>
    %cst_49 = arith.constant dense<0.000000e+00> : vector<2x8xf32>
    %94 = vector.multi_reduction <add>, %93, %cst_49 [2] : vector<2x8x64xf32> to vector<2x8xf32>
    %95 = vector.shape_cast %94 : vector<2x8xf32> to vector<2x8x1xf32>
    %cst_50 = arith.constant 6.400000e+01 : f32
    %96 = vector.broadcast %cst_50 : f32 to vector<2x8x1xf32>
    %97 = arith.divf %95, %96 : vector<2x8x1xf32>
    %98 = vector.broadcast %90 : vector<2x8x1xf32> to vector<2x8x64xf32>
    %99 = arith.subf %80, %98 : vector<2x8x64xf32>
    %cst_51 = arith.constant 9.99999997E-7 : f32
    %100 = vector.broadcast %cst_51 : f32 to vector<2x8x1xf32>
    %101 = arith.addf %97, %100 : vector<2x8x1xf32>
    %102 = math.rsqrt %101 : vector<2x8x1xf32>
    %103 = vector.broadcast %102 : vector<2x8x1xf32> to vector<2x8x64xf32>
    %104 = arith.mulf %99, %103 : vector<2x8x64xf32>
    %105 = vector.shape_cast %82 : vector<1x64xf32> to vector<1x1x64xf32>
    %106 = vector.broadcast %105 : vector<1x1x64xf32> to vector<2x8x64xf32>
    %107 = arith.mulf %104, %106 : vector<2x8x64xf32>
    %108 = vector.shape_cast %83 : vector<1x64xf32> to vector<1x1x64xf32>
    %109 = vector.broadcast %108 : vector<1x1x64xf32> to vector<2x8x64xf32>
    %110 = arith.addf %107, %109 : vector<2x8x64xf32>
    %111 = vector.shape_cast %110 : vector<2x8x64xf32> to vector<16x64xf32>
    %cst_52 = arith.constant dense<0.000000e+00> : vector<16x32xf32>
    %112 = tpu.matmul %111, %84, %cst_52 {dimension_numbers = #tpu.dot_dimension_numbers<[1], [0], [0], [1], [0, 0, 1, 1], [], []>} : vector<16x64xf32>, vector<64x32xf32>, vector<16x32xf32> -> vector<16x32xf32>
    %cst_53 = arith.constant 0.000000e+00 : f32
    %113 = vector.broadcast %cst_53 : f32 to vector<16x32xf32>
    %114 = arith.maximumf %112, %113 : vector<16x32xf32>
    %115 = vector.shape_cast %81 : vector<2x8x64xf32> to vector<16x64xf32>
    %cst_54 = arith.constant dense<0.000000e+00> : vector<16x64xf32>
    %116 = tpu.matmul %115, %85, %cst_54 {dimension_numbers = #tpu.dot_dimension_numbers<[1], [0], [0], [1], [0, 0, 1, 1], [], []>} : vector<16x64xf32>, vector<64x64xf32>, vector<16x64xf32> -> vector<16x64xf32>
    %cst_55 = arith.constant 0.000000e+00 : f32
    %117 = vector.broadcast %cst_55 : f32 to vector<16x64xf32>
    %118 = arith.maximumf %116, %117 : vector<16x64xf32>
    %119 = vector.shape_cast %114 : vector<16x32xf32> to vector<2x8x32xf32>
    %120 = vector.extract_strided_slice %118 {offsets = [0, 0], sizes = [16, 32], strides = [1, 1]} : vector<16x64xf32> to vector<16x32xf32>
    %121 = vector.shape_cast %120 : vector<16x32xf32> to vector<2x8x32xf32>
    %122 = vector.extract_strided_slice %118 {offsets = [0, 32], sizes = [16, 32], strides = [1, 1]} : vector<16x64xf32> to vector<16x32xf32>
    %123 = vector.shape_cast %122 : vector<16x32xf32> to vector<2x8x32xf32>
    %124 = vector.extract_strided_slice %119 {offsets = [0, 0, 0], sizes = [2, 8, 16], strides = [1, 1, 1]} : vector<2x8x32xf32> to vector<2x8x16xf32>
    %125 = vector.extract_strided_slice %121 {offsets = [0, 0, 0], sizes = [2, 8, 16], strides = [1, 1, 1]} : vector<2x8x32xf32> to vector<2x8x16xf32>
    %126 = vector.extract_strided_slice %123 {offsets = [0, 0, 0], sizes = [2, 8, 16], strides = [1, 1, 1]} : vector<2x8x32xf32> to vector<2x8x16xf32>
    "tpu.trace_start"() <{level = 10 : i32, message = "bqd,bkd->bqk"}> : () -> ()
    %cst_56 = arith.constant dense<0.000000e+00> : vector<2x8x8xf32>
    %127 = tpu.matmul %124, %125, %cst_56 {dimension_numbers = #tpu.dot_dimension_numbers<[2], [2], [1], [1], [0, 0, 0, 1, 1, 1], [0], [0]>} : vector<2x8x16xf32>, vector<2x8x16xf32>, vector<2x8x8xf32> -> vector<2x8x8xf32>
    "tpu.trace_stop"() : () -> ()
    %cst_57 = arith.constant dense<0xFF800000> : vector<2x8xf32>
    %128 = vector.multi_reduction <maximumf>, %127, %cst_57 [2] : vector<2x8x8xf32> to vector<2x8xf32>
    %cst_58 = arith.constant 0xFF800000 : f32
    %129 = vector.broadcast %cst_58 : f32 to vector<2x8xf32>
    %130 = arith.maximumf %129, %128 : vector<2x8xf32>
    %131 = vector.shape_cast %130 : vector<2x8xf32> to vector<2x8x1xf32>
    %132 = vector.broadcast %131 : vector<2x8x1xf32> to vector<2x8x8xf32>
    %133 = arith.subf %127, %132 : vector<2x8x8xf32>
    %134 = math.exp %133 : vector<2x8x8xf32>
    %cst_59 = arith.constant dense<0.000000e+00> : vector<2x8xf32>
    %135 = vector.multi_reduction <add>, %134, %cst_59 [2] : vector<2x8x8xf32> to vector<2x8xf32>
    %136 = vector.shape_cast %135 : vector<2x8xf32> to vector<2x8x1xf32>
    %137 = vector.broadcast %136 : vector<2x8x1xf32> to vector<2x8x8xf32>
    %138 = arith.divf %134, %137 : vector<2x8x8xf32>
    "tpu.trace_start"() <{level = 10 : i32, message = "bqk,bkd->bqd"}> : () -> ()
    %cst_60 = arith.constant dense<0.000000e+00> : vector<2x8x16xf32>
    %139 = tpu.matmul %138, %126, %cst_60 {dimension_numbers = #tpu.dot_dimension_numbers<[2], [1], [1], [2], [0, 0, 0, 1, 1, 2], [0], [0]>} : vector<2x8x8xf32>, vector<2x8x16xf32>, vector<2x8x16xf32> -> vector<2x8x16xf32>
    "tpu.trace_stop"() : () -> ()
    %140 = vector.extract_strided_slice %119 {offsets = [0, 0, 16], sizes = [2, 8, 16], strides = [1, 1, 1]} : vector<2x8x32xf32> to vector<2x8x16xf32>
    %141 = vector.extract_strided_slice %121 {offsets = [0, 0, 16], sizes = [2, 8, 16], strides = [1, 1, 1]} : vector<2x8x32xf32> to vector<2x8x16xf32>
    %142 = vector.extract_strided_slice %123 {offsets = [0, 0, 16], sizes = [2, 8, 16], strides = [1, 1, 1]} : vector<2x8x32xf32> to vector<2x8x16xf32>
    "tpu.trace_start"() <{level = 10 : i32, message = "bqd,bkd->bqk"}> : () -> ()
    %cst_61 = arith.constant dense<0.000000e+00> : vector<2x8x8xf32>
    %143 = tpu.matmul %140, %141, %cst_61 {dimension_numbers = #tpu.dot_dimension_numbers<[2], [2], [1], [1], [0, 0, 0, 1, 1, 1], [0], [0]>} : vector<2x8x16xf32>, vector<2x8x16xf32>, vector<2x8x8xf32> -> vector<2x8x8xf32>
    "tpu.trace_stop"() : () -> ()
    %cst_62 = arith.constant dense<0xFF800000> : vector<2x8xf32>
    %144 = vector.multi_reduction <maximumf>, %143, %cst_62 [2] : vector<2x8x8xf32> to vector<2x8xf32>
    %cst_63 = arith.constant 0xFF800000 : f32
    %145 = vector.broadcast %cst_63 : f32 to vector<2x8xf32>
    %146 = arith.maximumf %145, %144 : vector<2x8xf32>
    %147 = vector.shape_cast %146 : vector<2x8xf32> to vector<2x8x1xf32>
    %148 = vector.broadcast %147 : vector<2x8x1xf32> to vector<2x8x8xf32>
    %149 = arith.subf %143, %148 : vector<2x8x8xf32>
    %150 = math.exp %149 : vector<2x8x8xf32>
    %cst_64 = arith.constant dense<0.000000e+00> : vector<2x8xf32>
    %151 = vector.multi_reduction <add>, %150, %cst_64 [2] : vector<2x8x8xf32> to vector<2x8xf32>
    %152 = vector.shape_cast %151 : vector<2x8xf32> to vector<2x8x1xf32>
    %153 = vector.broadcast %152 : vector<2x8x1xf32> to vector<2x8x8xf32>
    %154 = arith.divf %150, %153 : vector<2x8x8xf32>
    "tpu.trace_start"() <{level = 10 : i32, message = "bqk,bkd->bqd"}> : () -> ()
    %cst_65 = arith.constant dense<0.000000e+00> : vector<2x8x16xf32>
    %155 = tpu.matmul %154, %142, %cst_65 {dimension_numbers = #tpu.dot_dimension_numbers<[2], [1], [1], [2], [0, 0, 0, 1, 1, 2], [0], [0]>} : vector<2x8x8xf32>, vector<2x8x16xf32>, vector<2x8x16xf32> -> vector<2x8x16xf32>
    "tpu.trace_stop"() : () -> ()
    %156 = tpu.concatenate %139, %155 in 2 : vector<2x8x16xf32>, vector<2x8x16xf32> -> vector<2x8x32xf32>
    %157 = vector.shape_cast %156 : vector<2x8x32xf32> to vector<16x32xf32>
    %cst_66 = arith.constant dense<0.000000e+00> : vector<16x64xf32>
    %158 = tpu.matmul %157, %86, %cst_66 {dimension_numbers = #tpu.dot_dimension_numbers<[1], [0], [0], [1], [0, 0, 1, 1], [], []>} : vector<16x32xf32>, vector<32x64xf32>, vector<16x64xf32> -> vector<16x64xf32>
    %159 = vector.shape_cast %158 : vector<16x64xf32> to vector<2x8x64xf32>
    %160 = arith.addf %159, %80 : vector<2x8x64xf32>
    %c0_67 = arith.constant 0 : index
    %c0_68 = arith.constant 0 : index
    %c0_69 = arith.constant 0 : index
    %161 = vector.load %arg13[%c0_67, %c0_68, %c0_69] : memref<2x8x64xf32, #tpu.memory_space<vmem>>, vector<2x8x64xf32>
    tpu.vector_store %arg13[%c0_67, %c0_68, %c0_69], %160 {strides = array<i32>} : memref<2x8x64xf32, #tpu.memory_space<vmem>>, vector<2x8x64xf32>,
    %c0_70 = arith.constant 0 : index
    %c0_71 = arith.constant 0 : index
    %c0_72 = arith.constant 0 : index
    %c0_73 = arith.constant 0 : index
    %162 = vector.load %arg14[%c0_70, %c0_71, %c0_72, %c0_73] : memref<2x2x8x8xf32, #tpu.memory_space<vmem>>, vector<2x1x8x8xf32>
    %163 = vector.shape_cast %162 : vector<2x1x8x8xf32> to vector<2x8x8xf32>
    %164 = vector.shape_cast %127 : vector<2x8x8xf32> to vector<2x1x8x8xf32>
    tpu.vector_store %arg14[%c0_70, %c0_71, %c0_72, %c0_73], %164 {strides = array<i32>} : memref<2x2x8x8xf32, #tpu.memory_space<vmem>>, vector<2x1x8x8xf32>,
    %c0_74 = arith.constant 0 : index
    %c1 = arith.constant 1 : index
    %c0_75 = arith.constant 0 : index
    %c0_76 = arith.constant 0 : index
    %165 = vector.load %arg14[%c0_74, %c1, %c0_75, %c0_76] : memref<2x2x8x8xf32, #tpu.memory_space<vmem>>, vector<2x1x8x8xf32>
    %166 = vector.shape_cast %165 : vector<2x1x8x8xf32> to vector<2x8x8xf32>
    %167 = vector.shape_cast %143 : vector<2x8x8xf32> to vector<2x1x8x8xf32>
    tpu.vector_store %arg14[%c0_74, %c1, %c0_75, %c0_76], %167 {strides = array<i32>} : memref<2x2x8x8xf32, #tpu.memory_space<vmem>>, vector<2x1x8x8xf32>,
    return
  }
}

</mosaic_0001>

<bundles_post_ra>
// kernel: lstm_attention_forward.3
= control target key start
LH: loop header
LB: loop body
LE: loop exit
PB: predicated region body
PF: predicated region fallthrough
CT: control target
= control target key end

     0   :  { %vm43_vm0 = vcmask 523264   ;;  %v3338_v31 = vmov 0.0|0.0   ;;  %vm3339_vm1 = vmmov 0   ;;  %v3340_v39 = vmov 0.0   ;;  %s4127_s1 = inlined_call_operand.vmem [shape: f32[64,128], index: 1, kind: input, shape index: {}]   ;;  %s4128_s4 = inlined_call_operand.vmem [shape: f32[64,128], index: 4, kind: input, shape index: {}]   ;;  %s4129_s0 = inlined_call_operand.vmem [shape: f32[2,8,64], index: 0, kind: input, shape index: {}]   ;;  %s4130_s2 = inlined_call_operand.vmem [shape: f32[32,128], index: 2, kind: input, shape index: {}]   ;;  %s4131_s5 = inlined_call_operand.vmem [shape: f32[32,128], index: 5, kind: input, shape index: {}]   ;;  %s4132_s3 = inlined_call_operand.vmem [shape: f32[1,128], index: 3, kind: input, shape index: {}]   ;;  %s4133_s6 = inlined_call_operand.vmem [shape: f32[1,128], index: 6, kind: input, shape index: {}]   ;;  %s4134_s7 = inlined_call_operand.vmem [shape: f32[2,8,64], index: 7, kind: output, shape index: {}]  }
   0x1   :  { %v28_v0 = vld [vmem:[%s4127_s1] sm:$0xff]  ;;  %v29_v1 = vld [vmem:[%s4127_s1 + $0x8] sm:$0xff]  ;;  %v30_v5 = vld [vmem:[%s4127_s1 + $0x10] sm:$0xff]  ;;  %vm499_vm2 = vcmask 1041409   ;;  %vm223_vm3 = vcmask 261120   ;;  %vm484_vm4 = vcmask 253952  }
   0x2   :  { %v125_v2 = vld [vmem:[%s4128_s4] sm:$0xff]  ;;  %v2949_v3 = vpack.c.bf16 %v29_v1, %v28_v0  ;;  %v126_v4 = vld [vmem:[%s4128_s4 + $0x8] sm:$0xff]  ;;  %v31_v6 = vld [vmem:[%s4127_s1 + $0x18] sm:$0xff]  ;;  %vm495_vm5 = vcmask 523527   ;;  %vm781_vm6 = vcmask 254977   ;;  %vm792_vm7 = vcmask 522502  }
   0x3   :  { %v2965_v7 = vpack.c.bf16 %v126_v4, %v125_v2  ;;  %v2953_v8 = vpack.c.bf16 %v31_v6, %v30_v5  ;;  %v127_v9 = vld [vmem:[%s4128_s4 + $0x10] sm:$0xff]  ;;  %v128_v10 = vld [vmem:[%s4128_s4 + $0x18] sm:$0xff]  ;;  %v32_v11 = vld [vmem:[%s4127_s1 + $0x20] sm:$0xff]  ;;  %vm1078_vm8 = vcmask 256002   ;;  %vm1089_vm9 = vcmask 521477  }
   0x4   :  { %2950 = vmatprep.subr.bf16.mxu0 %v2949_v3  ;;  %v2969_v12 = vpack.c.bf16 %v128_v10, %v127_v9  ;;  %v33_v13 = vld [vmem:[%s4127_s1 + $0x28] sm:$0xff]  ;;  %v129_v14 = vld [vmem:[%s4128_s4 + $0x20] sm:$0xff]  ;;  %v34_v19 = vld [vmem:[%s4127_s1 + $0x30] sm:$0xff]  ;;  %vm1376_vm10 = vcmask 257027   ;;  %vm1387_vm11 = vcmask 520452   ;;  %vm1674_vm12 = vcmask 258052  }
   0x5   :  { %v130_v15 = vld [vmem:[%s4128_s4 + $0x28] sm:$0xff]  ;;  %2966 = vmatprep.subr.bf16.mxu1 %v2965_v7  ;;  %2952 = vmatpush3.bf16.msra.mxu0 %v2949_v3  ;;  %v2957_v16 = vpack.c.bf16 %v33_v13, %v32_v11  ;;  %v26_v17 = vld [vmem:[%s4129_s0] sm:$0xff]  ;;  %v35_v20 = vld [vmem:[%s4127_s1 + $0x38] sm:$0xff]  ;;  %vm1685_vm13 = vcmask 519427   ;;  %vm1972_vm14 = vcmask 259077   ;;  %vm1983_vm15 = vcmask 518402  }
   0x6   :  { %2968 = vmatpush3.bf16.msra.mxu1 %v2965_v7  ;;  %2954 = vmatprep.subr.bf16.mxu0 %v2953_v8  ;;  %v2973_v18 = vpack.c.bf16 %v130_v15, %v129_v14  ;;  %v131_v21 = vld [vmem:[%s4128_s4 + $0x30] sm:$0xff]  ;;  %v132_v22 = vld [vmem:[%s4128_s4 + $0x38] sm:$0xff]  ;;  %v2961_v23 = vpack.c.bf16 %v35_v20, %v34_v19  ;;  %v215_v25 = vld [vmem:[%s4130_s2] sm:$0xff] }
   0x7   :  { %2970 = vmatprep.subr.bf16.mxu1 %v2969_v12  ;;  %2751 = vmatprep.mubr.msk.f32.mxu0 %vm43_vm0, %v26_v17  ;;  %v2977_v24 = vpack.c.bf16 %v132_v22, %v131_v21  ;;  %v216_v26 = vld [vmem:[%s4130_s2 + $0x8] sm:$0xff]  ;;  %v219_v27 = vld [vmem:[%s4131_s5] sm:$0xff]  ;;  %v217_v33 = vld [vmem:[%s4130_s2 + $0x10] sm:$0xff] }
   0x8   :  { %2770 = vmatprep.mubr.msk.f32.mxu1 %vm43_vm0, %v26_v17  ;;  %v220_v28 = vld [vmem:[%s4131_s5 + $0x8] sm:$0xff]  ;;  %v3451_v30 = vpack.c.bf16 %v216_v26, %v215_v25  ;;  %v218_v34 = vld [vmem:[%s4130_s2 + $0x18] sm:$0xff]  ;;  %v221_v35 = vld [vmem:[%s4131_s5 + $0x10] sm:$0xff] }
   0x9   :  { %2956 = vmatpush3.bf16.msra.mxu0 %v2953_v8  ;;  %v27_v29 = vld [vmem:[%s4129_s0 + $0x8] sm:$0xff]  ;;  %v3454_v32 = vpack.c.bf16 %v220_v28, %v219_v27  ;;  %v222_v36 = vld [vmem:[%s4131_s5 + $0x18] sm:$0xff]  ;;  %v3472_v37 = vpack.c.bf16 %v218_v34, %v217_v33  ;;  %v2583_v44 = vld [vmem:[%s4132_s3] ss:$0 sm:$0xff]  ;;  %s3341_s3 = smov 64  }
   0xa   :  { %2972 = vmatpush3.bf16.msra.mxu1 %v2969_v12  ;;  %2958 = vmatprep.subr.bf16.mxu0 %v2957_v16  ;;  %v3476_v38 = vpack.c.bf16 %v222_v36, %v221_v35  ;;  %v2586_v47 = vld [vmem:[%s4133_s6] ss:$0 sm:$0xff]  ;;  %s3342_s6 = smov 32  }
   0xb   :  { %2974 = vmatprep.subr.bf16.mxu1 %v2973_v18 }
   0xd   :  { %2960 = vmatpush3.bf16.msra.mxu0 %v2957_v16 }
   0xe   :  { %2976 = vmatpush3.bf16.msra.mxu1 %v2973_v18  ;;  %2962 = vmatprep.subr.bf16.mxu0 %v2961_v23 }
   0xf   :  { %2978 = vmatprep.subr.bf16.mxu1 %v2977_v24 }
  0x11   :  { %2964 = vmatpush3.bf16.msra.mxu0 %v2961_v23 }
  0x12   :  { %2980 = vmatpush3.bf16.msra.mxu1 %v2977_v24  ;;  %2981 = vmatprep.subr.bf16.mxu0 %v3338_v31 }
  0x13   :  { %2987 = vmatprep.subr.bf16.mxu1 %v3338_v31 }
  0x14   :  { %2752 = vmatmul.mubr.msk.f32.vlgmr.msra.gmra.mrb[0].mxu0 %vm43_vm0, %v27_v29 }
  0x15   :  { %2771 = vmatmul.mubr.msk.f32.vlgmr.msra.gmra.mrb[0].mxu1 %vm43_vm0, %v27_v29  ;;  %2983 = vmatpush3.bf16.msra.mxu0 %v3451_v30  ;;  %vm2269_vm0 = vcmask 260102  }
  0x16   :  { %2989 = vmatpush3.bf16.msra.mxu1 %v3454_v32  ;;  %2984 = vmatprep.subr.bf16.mxu0 %v3338_v31 }
  0x17   :  { %2990 = vmatprep.subr.bf16.mxu1 %v3338_v31  ;;  %2781 = vmatprep.mubr.msk.f32.mxu0 %vm3339_vm1, %v3340_v39 }
  0x18   :  { %2792 = vmatprep.mubr.msk.f32.mxu1 %vm3339_vm1, %v3340_v39 }
  0x19   :  { %2986 = vmatpush3.bf16.msra.mxu0 %v3472_v37 }
  0x1a   :  { %2992 = vmatpush3.bf16.msra.mxu1 %v3476_v38  ;;  %2993 = vmatprep.subr.bf16.mxu0 %v3338_v31 }
  0x1b   :  { %2999 = vmatprep.subr.bf16.mxu1 %v3338_v31 }
  0x1c   :  { %2782 = vmatmul.mubr.f32.vlgmr.msra.gmra.mrb[2].mxu0 %v3340_v39 }
  0x1d   :  { %2793 = vmatmul.mubr.f32.vlgmr.msra.gmra.mrb[2].mxu1 %v3340_v39  ;;  %2995 = vmatpush3.bf16.msra.mxu0 %v3451_v30 }
  0x1e   :  { %3001 = vmatpush3.bf16.msra.mxu1 %v3454_v32  ;;  %2996 = vmatprep.subr.bf16.mxu0 %v3338_v31 }
  0x1f   :  { %3002 = vmatprep.subr.bf16.mxu1 %v3338_v31  ;;  %2814 = vmatprep.mubr.msk.f32.mxu1 %vm3339_vm1, %v3340_v39 }
  0x20   :  { %2803 = vmatprep.mubr.msk.f32.mxu0 %vm3339_vm1, %v3340_v39 }
  0x21   :  { %2998 = vmatpush3.bf16.msra.mxu0 %v3472_v37 }
  0x22   :  { %3004 = vmatpush3.bf16.msra.mxu1 %v3476_v38  ;;  %3005 = vmatprep.subr.bf16.mxu0 %v3338_v31 }
  0x23   :  { %3011 = vmatprep.subr.bf16.mxu1 %v3338_v31 }
  0xe7   :  { %v2753_v40 = vpop.f32.mrb[0].mxu0 }
  0xe8   :  { %v116_v41 = vpop.f32.mrb[1].mxu0  ;;  %v2772_v42 = vpop.f32.mrb[0].mxu1  ;;  %v3504_v46 = vadd.f32 %v2753_v40, %v2583_v44 }
  0xe9   :  { %v206_v43 = vpop.f32.mrb[1].mxu1  ;;  %v3512_v56 = vadd.f32 %v2772_v42, %v2586_v47  ;;  %v3516_v59 = vadd.f32 %v2583_v44, %v116_v41 }
  0xea   :  { %v3510_v55 = vadd.f32 %v2586_v47, %v206_v43 }
  0xef   :  { %v293_v45 = vpop.f32.mrb[2].mxu0 }
  0xf0   :  { %v298_v48 = vrot.slane %v293_v45, 1  ;;  %v369_v49 = vpop.f32.mrb[2].mxu1  ;;  %v2783_v50 = vpop.f32.mrb[3].mxu0  ;;  %v301_v60 = vadd.f32 %v293_v45, %v3516_v59 }
  0xf1   :  { %v374_v51 = vrot.slane %v369_v49, 1  ;;  %v2794_v52 = vpop.f32.mrb[3].mxu1  ;;  %v375_v54 = vrot.slane %v369_v49, 2 }
  0xf2   :  { %v302_v53 = vadd.f32 %v298_v48, %v3504_v46  ;;  %v2589_v4 = vmul.f32 -1.442695, %v301_v60 }
  0xf3   :  { %v378_v57 = vadd.f32 %v374_v51, %v3510_v55  ;;  %v379_v58 = vadd.f32 %v375_v54, %v3512_v56 }
  0xf4   :  { %3082 = vtanh.f32 %v302_v53  ;;  %v2590_v1 = vmul.f32 -1.442695, %v302_v53 }
  0xf5   :  { %3084 = vtanh.f32 %v378_v57  ;;  %v2591_v2 = vmul.f32 -1.442695, %v378_v57  ;;  %v2592_v3 = vmul.f32 -1.442695, %v379_v58 }
  0xf6   :  { %3086 = vtanh.f32 %v379_v58 }
  0xf7   :  { %3088 = vtanh.f32 %v301_v60 }
  0xf8   :  { %3090 = vpow2.f32 %v2590_v1 }
  0xf9   :  { %3092 = vpow2.f32 %v2591_v2 }
  0xfa   :  { %3094 = vpow2.f32 %v2592_v3 }
  0xfb   :  { %3096 = vpow2.f32 %v2589_v4 }
  0xfe   :  { %v3083_v61 = vpop.eup %3082 }
  0xff   :  { %400 = vrot.lane.b32.xlu0 %v3083_v61, %s3341_s3  ;;  %v3085_v62 = vpop.eup %3084 }
 0x100   :  { %v3087_v63 = vpop.eup %3086 }
 0x101   :  { %448 = vrot.lane.b32.xlu1 %v3087_v63, %s3341_s3  ;;  %v3089_v0 = vpop.eup %3088 }
 0x102   :  { %v3091_v5 = vpop.eup %3090 }
 0x103   :  { %446 = vrot.lane.b32.xlu0 %v3085_v62, %s3341_s3  ;;  %v387_v6 = vadd.f32 1.0, %v3091_v5  ;;  %v3093_v7 = vpop.eup %3092 }
 0x104   :  { %v3095_v8 = vpop.eup %3094  ;;  %v434_v9 = vadd.f32 1.0, %v3093_v7 }
 0x105   :  { %398 = vrot.lane.b32.xlu1 %v3089_v0, %s3341_s3  ;;  %3098 = vrcp.f32 %v387_v6  ;;  %v435_v10 = vadd.f32 1.0, %v3095_v8  ;;  %v3097_v11 = vpop.eup %3096 }
 0x106   :  { %3100 = vrcp.f32 %v434_v9  ;;  %v386_v12 = vadd.f32 1.0, %v3097_v11 }
 0x107   :  { %3102 = vrcp.f32 %v435_v10 }
 0x108   :  { %3104 = vrcp.f32 %v386_v12 }
 0x10f   :  { %v3099_v13 = vpop.eup %3098 }
 0x110   :  { %v3101_v16 = vpop.eup %3100  ;;  %v395_v25 = vmul.f32 0.0, %v3099_v13 }
 0x111   :  { %v3103_v18 = vpop.eup %3102  ;;  %v442_v28 = vmul.f32 0.0, %v3101_v16 }
 0x112   :  { %v3105_v22 = vpop.eup %3104  ;;  %v443_v29 = vmul.f32 0.0, %v3103_v18 }
 0x113   :  { %v394_v40 = vmul.f32 0.0, %v3105_v22 }
 0x171   :  { %v401_v14 = vpop.permute.xlu0 %400 }
 0x172   :  { %v405_v15 = vmul.f32 %v3099_v13, %v401_v14 }
 0x173   :  { %v449_v19 = vpop.permute.xlu1 %448 }
 0x174   :  { %410 = vrot.lane.b32.xlu0 %v405_v15, %s3342_s6  ;;  %v453_v21 = vmul.f32 %v3103_v18, %v449_v19 }
 0x175   :  { %v447_v17 = vpop.permute.xlu0 %446 }
 0x176   :  { %v452_v20 = vmul.f32 %v3101_v16, %v447_v17 }
 0x177   :  { %v399_v23 = vpop.permute.xlu1 %398 }
 0x178   :  { %456 = vrot.lane.b32.xlu1 %v452_v20, %s3342_s6  ;;  %458 = vrot.lane.b32.xlu0 %v453_v21, %s3342_s6  ;;  %v404_v24 = vmul.f32 %v3105_v22, %v399_v23 }
 0x17c   :  { %408 = vrot.lane.b32.xlu1 %v404_v24, %s3342_s6 }
 0x1e6   :  { %v411_v26 = vpop.permute.xlu0 %410 }
 0x1e7   :  { %v3527_v27 = vadd.f32 %v411_v26, %v395_v25 }
 0x1e9   :  { %3106 = vtanh.f32 %v3527_v27 }
 0x1ea   :  { %v457_v33 = vpop.permute.xlu1 %456  ;;  %v459_v34 = vpop.permute.xlu0 %458 }
 0x1eb   :  { %v3530_v35 = vadd.f32 %v457_v33, %v442_v28  ;;  %v3532_v36 = vadd.f32 %v459_v34, %v443_v29 }
 0x1ed   :  { %3108 = vtanh.f32 %v3530_v35 }
 0x1ee   :  { %3110 = vtanh.f32 %v3532_v36  ;;  %v409_v41 = vpop.permute.xlu1 %408 }
 0x1ef   :  { %v3536_v42 = vadd.f32 %v409_v41, %v394_v40 }
 0x1f1   :  { %3112 = vtanh.f32 %v3536_v42 }
 0x1f3   :  { %v3107_v43 = vpop.eup %3106 }
 0x1f4   :  { %422 = vrot.lane.b32.xlu0 %v3107_v43, %s3341_s3 }
 0x1f7   :  { %v3109_v44 = vpop.eup %3108 }
 0x1f8   :  { %v3111_v45 = vpop.eup %3110  ;;  %468 = vrot.lane.b32.xlu1 %v3109_v44, %s3341_s3 }
 0x1f9   :  { %470 = vrot.lane.b32.xlu0 %v3111_v45, %s3341_s3 }
 0x1fb   :  { %v3113_v47 = vpop.eup %3112 }
 0x1fc   :  { %420 = vrot.lane.b32.xlu1 %v3113_v47, %s3341_s3 }
 0x266   :  { %v423_v48 = vpop.permute.xlu0 %422 }
 0x267   :  { %v3545_v52 = vmul.f32 %v3099_v13, %v423_v48 }
 0x269   :  { %v498_v60 = vrot.slane %v3545_v52, 7 }
 0x26a   :  { %v469_v49 = vpop.permute.xlu1 %468 }
 0x26b   :  { %v471_v50 = vpop.permute.xlu0 %470  ;;  %v3543_v51 = vmul.f32 %v3101_v16, %v469_v49 }
 0x26c   :  { %v3547_v53 = vmul.f32 %v3103_v18, %v471_v50 }
 0x26d   :  { %v581_v54 = vrot.slane %v3543_v51, 7 }
 0x26e   :  { %v582_v57 = vrot.slane %v3547_v53, 6  ;;  %v421_v58 = vpop.permute.xlu1 %420 }
 0x26f   :  { %v3552_v61 = vmul.f32 %v3105_v22, %v421_v58 }
 0x270   :  { %v583_v62 = vsel %vm499_vm2, %v582_v57, %v581_v54  ;;  %v735_v57 = vrot.slane %v3530_v35, 1 }
 0x271   :  { %584 = vrot.lane.b32.xlu1 %v583_v62, %s3342_s6  ;;  %v500_v63 = vsel %vm499_vm2, %v498_v60, %v3552_v61 }
 0x272   :  { %501 = vrot.lane.b32.xlu0 %v500_v63, %s3342_s6  ;;  %v681_v63 = vrot.slane %v3536_v42, 7 }
 0x2e3   :  { %v585_v0 = vpop.permute.xlu1 %584 }
 0x2e4   :  { %2815 = vmatmul.mubr.msk.f32.vlgmr.msra.gmra.mrb[4].mxu1 %vm223_vm3, %v585_v0  ;;  %v502_v1 = vpop.permute.xlu0 %501  ;;  %v682_v0 = vrot.slane %v3527_v27, 7 }
 0x2e5   :  { %3013 = vmatpush3.bf16.msra.mxu1 %v3454_v32  ;;  %2836 = vmatprep.mubr.msk.f32.mxu1 %vm3339_vm1, %v3340_v39 }
 0x2e6   :  { %2804 = vmatmul.mubr.msk.f32.vlgmr.msra.gmra.mrb[4].mxu0 %vm223_vm3, %v502_v1  ;;  %3014 = vmatprep.subr.bf16.mxu1 %v3338_v31 }
 0x2e7   :  { %3007 = vmatpush3.bf16.msra.mxu0 %v3451_v30  ;;  %2825 = vmatprep.mubr.msk.f32.mxu0 %vm3339_vm1, %v3340_v39 }
 0x2e8   :  { %3008 = vmatprep.subr.bf16.mxu0 %v3338_v31 }
 0x2e9   :  { %3016 = vmatpush3.bf16.msra.mxu1 %v3476_v38 }
 0x2ea   :  { %3023 = vmatprep.subr.bf16.mxu1 %v3338_v31 }
 0x2eb   :  { %3010 = vmatpush3.bf16.msra.mxu0 %v3472_v37 }
 0x2ec   :  { %3017 = vmatprep.subr.bf16.mxu0 %v3338_v31 }
 0x3b7   :  { %v654_v2 = vpop.f32.mrb[4].mxu1 }
 0x3b8   :  { %v659_v3 = vrot.slane %v654_v2, 2  ;;  %v2816_v4 = vpop.f32.mrb[5].mxu1  ;;  %v660_v9 = vrot.slane %v654_v2, 3 }
 0x3b9   :  { %v571_v5 = vpop.f32.mrb[4].mxu0  ;;  %v736_v4 = vrot.slane %v3532_v36, 1 }
 0x3ba   :  { %v663_v6 = vadd.f32 %v659_v3, %v3510_v55  ;;  %v576_v7 = vrot.slane %v571_v5, 7  ;;  %v2805_v8 = vpop.f32.mrb[5].mxu0  ;;  %v580_v11 = vadd.f32 %v571_v5, %v3504_v46  ;;  %v664_v12 = vadd.f32 %v660_v9, %v3512_v56 }
 0x3bc   :  { %3114 = vtanh.f32 %v663_v6  ;;  %v579_v10 = vadd.f32 %v576_v7, %v3516_v59  ;;  %v2597_v17 = vmul.f32 -1.442695, %v663_v6  ;;  %v2596_v19 = vmul.f32 -1.442695, %v580_v11 }
 0x3bd   :  { %v2598_v20 = vmul.f32 -1.442695, %v664_v12 }
 0x3be   :  { %3116 = vtanh.f32 %v579_v10  ;;  %v2595_v18 = vmul.f32 -1.442695, %v579_v10 }
 0x3bf   :  { %3118 = vtanh.f32 %v580_v11 }
 0x3c0   :  { %3120 = vtanh.f32 %v664_v12 }
 0x3c1   :  { %3122 = vpow2.f32 %v2597_v17 }
 0x3c2   :  { %3124 = vpow2.f32 %v2595_v18 }
 0x3c3   :  { %3126 = vpow2.f32 %v2596_v19 }
 0x3c4   :  { %3128 = vpow2.f32 %v2598_v20 }
 0x3c6   :  { %v3115_v13 = vpop.eup %3114 }
 0x3c7   :  { %743 = vrot.lane.b32.xlu1 %v3115_v13, %s3341_s3 }
 0x3c8   :  { %v3117_v14 = vpop.eup %3116 }
 0x3c9   :  { %v3119_v15 = vpop.eup %3118  ;;  %689 = vrot.lane.b32.xlu0 %v3117_v14, %s3341_s3 }
 0x3ca   :  { %v3121_v16 = vpop.eup %3120 }
 0x3cb   :  { %691 = vrot.lane.b32.xlu1 %v3119_v15, %s3341_s3  ;;  %v3123_v21 = vpop.eup %3122 }
 0x3cc   :  { %v725_v22 = vadd.f32 1.0, %v3123_v21  ;;  %v3125_v23 = vpop.eup %3124 }
 0x3cd   :  { %745 = vrot.lane.b32.xlu0 %v3121_v16, %s3341_s3  ;;  %v3127_v24 = vpop.eup %3126  ;;  %v671_v25 = vadd.f32 1.0, %v3125_v23 }
 0x3ce   :  { %3130 = vrcp.f32 %v725_v22  ;;  %v3129_v26 = vpop.eup %3128  ;;  %v672_v28 = vadd.f32 1.0, %v3127_v24 }
 0x3cf   :  { %v726_v29 = vadd.f32 1.0, %v3129_v26  ;;  %3132 = vrcp.f32 %v671_v25 }
 0x3d0   :  { %3134 = vrcp.f32 %v672_v28 }
 0x3d1   :  { %3136 = vrcp.f32 %v726_v29 }
 0x3d8   :  { %v3131_v33 = vpop.eup %3130 }
 0x3d9   :  { %v3133_v41 = vpop.eup %3132  ;;  %v739_v58 = vmul.f32 %v3131_v33, %v735_v57 }
 0x3da   :  { %v3135_v44 = vpop.eup %3134  ;;  %v685_v1 = vmul.f32 %v3133_v41, %v681_v63 }
 0x3db   :  { %v3137_v49 = vpop.eup %3136  ;;  %v686_v3 = vmul.f32 %v3135_v44, %v682_v0 }
 0x3dc   :  { %v740_v35 = vmul.f32 %v3137_v49, %v736_v4 }
 0x439   :  { %v744_v34 = vpop.permute.xlu1 %743 }
 0x43a   :  { %v749_v40 = vmul.f32 %v3131_v33, %v744_v34 }
 0x43b   :  { %v690_v43 = vpop.permute.xlu0 %689 }
 0x43c   :  { %753 = vrot.lane.b32.xlu1 %v749_v40, %s3342_s6  ;;  %v695_v45 = vmul.f32 %v3133_v41, %v690_v43 }
 0x43d   :  { %v692_v47 = vpop.permute.xlu1 %691 }
 0x43e   :  { %v696_v48 = vmul.f32 %v3135_v44, %v692_v47  ;;  %699 = vrot.lane.b32.xlu0 %v695_v45, %s3342_s6 }
 0x43f   :  { %v746_v50 = vpop.permute.xlu0 %745 }
 0x440   :  { %701 = vrot.lane.b32.xlu1 %v696_v48, %s3342_s6  ;;  %v750_v54 = vmul.f32 %v3137_v49, %v746_v50 }
 0x442   :  { %755 = vrot.lane.b32.xlu0 %v750_v54, %s3342_s6 }
 0x4ae   :  { %v754_v60 = vpop.permute.xlu1 %753 }
 0x4af   :  { %v3586_v62 = vadd.f32 %v754_v60, %v739_v58 }
 0x4b0   :  { %v700_v2 = vpop.permute.xlu0 %699 }
 0x4b1   :  { %3138 = vtanh.f32 %v3586_v62  ;;  %v3592_v5 = vadd.f32 %v700_v2, %v685_v1 }
 0x4b2   :  { %v702_v6 = vpop.permute.xlu1 %701 }
 0x4b3   :  { %v3594_v7 = vadd.f32 %v702_v6, %v686_v3  ;;  %3140 = vtanh.f32 %v3592_v5 }
 0x4b4   :  { %v756_v42 = vpop.permute.xlu0 %755 }
 0x4b5   :  { %3142 = vtanh.f32 %v3594_v7  ;;  %v3598_v8 = vadd.f32 %v756_v42, %v740_v35 }
 0x4b7   :  { %3144 = vtanh.f32 %v3598_v8 }
 0x4bb   :  { %v3139_v9 = vpop.eup %3138 }
 0x4bc   :  { %765 = vrot.lane.b32.xlu1 %v3139_v9, %s3341_s3 }
 0x4bd   :  { %v3141_v27 = vpop.eup %3140 }
 0x4be   :  { %711 = vrot.lane.b32.xlu0 %v3141_v27, %s3341_s3 }
 0x4bf   :  { %v3143_v36 = vpop.eup %3142 }
 0x4c0   :  { %713 = vrot.lane.b32.xlu1 %v3143_v36, %s3341_s3 }
 0x4c1   :  { %v3145_v10 = vpop.eup %3144 }
 0x4c2   :  { %767 = vrot.lane.b32.xlu0 %v3145_v10, %s3341_s3 }
 0x52e   :  { %v766_v11 = vpop.permute.xlu1 %765 }
 0x52f   :  { %v3609_v16 = vmul.f32 %v3131_v33, %v766_v11 }
 0x530   :  { %v712_v12 = vpop.permute.xlu0 %711 }
 0x531   :  { %v3605_v13 = vmul.f32 %v3133_v41, %v712_v12  ;;  %v878_v21 = vrot.slane %v3609_v16, 6 }
 0x532   :  { %v714_v14 = vpop.permute.xlu1 %713 }
 0x533   :  { %v3607_v15 = vmul.f32 %v3135_v44, %v714_v14  ;;  %v795_v17 = vrot.slane %v3605_v13, 1 }
 0x534   :  { %v768_v18 = vpop.permute.xlu0 %767 }
 0x535   :  { %v3612_v19 = vmul.f32 %v3137_v49, %v768_v18  ;;  %v796_v20 = vsel %vm499_vm2, %v3607_v15, %v795_v17 }
 0x536   :  { %797 = vrot.lane.b32.xlu0 %v796_v20, %s3342_s6 }
 0x537   :  { %v879_v22 = vrot.slane %v3612_v19, 5 }
 0x539   :  { %v880_v23 = vsel %vm499_vm2, %v879_v22, %v878_v21 }
 0x53a   :  { %881 = vrot.lane.b32.xlu1 %v880_v23, %s3342_s6 }
 0x5a8   :  { %v798_v24 = vpop.permute.xlu0 %797 }
 0x5a9   :  { %2826 = vmatmul.mubr.msk.f32.vlgmr.msra.gmra.mrb[6].mxu0 %vm223_vm3, %v798_v24  ;;  %v978_v24 = vrot.slane %v3592_v5, 7 }
 0x5aa   :  { %3019 = vmatpush3.bf16.msra.mxu0 %v3451_v30  ;;  %2847 = vmatprep.mubr.msk.f32.mxu0 %vm3339_vm1, %v3340_v39 }
 0x5ab   :  { %3020 = vmatprep.subr.bf16.mxu0 %v3338_v31 }
 0x5ac   :  { %v882_v25 = vpop.permute.xlu1 %881 }
 0x5ad   :  { %2837 = vmatmul.mubr.msk.f32.vlgmr.msra.gmra.mrb[6].mxu1 %vm223_vm3, %v882_v25  ;;  %v979_v25 = vrot.slane %v3594_v7, 7 }
 0x5ae   :  { %3022 = vmatpush3.bf16.msra.mxu0 %v3472_v37  ;;  %3025 = vmatpush3.bf16.msra.mxu1 %v3454_v32 }
 0x5af   :  { %3026 = vmatprep.subr.bf16.mxu1 %v3338_v31  ;;  %2858 = vmatprep.mubr.msk.f32.mxu1 %vm3339_vm1, %v3340_v39 }
 0x5b0   :  { %3029 = vmatprep.subr.bf16.mxu0 %v3338_v31 }
 0x5b2   :  { %3028 = vmatpush3.bf16.msra.mxu1 %v3476_v38 }
 0x5b3   :  { %3035 = vmatprep.subr.bf16.mxu1 %v3338_v31 }
 0x67c   :  { %v867_v26 = vpop.f32.mrb[6].mxu0 }
 0x67d   :  { %v872_v28 = vrot.slane %v867_v26, 6  ;;  %v873_v29 = vrot.slane %v867_v26, 7  ;;  %v2827_v33 = vpop.f32.mrb[7].mxu0 }
 0x67e   :  { %v1032_v33 = vrot.slane %v3586_v62, 1 }
 0x67f   :  { %v876_v34 = vadd.f32 %v872_v28, %v3516_v59  ;;  %v877_v40 = vadd.f32 %v873_v29, %v3504_v46 }
 0x680   :  { %v951_v41 = vpop.f32.mrb[6].mxu1 }
 0x681   :  { %3146 = vtanh.f32 %v876_v34  ;;  %v956_v43 = vrot.slane %v951_v41, 3  ;;  %v2838_v44 = vpop.f32.mrb[7].mxu1  ;;  %v957_v45 = vrot.slane %v951_v41, 4  ;;  %v2601_v58 = vmul.f32 -1.442695, %v876_v34 }
 0x682   :  { %3148 = vtanh.f32 %v877_v40  ;;  %v2602_v60 = vmul.f32 -1.442695, %v877_v40  ;;  %v1033_v41 = vrot.slane %v3598_v8, 1 }
 0x683   :  { %v960_v47 = vadd.f32 %v956_v43, %v3510_v55  ;;  %v961_v48 = vadd.f32 %v957_v45, %v3512_v56 }
 0x685   :  { %3150 = vtanh.f32 %v960_v47  ;;  %v2603_v63 = vmul.f32 -1.442695, %v960_v47  ;;  %v2604_v0 = vmul.f32 -1.442695, %v961_v48 }
 0x686   :  { %3152 = vtanh.f32 %v961_v48 }
 0x687   :  { %3154 = vpow2.f32 %v2601_v58 }
 0x688   :  { %3156 = vpow2.f32 %v2602_v60 }
 0x689   :  { %3158 = vpow2.f32 %v2603_v63 }
 0x68a   :  { %3160 = vpow2.f32 %v2604_v0 }
 0x68b   :  { %v3147_v49 = vpop.eup %3146 }
 0x68c   :  { %v3149_v50 = vpop.eup %3148  ;;  %986 = vrot.lane.b32.xlu0 %v3147_v49, %s3341_s3 }
 0x68d   :  { %988 = vrot.lane.b32.xlu1 %v3149_v50, %s3341_s3 }
 0x68f   :  { %v3151_v54 = vpop.eup %3150 }
 0x690   :  { %v3153_v57 = vpop.eup %3152  ;;  %1040 = vrot.lane.b32.xlu0 %v3151_v54, %s3341_s3 }
 0x691   :  { %1042 = vrot.lane.b32.xlu1 %v3153_v57, %s3341_s3  ;;  %v3155_v1 = vpop.eup %3154 }
 0x692   :  { %v3157_v2 = vpop.eup %3156  ;;  %v968_v3 = vadd.f32 1.0, %v3155_v1 }
 0x693   :  { %v3159_v4 = vpop.eup %3158  ;;  %v969_v6 = vadd.f32 1.0, %v3157_v2 }
 0x694   :  { %v3161_v35 = vpop.eup %3160  ;;  %3162 = vrcp.f32 %v968_v3  ;;  %v1022_v42 = vadd.f32 1.0, %v3159_v4 }
 0x695   :  { %3164 = vrcp.f32 %v969_v6  ;;  %v1023_v9 = vadd.f32 1.0, %v3161_v35 }
 0x696   :  { %3166 = vrcp.f32 %v1022_v42 }
 0x697   :  { %3168 = vrcp.f32 %v1023_v9 }
 0x69e   :  { %v3163_v27 = vpop.eup %3162 }
 0x69f   :  { %v3165_v10 = vpop.eup %3164  ;;  %v982_v26 = vmul.f32 %v3163_v27, %v978_v24 }
 0x6a0   :  { %v3167_v17 = vpop.eup %3166  ;;  %v983_v28 = vmul.f32 %v3165_v10, %v979_v25 }
 0x6a1   :  { %v3169_v20 = vpop.eup %3168  ;;  %v1036_v44 = vmul.f32 %v3167_v17, %v1032_v33 }
 0x6a2   :  { %v1037_v5 = vmul.f32 %v3169_v20, %v1033_v41 }
 0x6fe   :  { %v987_v36 = vpop.permute.xlu0 %986 }
 0x6ff   :  { %v992_v11 = vmul.f32 %v3163_v27, %v987_v36  ;;  %v989_v12 = vpop.permute.xlu1 %988 }
 0x700   :  { %v993_v14 = vmul.f32 %v3165_v10, %v989_v12 }
 0x701   :  { %996 = vrot.lane.b32.xlu0 %v992_v11, %s3342_s6 }
 0x702   :  { %998 = vrot.lane.b32.xlu1 %v993_v14, %s3342_s6  ;;  %v1041_v18 = vpop.permute.xlu0 %1040 }
 0x703   :  { %v1043_v21 = vpop.permute.xlu1 %1042  ;;  %v1046_v22 = vmul.f32 %v3167_v17, %v1041_v18 }
 0x704   :  { %v1047_v23 = vmul.f32 %v3169_v20, %v1043_v21 }
 0x705   :  { %1050 = vrot.lane.b32.xlu0 %v1046_v22, %s3342_s6 }
 0x706   :  { %1052 = vrot.lane.b32.xlu1 %v1047_v23, %s3342_s6 }
 0x773   :  { %v997_v29 = vpop.permute.xlu0 %996 }
 0x774   :  { %v999_v34 = vpop.permute.xlu1 %998  ;;  %v3650_v40 = vadd.f32 %v997_v29, %v982_v26 }
 0x775   :  { %v3653_v43 = vadd.f32 %v999_v34, %v983_v28 }
 0x776   :  { %3170 = vtanh.f32 %v3650_v40 }
 0x777   :  { %3172 = vtanh.f32 %v3653_v43  ;;  %v1051_v45 = vpop.permute.xlu0 %1050 }
 0x778   :  { %v1053_v7 = vpop.permute.xlu1 %1052  ;;  %v3657_v47 = vadd.f32 %v1051_v45, %v1036_v44 }
 0x779   :  { %v3659_v48 = vadd.f32 %v1053_v7, %v1037_v5 }
 0x77a   :  { %3174 = vtanh.f32 %v3657_v47 }
 0x77b   :  { %3176 = vtanh.f32 %v3659_v48 }
 0x780   :  { %v3171_v62 = vpop.eup %3170 }
 0x781   :  { %v3173_v8 = vpop.eup %3172  ;;  %1008 = vrot.lane.b32.xlu0 %v3171_v62, %s3341_s3 }
 0x782   :  { %1010 = vrot.lane.b32.xlu1 %v3173_v8, %s3341_s3 }
 0x784   :  { %v3175_v49 = vpop.eup %3174 }
 0x785   :  { %v3177_v50 = vpop.eup %3176  ;;  %1062 = vrot.lane.b32.xlu0 %v3175_v49, %s3341_s3 }
 0x786   :  { %1064 = vrot.lane.b32.xlu1 %v3177_v50, %s3341_s3 }
 0x7f3   :  { %v1009_v54 = vpop.permute.xlu0 %1008 }
 0x7f4   :  { %v1011_v57 = vpop.permute.xlu1 %1010  ;;  %v3667_v58 = vmul.f32 %v3163_v27, %v1009_v54 }
 0x7f5   :  { %v3669_v60 = vmul.f32 %v3165_v10, %v1011_v57 }
 0x7f6   :  { %v1092_v63 = vrot.slane %v3667_v58, 2 }
 0x7f7   :  { %v1093_v0 = vrot.slane %v3669_v60, 1  ;;  %v1063_v1 = vpop.permute.xlu0 %1062 }
 0x7f8   :  { %v1065_v2 = vpop.permute.xlu1 %1064  ;;  %v3673_v3 = vmul.f32 %v3167_v17, %v1063_v1 }
 0x7f9   :  { %v3675_v4 = vmul.f32 %v3169_v20, %v1065_v2  ;;  %v1094_v6 = vsel %vm499_vm2, %v1093_v0, %v1092_v63 }
 0x7fa   :  { %v1176_v35 = vrot.slane %v3673_v3, 5  ;;  %1095 = vrot.lane.b32.xlu0 %v1094_v6, %s3342_s6 }
 0x7fb   :  { %v1177_v42 = vrot.slane %v3675_v4, 4 }
 0x7fd   :  { %v1178_v9 = vsel %vm499_vm2, %v1177_v42, %v1176_v35 }
 0x7fe   :  { %1179 = vrot.lane.b32.xlu1 %v1178_v9, %s3342_s6 }
 0x86c   :  { %v1096_v27 = vpop.permute.xlu0 %1095 }
 0x86d   :  { %2848 = vmatmul.mubr.msk.f32.vlgmr.msra.gmra.mrb[8].mxu0 %vm223_vm3, %v1096_v27 }
 0x86e   :  { %3031 = vmatpush3.bf16.msra.mxu0 %v3451_v30  ;;  %2869 = vmatprep.mubr.msk.f32.mxu0 %vm3339_vm1, %v3340_v39 }
 0x86f   :  { %3032 = vmatprep.subr.bf16.mxu0 %v3338_v31 }
 0x870   :  { %v1180_v36 = vpop.permute.xlu1 %1179 }
 0x871   :  { %2859 = vmatmul.mubr.msk.f32.vlgmr.msra.gmra.mrb[8].mxu1 %vm223_vm3, %v1180_v36 }
 0x872   :  { %3034 = vmatpush3.bf16.msra.mxu0 %v3472_v37  ;;  %3037 = vmatpush3.bf16.msra.mxu1 %v3454_v32 }
 0x873   :  { %3038 = vmatprep.subr.bf16.mxu1 %v3338_v31  ;;  %2880 = vmatprep.mubr.msk.f32.mxu1 %vm3339_vm1, %v3340_v39 }
 0x874   :  { %3041 = vmatprep.subr.bf16.mxu0 %v3338_v31 }
 0x876   :  { %3040 = vmatpush3.bf16.msra.mxu1 %v3476_v38 }
 0x877   :  { %3047 = vmatprep.subr.bf16.mxu1 %v3338_v31 }
 0x940   :  { %v1165_v10 = vpop.f32.mrb[8].mxu0 }
 0x941   :  { %v1170_v11 = vrot.slane %v1165_v10, 5  ;;  %v1171_v12 = vrot.slane %v1165_v10, 6  ;;  %v2849_v14 = vpop.f32.mrb[9].mxu0 }
 0x942   :  { %v1277_v14 = vrot.slane %v3653_v43, 7 }
 0x943   :  { %v1174_v17 = vadd.f32 %v1170_v11, %v3516_v59  ;;  %v1175_v18 = vadd.f32 %v1171_v12, %v3504_v46  ;;  %v1276_v12 = vrot.slane %v3650_v40, 7 }
 0x944   :  { %v1249_v20 = vpop.f32.mrb[8].mxu1 }
 0x945   :  { %3178 = vtanh.f32 %v1174_v17  ;;  %v1254_v21 = vrot.slane %v1249_v20, 4  ;;  %v2860_v22 = vpop.f32.mrb[9].mxu1  ;;  %v1255_v23 = vrot.slane %v1249_v20, 5  ;;  %v2607_v34 = vmul.f32 -1.442695, %v1174_v17 }
 0x946   :  { %3180 = vtanh.f32 %v1175_v18  ;;  %v2608_v41 = vmul.f32 -1.442695, %v1175_v18 }
 0x947   :  { %v1258_v24 = vadd.f32 %v1254_v21, %v3510_v55  ;;  %v1259_v25 = vadd.f32 %v1255_v23, %v3512_v56  ;;  %v1330_v21 = vrot.slane %v3657_v47, 1 }
 0x949   :  { %3182 = vtanh.f32 %v1258_v24  ;;  %v2609_v44 = vmul.f32 -1.442695, %v1258_v24  ;;  %v2610_v5 = vmul.f32 -1.442695, %v1259_v25  ;;  %v1331_v24 = vrot.slane %v3659_v48, 1 }
 0x94a   :  { %3184 = vtanh.f32 %v1259_v25 }
 0x94b   :  { %3186 = vpow2.f32 %v2607_v34 }
 0x94c   :  { %3188 = vpow2.f32 %v2608_v41 }
 0x94d   :  { %3190 = vpow2.f32 %v2609_v44 }
 0x94e   :  { %3192 = vpow2.f32 %v2610_v5 }
 0x94f   :  { %v3179_v26 = vpop.eup %3178 }
 0x950   :  { %v3181_v28 = vpop.eup %3180  ;;  %1284 = vrot.lane.b32.xlu0 %v3179_v26, %s3341_s3 }
 0x951   :  { %1286 = vrot.lane.b32.xlu1 %v3181_v28, %s3341_s3 }
 0x953   :  { %v3183_v29 = vpop.eup %3182 }
 0x954   :  { %v3185_v33 = vpop.eup %3184  ;;  %1338 = vrot.lane.b32.xlu0 %v3183_v29, %s3341_s3 }
 0x955   :  { %1340 = vrot.lane.b32.xlu1 %v3185_v33, %s3341_s3  ;;  %v3187_v45 = vpop.eup %3186 }
 0x956   :  { %v3189_v7 = vpop.eup %3188  ;;  %v1266_v62 = vadd.f32 1.0, %v3187_v45 }
 0x957   :  { %v3191_v8 = vpop.eup %3190  ;;  %v1267_v49 = vadd.f32 1.0, %v3189_v7 }
 0x958   :  { %v3193_v50 = vpop.eup %3192  ;;  %3194 = vrcp.f32 %v1266_v62  ;;  %v1320_v54 = vadd.f32 1.0, %v3191_v8 }
 0x959   :  { %3196 = vrcp.f32 %v1267_v49  ;;  %v1321_v57 = vadd.f32 1.0, %v3193_v50 }
 0x95a   :  { %3198 = vrcp.f32 %v1320_v54 }
 0x95b   :  { %3200 = vrcp.f32 %v1321_v57 }
 0x962   :  { %v3195_v63 = vpop.eup %3194 }
 0x963   :  { %v3197_v1 = vpop.eup %3196  ;;  %v1280_v17 = vmul.f32 %v3195_v63, %v1276_v12 }
 0x964   :  { %v3199_v42 = vpop.eup %3198  ;;  %v1281_v18 = vmul.f32 %v3197_v1, %v1277_v14 }
 0x965   :  { %v3201_v27 = vpop.eup %3200  ;;  %v1334_v26 = vmul.f32 %v3199_v42, %v1330_v21 }
 0x966   :  { %v1335_v40 = vmul.f32 %v3201_v27, %v1331_v24 }
 0x9c2   :  { %v1285_v0 = vpop.permute.xlu0 %1284 }
 0x9c3   :  { %v1287_v2 = vpop.permute.xlu1 %1286  ;;  %v1290_v6 = vmul.f32 %v3195_v63, %v1285_v0 }
 0x9c4   :  { %v1291_v35 = vmul.f32 %v3197_v1, %v1287_v2 }
 0x9c5   :  { %1294 = vrot.lane.b32.xlu0 %v1290_v6, %s3342_s6 }
 0x9c6   :  { %1296 = vrot.lane.b32.xlu1 %v1291_v35, %s3342_s6  ;;  %v1339_v9 = vpop.permute.xlu0 %1338 }
 0x9c7   :  { %v1341_v36 = vpop.permute.xlu1 %1340  ;;  %v1344_v10 = vmul.f32 %v3199_v42, %v1339_v9 }
 0x9c8   :  { %v1345_v11 = vmul.f32 %v3201_v27, %v1341_v36 }
 0x9c9   :  { %1348 = vrot.lane.b32.xlu0 %v1344_v10, %s3342_s6 }
 0x9ca   :  { %1350 = vrot.lane.b32.xlu1 %v1345_v11, %s3342_s6 }
 0xa37   :  { %v1295_v20 = vpop.permute.xlu0 %1294 }
 0xa38   :  { %v1297_v22 = vpop.permute.xlu1 %1296  ;;  %v3712_v23 = vadd.f32 %v1295_v20, %v1280_v17 }
 0xa39   :  { %v3715_v25 = vadd.f32 %v1297_v22, %v1281_v18 }
 0xa3a   :  { %3202 = vtanh.f32 %v3712_v23 }
 0xa3b   :  { %3204 = vtanh.f32 %v3715_v25  ;;  %v1349_v28 = vpop.permute.xlu0 %1348 }
 0xa3c   :  { %v1351_v43 = vpop.permute.xlu1 %1350  ;;  %v3719_v29 = vadd.f32 %v1349_v28, %v1334_v26 }
 0xa3d   :  { %v3721_v33 = vadd.f32 %v1351_v43, %v1335_v40 }
 0xa3e   :  { %3206 = vtanh.f32 %v3719_v29 }
 0xa3f   :  { %3208 = vtanh.f32 %v3721_v33 }
 0xa44   :  { %v3203_v47 = vpop.eup %3202 }
 0xa45   :  { %v3205_v48 = vpop.eup %3204  ;;  %1306 = vrot.lane.b32.xlu0 %v3203_v47, %s3341_s3 }
 0xa46   :  { %1308 = vrot.lane.b32.xlu1 %v3205_v48, %s3341_s3 }
 0xa48   :  { %v3207_v34 = vpop.eup %3206 }
 0xa49   :  { %v3209_v41 = vpop.eup %3208  ;;  %1360 = vrot.lane.b32.xlu0 %v3207_v34, %s3341_s3 }
 0xa4a   :  { %1362 = vrot.lane.b32.xlu1 %v3209_v41, %s3341_s3 }
 0xab7   :  { %v1307_v44 = vpop.permute.xlu0 %1306 }
 0xab8   :  { %v1309_v5 = vpop.permute.xlu1 %1308  ;;  %v3729_v45 = vmul.f32 %v3195_v63, %v1307_v44 }
 0xab9   :  { %v3731_v7 = vmul.f32 %v3197_v1, %v1309_v5 }
 0xaba   :  { %v1390_v62 = vrot.slane %v3729_v45, 3 }
 0xabb   :  { %v1391_v8 = vrot.slane %v3731_v7, 2  ;;  %v1361_v49 = vpop.permute.xlu0 %1360 }
 0xabc   :  { %v1363_v50 = vpop.permute.xlu1 %1362  ;;  %v3735_v54 = vmul.f32 %v3199_v42, %v1361_v49 }
 0xabd   :  { %v3737_v57 = vmul.f32 %v3201_v27, %v1363_v50  ;;  %v1392_v0 = vsel %vm499_vm2, %v1391_v8, %v1390_v62 }
 0xabe   :  { %v1474_v2 = vrot.slane %v3735_v54, 4  ;;  %1393 = vrot.lane.b32.xlu0 %v1392_v0, %s3342_s6 }
 0xabf   :  { %v1475_v63 = vrot.slane %v3737_v57, 3 }
 0xac1   :  { %v1476_v1 = vsel %vm499_vm2, %v1475_v63, %v1474_v2 }
 0xac2   :  { %1477 = vrot.lane.b32.xlu1 %v1476_v1, %s3342_s6 }
 0xb30   :  { %v1394_v6 = vpop.permute.xlu0 %1393 }
 0xb31   :  { %2870 = vmatmul.mubr.msk.f32.vlgmr.msra.gmra.mrb[10].mxu0 %vm223_vm3, %v1394_v6 }
 0xb32   :  { %3043 = vmatpush3.bf16.msra.mxu0 %v3451_v30  ;;  %2891 = vmatprep.mubr.msk.f32.mxu0 %vm3339_vm1, %v3340_v39 }
 0xb33   :  { %3044 = vmatprep.subr.bf16.mxu0 %v3338_v31 }
 0xb34   :  { %v1478_v35 = vpop.permute.xlu1 %1477 }
 0xb35   :  { %2881 = vmatmul.mubr.msk.f32.vlgmr.msra.gmra.mrb[10].mxu1 %vm223_vm3, %v1478_v35 }
 0xb36   :  { %3046 = vmatpush3.bf16.msra.mxu0 %v3472_v37  ;;  %3049 = vmatpush3.bf16.msra.mxu1 %v3454_v32 }
 0xb37   :  { %3050 = vmatprep.subr.bf16.mxu1 %v3338_v31  ;;  %2902 = vmatprep.mubr.msk.f32.mxu1 %vm3339_vm1, %v3340_v39 }
 0xb38   :  { %3053 = vmatprep.subr.bf16.mxu0 %v3338_v31 }
 0xb3a   :  { %3052 = vmatpush3.bf16.msra.mxu1 %v3476_v38 }
 0xb3b   :  { %3059 = vmatprep.subr.bf16.mxu1 %v3338_v31 }
 0xc04   :  { %v1463_v42 = vpop.f32.mrb[10].mxu0 }
 0xc05   :  { %v1468_v9 = vrot.slane %v1463_v42, 4  ;;  %v1469_v27 = vrot.slane %v1463_v42, 5  ;;  %v2871_v36 = vpop.f32.mrb[11].mxu0 }
 0xc07   :  { %v1472_v10 = vadd.f32 %v1468_v9, %v3516_v59  ;;  %v1473_v11 = vadd.f32 %v1469_v27, %v3504_v46 }
 0xc08   :  { %v1547_v12 = vpop.f32.mrb[10].mxu1 }
 0xc09   :  { %3210 = vtanh.f32 %v1472_v10  ;;  %v1552_v14 = vrot.slane %v1547_v12, 5  ;;  %v2882_v17 = vpop.f32.mrb[11].mxu1  ;;  %v1553_v18 = vrot.slane %v1547_v12, 6  ;;  %v2613_v28 = vmul.f32 -1.442695, %v1472_v10 }
 0xc0a   :  { %3212 = vtanh.f32 %v1473_v11  ;;  %v2614_v43 = vmul.f32 -1.442695, %v1473_v11  ;;  %v1574_v12 = vrot.slane %v3712_v23, 7 }
 0xc0b   :  { %v1556_v20 = vadd.f32 %v1552_v14, %v3510_v55  ;;  %v1557_v21 = vadd.f32 %v1553_v18, %v3512_v56  ;;  %v1575_v14 = vrot.slane %v3715_v25, 7 }
 0xc0d   :  { %3214 = vtanh.f32 %v1556_v20  ;;  %v2615_v47 = vmul.f32 -1.442695, %v1556_v20  ;;  %v2616_v48 = vmul.f32 -1.442695, %v1557_v21 }
 0xc0e   :  { %3216 = vtanh.f32 %v1557_v21  ;;  %v1628_v21 = vrot.slane %v3719_v29, 1 }
 0xc0f   :  { %3218 = vpow2.f32 %v2613_v28 }
 0xc10   :  { %3220 = vpow2.f32 %v2614_v43 }
 0xc11   :  { %3222 = vpow2.f32 %v2615_v47 }
 0xc12   :  { %3224 = vpow2.f32 %v2616_v48 }
 0xc13   :  { %v3211_v22 = vpop.eup %3210 }
 0xc14   :  { %v3213_v24 = vpop.eup %3212  ;;  %1582 = vrot.lane.b32.xlu0 %v3211_v22, %s3341_s3 }
 0xc15   :  { %1584 = vrot.lane.b32.xlu1 %v3213_v24, %s3341_s3 }
 0xc17   :  { %v3215_v26 = vpop.eup %3214 }
 0xc18   :  { %v3217_v40 = vpop.eup %3216  ;;  %1636 = vrot.lane.b32.xlu0 %v3215_v26, %s3341_s3  ;;  %v1629_v26 = vrot.slane %v3721_v33, 1 }
 0xc19   :  { %1638 = vrot.lane.b32.xlu1 %v3217_v40, %s3341_s3  ;;  %v3219_v34 = vpop.eup %3218 }
 0xc1a   :  { %v3221_v41 = vpop.eup %3220  ;;  %v1564_v44 = vadd.f32 1.0, %v3219_v34 }
 0xc1b   :  { %v3223_v5 = vpop.eup %3222  ;;  %v1565_v62 = vadd.f32 1.0, %v3221_v41 }
 0xc1c   :  { %v3225_v8 = vpop.eup %3224  ;;  %3226 = vrcp.f32 %v1564_v44  ;;  %v1618_v49 = vadd.f32 1.0, %v3223_v5 }
 0xc1d   :  { %3228 = vrcp.f32 %v1565_v62  ;;  %v1619_v50 = vadd.f32 1.0, %v3225_v8 }
 0xc1e   :  { %3230 = vrcp.f32 %v1618_v49 }
 0xc1f   :  { %3232 = vrcp.f32 %v1619_v50 }
 0xc26   :  { %v3227_v0 = vpop.eup %3226 }
 0xc27   :  { %v3229_v63 = vpop.eup %3228  ;;  %v1578_v17 = vmul.f32 %v3227_v0, %v1574_v12 }
 0xc28   :  { %v3231_v42 = vpop.eup %3230  ;;  %v1579_v18 = vmul.f32 %v3229_v63, %v1575_v14 }
 0xc29   :  { %v3233_v27 = vpop.eup %3232  ;;  %v1632_v28 = vmul.f32 %v3231_v42, %v1628_v21 }
 0xc2a   :  { %v1633_v23 = vmul.f32 %v3233_v27, %v1629_v26 }
 0xc86   :  { %v1583_v2 = vpop.permute.xlu0 %1582 }
 0xc87   :  { %v1585_v1 = vpop.permute.xlu1 %1584  ;;  %v1588_v6 = vmul.f32 %v3227_v0, %v1583_v2 }
 0xc88   :  { %v1589_v35 = vmul.f32 %v3229_v63, %v1585_v1 }
 0xc89   :  { %1592 = vrot.lane.b32.xlu0 %v1588_v6, %s3342_s6 }
 0xc8a   :  { %1594 = vrot.lane.b32.xlu1 %v1589_v35, %s3342_s6  ;;  %v1637_v9 = vpop.permute.xlu0 %1636 }
 0xc8b   :  { %v1639_v36 = vpop.permute.xlu1 %1638  ;;  %v1642_v10 = vmul.f32 %v3231_v42, %v1637_v9 }
 0xc8c   :  { %v1643_v11 = vmul.f32 %v3233_v27, %v1639_v36 }
 0xc8d   :  { %1646 = vrot.lane.b32.xlu0 %v1642_v10, %s3342_s6 }
 0xc8e   :  { %1648 = vrot.lane.b32.xlu1 %v1643_v11, %s3342_s6 }
 0xcfb   :  { %v1593_v20 = vpop.permute.xlu0 %1592 }
 0xcfc   :  { %v1595_v22 = vpop.permute.xlu1 %1594  ;;  %v3774_v24 = vadd.f32 %v1593_v20, %v1578_v17 }
 0xcfd   :  { %v3777_v40 = vadd.f32 %v1595_v22, %v1579_v18 }
 0xcfe   :  { %3234 = vtanh.f32 %v3774_v24 }
 0xcff   :  { %3236 = vtanh.f32 %v3777_v40  ;;  %v1647_v43 = vpop.permute.xlu0 %1646 }
 0xd00   :  { %v1649_v25 = vpop.permute.xlu1 %1648  ;;  %v3781_v47 = vadd.f32 %v1647_v43, %v1632_v28 }
 0xd01   :  { %v3783_v48 = vadd.f32 %v1649_v25, %v1633_v23 }
 0xd02   :  { %3238 = vtanh.f32 %v3781_v47 }
 0xd03   :  { %3240 = vtanh.f32 %v3783_v48 }
 0xd08   :  { %v3235_v29 = vpop.eup %3234 }
 0xd09   :  { %v3237_v33 = vpop.eup %3236  ;;  %1604 = vrot.lane.b32.xlu0 %v3235_v29, %s3341_s3 }
 0xd0a   :  { %1606 = vrot.lane.b32.xlu1 %v3237_v33, %s3341_s3 }
 0xd0c   :  { %v3239_v34 = vpop.eup %3238 }
 0xd0d   :  { %v3241_v41 = vpop.eup %3240  ;;  %1658 = vrot.lane.b32.xlu0 %v3239_v34, %s3341_s3 }
 0xd0e   :  { %1660 = vrot.lane.b32.xlu1 %v3241_v41, %s3341_s3 }
 0xd7b   :  { %v1605_v44 = vpop.permute.xlu0 %1604 }
 0xd7c   :  { %v1607_v5 = vpop.permute.xlu1 %1606  ;;  %v3791_v62 = vmul.f32 %v3227_v0, %v1605_v44 }
 0xd7d   :  { %v3793_v8 = vmul.f32 %v3229_v63, %v1607_v5 }
 0xd7e   :  { %v1688_v49 = vrot.slane %v3791_v62, 4 }
 0xd7f   :  { %v1689_v50 = vrot.slane %v3793_v8, 3  ;;  %v1659_v2 = vpop.permute.xlu0 %1658 }
 0xd80   :  { %v1661_v1 = vpop.permute.xlu1 %1660  ;;  %v3797_v6 = vmul.f32 %v3231_v42, %v1659_v2 }
 0xd81   :  { %v3799_v35 = vmul.f32 %v3233_v27, %v1661_v1  ;;  %v1690_v9 = vsel %vm499_vm2, %v1689_v50, %v1688_v49 }
 0xd82   :  { %v1772_v36 = vrot.slane %v3797_v6, 3  ;;  %1691 = vrot.lane.b32.xlu0 %v1690_v9, %s3342_s6 }
 0xd83   :  { %v1773_v0 = vrot.slane %v3799_v35, 2 }
 0xd85   :  { %v1774_v63 = vsel %vm499_vm2, %v1773_v0, %v1772_v36 }
 0xd86   :  { %1775 = vrot.lane.b32.xlu1 %v1774_v63, %s3342_s6 }
 0xdf4   :  { %v1692_v10 = vpop.permute.xlu0 %1691 }
 0xdf5   :  { %2892 = vmatmul.mubr.msk.f32.vlgmr.msra.gmra.mrb[12].mxu0 %vm223_vm3, %v1692_v10 }
 0xdf6   :  { %3055 = vmatpush3.bf16.msra.mxu0 %v3451_v30  ;;  %2913 = vmatprep.mubr.msk.f32.mxu0 %vm3339_vm1, %v3340_v39 }
 0xdf7   :  { %3056 = vmatprep.subr.bf16.mxu0 %v3338_v31 }
 0xdf8   :  { %v1776_v42 = vpop.permute.xlu1 %1775 }
 0xdf9   :  { %2903 = vmatmul.mubr.msk.f32.vlgmr.msra.gmra.mrb[12].mxu1 %vm223_vm3, %v1776_v42 }
 0xdfa   :  { %3058 = vmatpush3.bf16.msra.mxu0 %v3472_v37  ;;  %3061 = vmatpush3.bf16.msra.mxu1 %v3454_v32 }
 0xdfb   :  { %3062 = vmatprep.subr.bf16.mxu1 %v3338_v31  ;;  %2924 = vmatprep.mubr.msk.f32.mxu1 %vm3339_vm1, %v3340_v39 }
 0xdfc   :  { %3065 = vmatprep.subr.bf16.mxu0 %v3338_v31 }
 0xdfe   :  { %3064 = vmatpush3.bf16.msra.mxu1 %v3476_v38 }
 0xdff   :  { %3071 = vmatprep.subr.bf16.mxu1 %v3338_v31 }
 0xec8   :  { %v1761_v27 = vpop.f32.mrb[12].mxu0 }
 0xec9   :  { %v1766_v11 = vrot.slane %v1761_v27, 3  ;;  %v1767_v12 = vrot.slane %v1761_v27, 4  ;;  %v2893_v14 = vpop.f32.mrb[13].mxu0 }
 0xecb   :  { %v1770_v17 = vadd.f32 %v1766_v11, %v3516_v59  ;;  %v1771_v18 = vadd.f32 %v1767_v12, %v3504_v46 }
 0xecc   :  { %v1845_v20 = vpop.f32.mrb[12].mxu1 }
 0xecd   :  { %3242 = vtanh.f32 %v1770_v17  ;;  %v1850_v21 = vrot.slane %v1845_v20, 6  ;;  %v2904_v22 = vpop.f32.mrb[13].mxu1  ;;  %v1851_v26 = vrot.slane %v1845_v20, 7  ;;  %v2619_v34 = vmul.f32 -1.442695, %v1770_v17 }
 0xece   :  { %3244 = vtanh.f32 %v1771_v18  ;;  %v2620_v41 = vmul.f32 -1.442695, %v1771_v18 }
 0xecf   :  { %v1854_v28 = vadd.f32 %v1850_v21, %v3510_v55  ;;  %v1855_v23 = vadd.f32 %v1851_v26, %v3512_v56 }
 0xed1   :  { %3246 = vtanh.f32 %v1854_v28  ;;  %v2621_v44 = vmul.f32 -1.442695, %v1854_v28  ;;  %v2622_v5 = vmul.f32 -1.442695, %v1855_v23  ;;  %v1872_v28 = vrot.slane %v3774_v24, 7 }
 0xed2   :  { %3248 = vtanh.f32 %v1855_v23  ;;  %v1873_v23 = vrot.slane %v3777_v40, 7 }
 0xed3   :  { %3250 = vpow2.f32 %v2619_v34 }
 0xed4   :  { %3252 = vpow2.f32 %v2620_v41 }
 0xed5   :  { %3254 = vpow2.f32 %v2621_v44  ;;  %v1927_v44 = vrot.slane %v3783_v48, 1 }
 0xed6   :  { %3256 = vpow2.f32 %v2622_v5 }
 0xed7   :  { %v3243_v43 = vpop.eup %3242 }
 0xed8   :  { %v3245_v25 = vpop.eup %3244  ;;  %1880 = vrot.lane.b32.xlu0 %v3243_v43, %s3341_s3 }
 0xed9   :  { %1882 = vrot.lane.b32.xlu1 %v3245_v25, %s3341_s3 }
 0xedb   :  { %v3247_v29 = vpop.eup %3246 }
 0xedc   :  { %v3249_v33 = vpop.eup %3248  ;;  %1934 = vrot.lane.b32.xlu0 %v3247_v29, %s3341_s3 }
 0xedd   :  { %1936 = vrot.lane.b32.xlu1 %v3249_v33, %s3341_s3  ;;  %v3251_v49 = vpop.eup %3250  ;;  %v1926_v33 = vrot.slane %v3781_v47, 1 }
 0xede   :  { %v3253_v50 = vpop.eup %3252  ;;  %v1862_v2 = vadd.f32 1.0, %v3251_v49 }
 0xedf   :  { %v3255_v1 = vpop.eup %3254  ;;  %v1863_v9 = vadd.f32 1.0, %v3253_v50 }
 0xee0   :  { %v3257_v36 = vpop.eup %3256  ;;  %3258 = vrcp.f32 %v1862_v2  ;;  %v1916_v0 = vadd.f32 1.0, %v3255_v1 }
 0xee1   :  { %3260 = vrcp.f32 %v1863_v9  ;;  %v1917_v63 = vadd.f32 1.0, %v3257_v36 }
 0xee2   :  { %3262 = vrcp.f32 %v1916_v0 }
 0xee3   :  { %3264 = vrcp.f32 %v1917_v63 }
 0xeea   :  { %v3259_v10 = vpop.eup %3258 }
 0xeeb   :  { %v3261_v27 = vpop.eup %3260  ;;  %v1876_v43 = vmul.f32 %v3259_v10, %v1872_v28 }
 0xeec   :  { %v3263_v17 = vpop.eup %3262  ;;  %v1877_v25 = vmul.f32 %v3261_v27, %v1873_v23 }
 0xeed   :  { %v3265_v20 = vpop.eup %3264  ;;  %v1930_v49 = vmul.f32 %v3263_v17, %v1926_v33 }
 0xeee   :  { %v1931_v24 = vmul.f32 %v3265_v20, %v1927_v44 }
 0xf4a   :  { %v1881_v42 = vpop.permute.xlu0 %1880 }
 0xf4b   :  { %v1883_v11 = vpop.permute.xlu1 %1882  ;;  %v1886_v12 = vmul.f32 %v3259_v10, %v1881_v42 }
 0xf4c   :  { %v1887_v14 = vmul.f32 %v3261_v27, %v1883_v11 }
 0xf4d   :  { %1890 = vrot.lane.b32.xlu0 %v1886_v12, %s3342_s6 }
 0xf4e   :  { %1892 = vrot.lane.b32.xlu1 %v1887_v14, %s3342_s6  ;;  %v1935_v18 = vpop.permute.xlu0 %1934 }
 0xf4f   :  { %v1937_v21 = vpop.permute.xlu1 %1936  ;;  %v1940_v22 = vmul.f32 %v3263_v17, %v1935_v18 }
 0xf50   :  { %v1941_v26 = vmul.f32 %v3265_v20, %v1937_v21 }
 0xf51   :  { %1944 = vrot.lane.b32.xlu0 %v1940_v22, %s3342_s6 }
 0xf52   :  { %1946 = vrot.lane.b32.xlu1 %v1941_v26, %s3342_s6 }
 0xfbf   :  { %v1891_v29 = vpop.permute.xlu0 %1890 }
 0xfc0   :  { %v1893_v34 = vpop.permute.xlu1 %1892  ;;  %v3836_v41 = vadd.f32 %v1891_v29, %v1876_v43 }
 0xfc1   :  { %v3839_v5 = vadd.f32 %v1893_v34, %v1877_v25 }
 0xfc2   :  { %3266 = vtanh.f32 %v3836_v41 }
 0xfc3   :  { %3268 = vtanh.f32 %v3839_v5  ;;  %v1945_v50 = vpop.permute.xlu0 %1944 }
 0xfc4   :  { %v1947_v40 = vpop.permute.xlu1 %1946  ;;  %v3843_v2 = vadd.f32 %v1945_v50, %v1930_v49 }
 0xfc5   :  { %v3845_v1 = vadd.f32 %v1947_v40, %v1931_v24 }
 0xfc6   :  { %3270 = vtanh.f32 %v3843_v2 }
 0xfc7   :  { %3272 = vtanh.f32 %v3845_v1 }
 0xfcc   :  { %v3267_v47 = vpop.eup %3266 }
 0xfcd   :  { %v3269_v48 = vpop.eup %3268  ;;  %1902 = vrot.lane.b32.xlu0 %v3267_v47, %s3341_s3 }
 0xfce   :  { %1904 = vrot.lane.b32.xlu1 %v3269_v48, %s3341_s3 }
 0xfd0   :  { %v3271_v9 = vpop.eup %3270 }
 0xfd1   :  { %v3273_v36 = vpop.eup %3272  ;;  %1956 = vrot.lane.b32.xlu0 %v3271_v9, %s3341_s3 }
 0xfd2   :  { %1958 = vrot.lane.b32.xlu1 %v3273_v36, %s3341_s3 }
0x103f   :  { %v1903_v0 = vpop.permute.xlu0 %1902 }
0x1040   :  { %v1905_v63 = vpop.permute.xlu1 %1904  ;;  %v3853_v42 = vmul.f32 %v3259_v10, %v1903_v0 }
0x1041   :  { %v3855_v11 = vmul.f32 %v3261_v27, %v1905_v63 }
0x1042   :  { %v1986_v12 = vrot.slane %v3853_v42, 5 }
0x1043   :  { %v1987_v14 = vrot.slane %v3855_v11, 4  ;;  %v1957_v18 = vpop.permute.xlu0 %1956 }
0x1044   :  { %v1959_v21 = vpop.permute.xlu1 %1958  ;;  %v3859_v22 = vmul.f32 %v3263_v17, %v1957_v18 }
0x1045   :  { %v3861_v26 = vmul.f32 %v3265_v20, %v1959_v21  ;;  %v1988_v28 = vsel %vm499_vm2, %v1987_v14, %v1986_v12 }
0x1046   :  { %v2070_v23 = vrot.slane %v3859_v22, 2  ;;  %1989 = vrot.lane.b32.xlu0 %v1988_v28, %s3342_s6 }
0x1047   :  { %v2071_v10 = vrot.slane %v3861_v26, 1 }
0x1049   :  { %v2072_v27 = vsel %vm499_vm2, %v2071_v10, %v2070_v23 }
0x104a   :  { %2073 = vrot.lane.b32.xlu1 %v2072_v27, %s3342_s6 }
0x10b8   :  { %v1990_v43 = vpop.permute.xlu0 %1989 }
0x10b9   :  { %2914 = vmatmul.mubr.msk.f32.vlgmr.msra.gmra.mrb[14].mxu0 %vm223_vm3, %v1990_v43 }
0x10ba   :  { %3067 = vmatpush3.bf16.msra.mxu0 %v3451_v30  ;;  %2935 = vmatprep.mubr.msk.f32.mxu0 %vm3339_vm1, %v3340_v39 }
0x10bb   :  { %3068 = vmatprep.subr.bf16.mxu0 %v3338_v31 }
0x10bc   :  { %v2074_v17 = vpop.permute.xlu1 %2073 }
0x10bd   :  { %2925 = vmatmul.mubr.msk.f32.vlgmr.msra.gmra.mrb[14].mxu1 %vm223_vm3, %v2074_v17 }
0x10be   :  { %3070 = vmatpush3.bf16.msra.mxu0 %v3472_v37  ;;  %3073 = vmatpush3.bf16.msra.mxu1 %v3454_v32 }
0x10bf   :  { %3074 = vmatprep.subr.bf16.mxu1 %v3338_v31  ;;  %2946 = vmatprep.mubr.msk.f32.mxu1 %vm3339_vm1, %v3340_v39  ;;  %vm2280_vm1 = vcmask 517377  }
0x10c2   :  { %3076 = vmatpush3.bf16.msra.mxu1 %v3476_v38 }
0x118c   :  { %v2059_v30 = vpop.f32.mrb[14].mxu0 }
0x118d   :  { %v2064_v20 = vrot.slane %v2059_v30, 2  ;;  %v2065_v25 = vrot.slane %v2059_v30, 3  ;;  %v2915_v29 = vpop.f32.mrb[15].mxu0 }
0x118f   :  { %v2068_v33 = vadd.f32 %v2064_v20, %v3516_v59  ;;  %v2069_v34 = vadd.f32 %v2065_v25, %v3504_v46 }
0x1190   :  { %v2143_v44 = vpop.f32.mrb[14].mxu1 }
0x1191   :  { %3274 = vtanh.f32 %v2068_v33  ;;  %v2148_v37 = vrot.slane %v2143_v44, 7  ;;  %v2926_v49 = vpop.f32.mrb[15].mxu1  ;;  %v2152_v32 = vadd.f32 %v2143_v44, %v3512_v56  ;;  %v2625_v40 = vmul.f32 -1.442695, %v2068_v33 }
0x1192   :  { %3276 = vtanh.f32 %v2069_v34  ;;  %v2626_v47 = vmul.f32 -1.442695, %v2069_v34  ;;  %v2170_v49 = vrot.slane %v3839_v5, 7 }
0x1193   :  { %v2151_v31 = vadd.f32 %v2148_v37, %v3510_v55  ;;  %v2628_v9 = vmul.f32 -1.442695, %v2152_v32  ;;  %v2169_v37 = vrot.slane %v3836_v41, 7 }
0x1195   :  { %3278 = vtanh.f32 %v2151_v31  ;;  %v2627_v48 = vmul.f32 -1.442695, %v2151_v31 }
0x1196   :  { %3280 = vtanh.f32 %v2152_v32 }
0x1197   :  { %3282 = vpow2.f32 %v2625_v40 }
0x1198   :  { %3284 = vpow2.f32 %v2626_v47 }
0x1199   :  { %3286 = vpow2.f32 %v2627_v48  ;;  %v2224_v48 = vrot.slane %v3845_v1, 1 }
0x119a   :  { %3288 = vpow2.f32 %v2628_v9 }
0x119b   :  { %v3275_v38 = vpop.eup %3274 }
0x119c   :  { %v3277_v39 = vpop.eup %3276  ;;  %2177 = vrot.lane.b32.xlu0 %v3275_v38, %s3341_s3 }
0x119d   :  { %2179 = vrot.lane.b32.xlu1 %v3277_v39, %s3341_s3  ;;  %v2223_v39 = vrot.slane %v3843_v2, 1 }
0x119f   :  { %v3279_v24 = vpop.eup %3278 }
0x11a0   :  { %2231 = vrot.lane.b32.xlu0 %v3279_v24, %s3341_s3  ;;  %v3281_v50 = vpop.eup %3280 }
0x11a1   :  { %2233 = vrot.lane.b32.xlu1 %v3281_v50, %s3341_s3  ;;  %v3283_v36 = vpop.eup %3282 }
0x11a2   :  { %v3285_v0 = vpop.eup %3284  ;;  %v2159_v63 = vadd.f32 1.0, %v3283_v36 }
0x11a3   :  { %v3287_v12 = vpop.eup %3286  ;;  %v2160_v14 = vadd.f32 1.0, %v3285_v0 }
0x11a4   :  { %v3289_v18 = vpop.eup %3288  ;;  %3290 = vrcp.f32 %v2159_v63  ;;  %v2213_v21 = vadd.f32 1.0, %v3287_v12 }
0x11a5   :  { %3292 = vrcp.f32 %v2160_v14  ;;  %v2214_v28 = vadd.f32 1.0, %v3289_v18 }
0x11a6   :  { %3294 = vrcp.f32 %v2213_v21 }
0x11a7   :  { %3296 = vrcp.f32 %v2214_v28 }
0x11ae   :  { %v3291_v23 = vpop.eup %3290 }
0x11af   :  { %v3293_v27 = vpop.eup %3292  ;;  %v2173_v31 = vmul.f32 %v3291_v23, %v2169_v37 }
0x11b0   :  { %v3295_v20 = vpop.eup %3294  ;;  %v2174_v32 = vmul.f32 %v3293_v27, %v2170_v49 }
0x11b1   :  { %v3297_v33 = vpop.eup %3296  ;;  %v2227_v47 = vmul.f32 %v3295_v20, %v2223_v39 }
0x11b2   :  { %v2228_v5 = vmul.f32 %v3297_v33, %v2224_v48 }
0x120e   :  { %v2178_v10 = vpop.permute.xlu0 %2177 }
0x120f   :  { %v2180_v43 = vpop.permute.xlu1 %2179  ;;  %v2183_v17 = vmul.f32 %v3291_v23, %v2178_v10 }
0x1210   :  { %v2184_v30 = vmul.f32 %v3293_v27, %v2180_v43 }
0x1211   :  { %2187 = vrot.lane.b32.xlu0 %v2183_v17, %s3342_s6 }
0x1212   :  { %2189 = vrot.lane.b32.xlu1 %v2184_v30, %s3342_s6  ;;  %v2232_v25 = vpop.permute.xlu0 %2231 }
0x1213   :  { %v2237_v29 = vmul.f32 %v3295_v20, %v2232_v25  ;;  %v2234_v34 = vpop.permute.xlu1 %2233 }
0x1214   :  { %v2238_v44 = vmul.f32 %v3297_v33, %v2234_v34 }
0x1215   :  { %2241 = vrot.lane.b32.xlu0 %v2237_v29, %s3342_s6 }
0x1216   :  { %2243 = vrot.lane.b32.xlu1 %v2238_v44, %s3342_s6 }
0x1283   :  { %v2188_v38 = vpop.permute.xlu0 %2187 }
0x1284   :  { %v2190_v24 = vpop.permute.xlu1 %2189  ;;  %v3896_v50 = vadd.f32 %v2188_v38, %v2173_v31 }
0x1285   :  { %v3898_v40 = vadd.f32 %v2190_v24, %v2174_v32 }
0x1286   :  { %3298 = vtanh.f32 %v3896_v50 }
0x1287   :  { %3300 = vtanh.f32 %v3898_v40  ;;  %v2242_v41 = vpop.permute.xlu0 %2241 }
0x1288   :  { %v3903_v9 = vadd.f32 %v2242_v41, %v2227_v47  ;;  %v2244_v36 = vpop.permute.xlu1 %2243 }
0x1289   :  { %v3906_v2 = vadd.f32 %v2244_v36, %v2228_v5 }
0x128a   :  { %3302 = vtanh.f32 %v3903_v9 }
0x128b   :  { %3304 = vtanh.f32 %v3906_v2 }
0x1290   :  { %v3299_v0 = vpop.eup %3298 }
0x1291   :  { %v3301_v63 = vpop.eup %3300  ;;  %2199 = vrot.lane.b32.xlu0 %v3299_v0, %s3341_s3 }
0x1292   :  { %2201 = vrot.lane.b32.xlu1 %v3301_v63, %s3341_s3 }
0x1294   :  { %v3303_v1 = vpop.eup %3302 }
0x1295   :  { %2253 = vrot.lane.b32.xlu0 %v3303_v1, %s3341_s3  ;;  %v3305_v12 = vpop.eup %3304 }
0x1296   :  { %2255 = vrot.lane.b32.xlu1 %v3305_v12, %s3341_s3 }
0x1303   :  { %v2200_v14 = vpop.permute.xlu0 %2199 }
0x1304   :  { %v2202_v18 = vpop.permute.xlu1 %2201  ;;  %v3913_v21 = vmul.f32 %v3291_v23, %v2200_v14 }
0x1305   :  { %v3915_v28 = vmul.f32 %v3293_v27, %v2202_v18 }
0x1306   :  { %v2283_v10 = vrot.slane %v3913_v21, 6 }
0x1307   :  { %v2284_v43 = vrot.slane %v3915_v28, 5  ;;  %v2254_v17 = vpop.permute.xlu0 %2253 }
0x1308   :  { %v3919_v30 = vmul.f32 %v3295_v20, %v2254_v17  ;;  %v2256_v29 = vpop.permute.xlu1 %2255 }
0x1309   :  { %v2285_v25 = vsel %vm499_vm2, %v2284_v43, %v2283_v10  ;;  %v3924_v44 = vmul.f32 %v3297_v33, %v2256_v29 }
0x130a   :  { %v2367_v34 = vrot.slane %v3919_v30, 1  ;;  %2286 = vrot.lane.b32.xlu0 %v2285_v25, %s3342_s6 }
0x130c   :  { %v2368_v23 = vsel %vm499_vm2, %v3924_v44, %v2367_v34  ;;  %vm2565_vm2 = vcmask 261127  }
0x130d   :  { %2369 = vrot.lane.b32.xlu1 %v2368_v23, %s3342_s6 }
0x137c   :  { %v2287_v27 = vpop.permute.xlu0 %2286 }
0x137d   :  { %2936 = vmatmul.mubr.msk.f32.vlgmr.msra.gmra.mrb[16].mxu0 %vm223_vm3, %v2287_v27 }
0x137f   :  { %v2370_v37 = vpop.permute.xlu1 %2369 }
0x1380   :  { %2947 = vmatmul.mubr.msk.f32.vlgmr.msra.gmra.mrb[16].mxu1 %vm223_vm3, %v2370_v37  ;;  %vm2576_vm3 = vcmask 516352  }
0x1450   :  { %v2356_v20 = vpop.f32.mrb[16].mxu0 }
0x1451   :  { %v2361_v49 = vrot.slane %v2356_v20, 1  ;;  %v2362_v31 = vrot.slane %v2356_v20, 2  ;;  %v2937_v32 = vpop.f32.mrb[17].mxu0 }
0x1453   :  { %v2365_v38 = vadd.f32 %v2361_v49, %v3516_v59  ;;  %v2366_v33 = vadd.f32 %v2362_v31, %v3504_v46  ;;  %v2439_v39 = vpop.f32.mrb[16].mxu1 }
0x1454   :  { %v2444_v24 = vrot.slane %v2439_v39, 1  ;;  %v2948_v47 = vpop.f32.mrb[17].mxu1  ;;  %v2447_v48 = vadd.f32 %v2439_v39, %v3510_v55 }
0x1455   :  { %3306 = vtanh.f32 %v2365_v38  ;;  %v2631_v0 = vmul.f32 -1.442695, %v2365_v38  ;;  %v2632_v63 = vmul.f32 -1.442695, %v2366_v33 }
0x1456   :  { %3308 = vtanh.f32 %v2366_v33  ;;  %v2448_v41 = vadd.f32 %v2444_v24, %v3512_v56  ;;  %v2633_v55 = vmul.f32 -1.442695, %v2447_v48  ;;  %v2466_v24 = vrot.slane %v3898_v40, 7 }
0x1457   :  { %3310 = vtanh.f32 %v2447_v48 }
0x1458   :  { %3312 = vtanh.f32 %v2448_v41  ;;  %v2634_v56 = vmul.f32 -1.442695, %v2448_v41  ;;  %v2519_v41 = vrot.slane %v3903_v9, 1 }
0x1459   :  { %3314 = vpow2.f32 %v2631_v0  ;;  %v2520_v0 = vrot.slane %v3906_v2, 1 }
0x145a   :  { %3316 = vpow2.f32 %v2632_v63 }
0x145b   :  { %3318 = vpow2.f32 %v2633_v55 }
0x145c   :  { %3320 = vpow2.f32 %v2634_v56 }
0x145f   :  { %v3307_v5 = vpop.eup %3306 }
0x1460   :  { %v3309_v36 = vpop.eup %3308  ;;  %2473 = vrot.lane.b32.xlu0 %v3307_v5, %s3341_s3 }
0x1461   :  { %2475 = vrot.lane.b32.xlu1 %v3309_v36, %s3341_s3  ;;  %v3311_v59 = vpop.eup %3310 }
0x1462   :  { %v3313_v46 = vpop.eup %3312 }
0x1463   :  { %v3315_v1 = vpop.eup %3314 }
0x1464   :  { %2527 = vrot.lane.b32.xlu0 %v3311_v59, %s3341_s3  ;;  %v3317_v12 = vpop.eup %3316  ;;  %v2455_v14 = vadd.f32 1.0, %v3315_v1  ;;  %v2465_v59 = vrot.slane %v3896_v50, 7 }
0x1465   :  { %2529 = vrot.lane.b32.xlu1 %v3313_v46, %s3341_s3  ;;  %v3319_v18 = vpop.eup %3318  ;;  %v2456_v10 = vadd.f32 1.0, %v3317_v12 }
0x1466   :  { %v3321_v43 = vpop.eup %3320  ;;  %3322 = vrcp.f32 %v2455_v14  ;;  %v2509_v17 = vadd.f32 1.0, %v3319_v18 }
0x1467   :  { %3324 = vrcp.f32 %v2456_v10  ;;  %v2510_v25 = vadd.f32 1.0, %v3321_v43 }
0x1468   :  { %3326 = vrcp.f32 %v2509_v17 }
0x1469   :  { %3328 = vrcp.f32 %v2510_v25 }
0x1470   :  { %v3939_v29 = vpop.eup %3322 }
0x1471   :  { %v3941_v23 = vpop.eup %3324  ;;  %v2469_v63 = vmul.f32 %v3939_v29, %v2465_v59 }
0x1472   :  { %v3946_v49 = vpop.eup %3326  ;;  %v2470_v48 = vmul.f32 %v3941_v23, %v2466_v24 }
0x1473   :  { %v3950_v38 = vpop.eup %3328  ;;  %v2523_v46 = vmul.f32 %v3946_v49, %v2519_v41 }
0x1474   :  { %v2524_v40 = vmul.f32 %v3950_v38, %v2520_v0 }
0x14d2   :  { %v2474_v34 = vpop.permute.xlu0 %2473 }
0x14d3   :  { %v2476_v27 = vpop.permute.xlu1 %2475  ;;  %v2479_v37 = vmul.f32 %v3939_v29, %v2474_v34 }
0x14d4   :  { %v2480_v20 = vmul.f32 %v3941_v23, %v2476_v27 }
0x14d5   :  { %2483 = vrot.lane.b32.xlu0 %v2479_v37, %s3342_s6 }
0x14d6   :  { %2485 = vrot.lane.b32.xlu1 %v2480_v20, %s3342_s6  ;;  %v2528_v31 = vpop.permute.xlu0 %2527 }
0x14d7   :  { %v2533_v32 = vmul.f32 %v3946_v49, %v2528_v31  ;;  %v2530_v33 = vpop.permute.xlu1 %2529 }
0x14d8   :  { %v2534_v39 = vmul.f32 %v3950_v38, %v2530_v33 }
0x14d9   :  { %2537 = vrot.lane.b32.xlu0 %v2533_v32, %s3342_s6 }
0x14da   :  { %2539 = vrot.lane.b32.xlu1 %v2534_v39, %s3342_s6 }
0x14dd   :  { %478 = vrot.lane.b32.xlu0 %v3552_v61, %s3342_s6 }
0x14de   :  { %480 = vrot.lane.b32.xlu1 %v3545_v52, %s3342_s6 }
0x1547   :  { %v2484_v47 = vpop.permute.xlu0 %2483 }
0x1548   :  { %v2486_v5 = vpop.permute.xlu1 %2485  ;;  %v2489_v55 = vadd.f32 %v2484_v47, %v2469_v63 }
0x1549   :  { %v2490_v36 = vadd.f32 %v2486_v5, %v2470_v48 }
0x154b   :  { %3330 = vtanh.f32 %v2490_v36  ;;  %v2538_v61 = vpop.permute.xlu0 %2537 }
0x154c   :  { %v2543_v52 = vadd.f32 %v2538_v61, %v2523_v46  ;;  %v2540_v56 = vpop.permute.xlu1 %2539 }
0x154d   :  { %v2544_v9 = vadd.f32 %v2540_v56, %v2524_v40 }
0x154e   :  { %3332 = vtanh.f32 %v2543_v52 }
0x154f   :  { %v479_v1 = vpop.permute.xlu0 %478  ;;  %3334 = vtanh.f32 %v2544_v9 }
0x1550   :  { %485 = vst.msk [vmem:[%s4134_s7] sm:$0x1] %vm484_vm4, %v479_v1  ;;  %3336 = vtanh.f32 %v2489_v55  ;;  %v481_v50 = vpop.permute.xlu1 %480 }
0x1551   :  { %486 = vst.msk [vmem:[%s4134_s7 + $0x8] sm:$0x1] %vm484_vm4, %v481_v50 }
0x1555   :  { %v3331_v2 = vpop.eup %3330 }
0x1556   :  { %2497 = vrot.lane.b32.xlu1 %v3331_v2, %s3341_s3 }
0x1558   :  { %v3333_v12 = vpop.eup %3332 }
0x1559   :  { %2549 = vrot.lane.b32.xlu0 %v3333_v12, %s3341_s3  ;;  %v3335_v14 = vpop.eup %3334 }
0x155a   :  { %v3337_v18 = vpop.eup %3336  ;;  %2551 = vrot.lane.b32.xlu1 %v3335_v14, %s3341_s3 }
0x155d   :  { %2495 = vrot.lane.b32.xlu0 %v3337_v18, %s3341_s3 }
0x155e   :  { %491 = vrot.lane.b32.xlu1 %v3547_v53, %s3341_s3 }
0x1561   :  { %489 = vrot.lane.b32.xlu0 %v3543_v51, %s3341_s3 }
0x1562   :  { %777 = vrot.lane.b32.xlu1 %v3607_v15, %s3342_s6 }
0x1565   :  { %775 = vrot.lane.b32.xlu0 %v3605_v13, %s3342_s6 }
0x1566   :  { %788 = vrot.lane.b32.xlu1 %v3612_v19, %s3341_s3 }
0x1569   :  { %786 = vrot.lane.b32.xlu0 %v3609_v16, %s3341_s3 }
0x156a   :  { %1074 = vrot.lane.b32.xlu1 %v3669_v60, %s3342_s6 }
0x156d   :  { %1072 = vrot.lane.b32.xlu0 %v3667_v58, %s3342_s6 }
0x156e   :  { %1085 = vrot.lane.b32.xlu1 %v3675_v4, %s3341_s3 }
0x1571   :  { %1083 = vrot.lane.b32.xlu0 %v3673_v3, %s3341_s3 }
0x1572   :  { %1372 = vrot.lane.b32.xlu1 %v3731_v7, %s3342_s6 }
0x1575   :  { %1370 = vrot.lane.b32.xlu0 %v3729_v45, %s3342_s6 }
0x1576   :  { %1383 = vrot.lane.b32.xlu1 %v3737_v57, %s3341_s3 }
0x1579   :  { %1381 = vrot.lane.b32.xlu0 %v3735_v54, %s3341_s3 }
0x157a   :  { %1670 = vrot.lane.b32.xlu1 %v3793_v8, %s3342_s6 }
0x157d   :  { %1668 = vrot.lane.b32.xlu0 %v3791_v62, %s3342_s6 }
0x157e   :  { %1681 = vrot.lane.b32.xlu1 %v3799_v35, %s3341_s3 }
0x1581   :  { %1679 = vrot.lane.b32.xlu0 %v3797_v6, %s3341_s3 }
0x1582   :  { %1968 = vrot.lane.b32.xlu1 %v3855_v11, %s3342_s6 }
0x1585   :  { %1966 = vrot.lane.b32.xlu0 %v3853_v42, %s3342_s6 }
0x1586   :  { %1979 = vrot.lane.b32.xlu1 %v3861_v26, %s3341_s3 }
0x1589   :  { %1977 = vrot.lane.b32.xlu0 %v3859_v22, %s3341_s3 }
0x158a   :  { %2265 = vrot.lane.b32.xlu1 %v3915_v28, %s3342_s6 }
0x158d   :  { %2263 = vrot.lane.b32.xlu0 %v3913_v21, %s3342_s6 }
0x158e   :  { %2276 = vrot.lane.b32.xlu1 %v3924_v44, %s3341_s3 }
0x1591   :  { %2274 = vrot.lane.b32.xlu0 %v3919_v30, %s3341_s3 }
0x15c8   :  { %v2498_v51 = vpop.permute.xlu1 %2497 }
0x15c9   :  { %v2502_v53 = vmul.f32 %v3941_v23, %v2498_v51 }
0x15cb   :  { %2561 = vrot.lane.b32.xlu1 %v2502_v53, %s3342_s6  ;;  %v2550_v13 = vpop.permute.xlu0 %2549 }
0x15cc   :  { %v2552_v15 = vpop.permute.xlu1 %2551  ;;  %v2555_v4 = vmul.f32 %v3946_v49, %v2550_v13 }
0x15cd   :  { %v2556_v16 = vmul.f32 %v3950_v38, %v2552_v15 }
0x15cf   :  { %v2496_v19 = vpop.permute.xlu0 %2495  ;;  %2572 = vrot.lane.b32.xlu1 %v2556_v16, %s3341_s3 }
0x15d0   :  { %v2501_v58 = vmul.f32 %v3939_v29, %v2496_v19  ;;  %v492_v60 = vpop.permute.xlu1 %491 }
0x15d1   :  { %497 = vst.msk [vmem:[%s4134_s7 + $0x8] sm:$0x80] %vm495_vm5, %v492_v60 }
0x15d2   :  { %2559 = vrot.lane.b32.xlu0 %v2501_v58, %s3342_s6 }
0x15d3   :  { %v490_v3 = vpop.permute.xlu0 %489 }
0x15d4   :  { %496 = vst.msk [vmem:[%s4134_s7] sm:$0x80] %vm495_vm5, %v490_v3  ;;  %v778_v45 = vpop.permute.xlu1 %777 }
0x15d5   :  { %783 = vst.msk [vmem:[%s4134_s7 + $0x8] sm:$0x2] %vm781_vm6, %v778_v45 }
0x15d6   :  { %2570 = vrot.lane.b32.xlu0 %v2555_v4, %s3341_s3 }
0x15d7   :  { %v776_v7 = vpop.permute.xlu0 %775 }
0x15d8   :  { %782 = vst.msk [vmem:[%s4134_s7] sm:$0x2] %vm781_vm6, %v776_v7  ;;  %v789_v54 = vpop.permute.xlu1 %788 }
0x15d9   :  { %794 = vst.msk [vmem:[%s4134_s7 + $0x8] sm:$0x40] %vm792_vm7, %v789_v54 }
0x15db   :  { %v787_v57 = vpop.permute.xlu0 %786 }
0x15dc   :  { %793 = vst.msk [vmem:[%s4134_s7] sm:$0x40] %vm792_vm7, %v787_v57  ;;  %v1075_v62 = vpop.permute.xlu1 %1074 }
0x15dd   :  { %1080 = vst.msk [vmem:[%s4134_s7 + $0x8] sm:$0x4] %vm1078_vm8, %v1075_v62 }
0x15df   :  { %v1073_v8 = vpop.permute.xlu0 %1072 }
0x15e0   :  { %1079 = vst.msk [vmem:[%s4134_s7] sm:$0x4] %vm1078_vm8, %v1073_v8  ;;  %v1086_v6 = vpop.permute.xlu1 %1085 }
0x15e1   :  { %1091 = vst.msk [vmem:[%s4134_s7 + $0x8] sm:$0x20] %vm1089_vm9, %v1086_v6 }
0x15e3   :  { %v1084_v35 = vpop.permute.xlu0 %1083 }
0x15e4   :  { %1090 = vst.msk [vmem:[%s4134_s7] sm:$0x20] %vm1089_vm9, %v1084_v35  ;;  %v1373_v42 = vpop.permute.xlu1 %1372 }
0x15e5   :  { %1378 = vst.msk [vmem:[%s4134_s7 + $0x8] sm:$0x8] %vm1376_vm10, %v1373_v42 }
0x15e7   :  { %v1371_v11 = vpop.permute.xlu0 %1370 }
0x15e8   :  { %1377 = vst.msk [vmem:[%s4134_s7] sm:$0x8] %vm1376_vm10, %v1371_v11  ;;  %v1384_v22 = vpop.permute.xlu1 %1383 }
0x15e9   :  { %1389 = vst.msk [vmem:[%s4134_s7 + $0x8] sm:$0x10] %vm1387_vm11, %v1384_v22 }
0x15eb   :  { %v1382_v26 = vpop.permute.xlu0 %1381 }
0x15ec   :  { %1388 = vst.msk [vmem:[%s4134_s7] sm:$0x10] %vm1387_vm11, %v1382_v26  ;;  %v1671_v21 = vpop.permute.xlu1 %1670 }
0x15ed   :  { %1676 = vst.msk [vmem:[%s4134_s7 + $0x8] sm:$0x10] %vm1674_vm12, %v1671_v21 }
0x15ef   :  { %v1669_v28 = vpop.permute.xlu0 %1668 }
0x15f0   :  { %1675 = vst.msk [vmem:[%s4134_s7] sm:$0x10] %vm1674_vm12, %v1669_v28  ;;  %v1682_v30 = vpop.permute.xlu1 %1681 }
0x15f1   :  { %1687 = vst.msk [vmem:[%s4134_s7 + $0x8] sm:$0x8] %vm1685_vm13, %v1682_v30 }
0x15f3   :  { %v1680_v44 = vpop.permute.xlu0 %1679 }
0x15f4   :  { %1686 = vst.msk [vmem:[%s4134_s7] sm:$0x8] %vm1685_vm13, %v1680_v44  ;;  %v1969_v10 = vpop.permute.xlu1 %1968 }
0x15f5   :  { %1974 = vst.msk [vmem:[%s4134_s7 + $0x8] sm:$0x20] %vm1972_vm14, %v1969_v10 }
0x15f7   :  { %v1967_v43 = vpop.permute.xlu0 %1966 }
0x15f8   :  { %1973 = vst.msk [vmem:[%s4134_s7] sm:$0x20] %vm1972_vm14, %v1967_v43  ;;  %v1980_v17 = vpop.permute.xlu1 %1979 }
0x15f9   :  { %1985 = vst.msk [vmem:[%s4134_s7 + $0x8] sm:$0x4] %vm1983_vm15, %v1980_v17 }
0x15fb   :  { %v1978_v25 = vpop.permute.xlu0 %1977 }
0x15fc   :  { %1984 = vst.msk [vmem:[%s4134_s7] sm:$0x4] %vm1983_vm15, %v1978_v25  ;;  %v2266_v29 = vpop.permute.xlu1 %2265 }
0x15fd   :  { %2271 = vst.msk [vmem:[%s4134_s7 + $0x8] sm:$0x40] %vm2269_vm0, %v2266_v29 }
0x15ff   :  { %v2264_v34 = vpop.permute.xlu0 %2263 }
0x1600   :  { %2270 = vst.msk [vmem:[%s4134_s7] sm:$0x40] %vm2269_vm0, %v2264_v34  ;;  %v2277_v23 = vpop.permute.xlu1 %2276 }
0x1601   :  { %2282 = vst.msk [vmem:[%s4134_s7 + $0x8] sm:$0x2] %vm2280_vm1, %v2277_v23 }
0x1603   :  { %v2275_v27 = vpop.permute.xlu0 %2274 }
0x1604   :  { %2281 = vst.msk [vmem:[%s4134_s7] sm:$0x2] %vm2280_vm1, %v2275_v27 }
0x163d   :  { %v2562_v37 = vpop.permute.xlu1 %2561 }
0x163e   :  { %2567 = vst.msk [vmem:[%s4134_s7 + $0x8] sm:$0x80] %vm2565_vm2, %v2562_v37 }
0x1641   :  { %v2573_v20 = vpop.permute.xlu1 %2572 }
0x1642   :  { %2578 = vst.msk [vmem:[%s4134_s7 + $0x8] sm:$0x1] %vm2576_vm3, %v2573_v20 }
0x1644   :  { %v2560_v49 = vpop.permute.xlu0 %2559 }
0x1645   :  { %2566 = vst.msk [vmem:[%s4134_s7] sm:$0x80] %vm2565_vm2, %v2560_v49 }
0x1648   :  { %v2571_v31 = vpop.permute.xlu0 %2570 }
0x1649   :  { %2577 = vst.msk [vmem:[%s4134_s7] sm:$0x1] %vm2576_vm3, %v2571_v31 }

// kernel: lstm_attention_forward.4
= control target key start
LH: loop header
LB: loop body
LE: loop exit
PB: predicated region body
PF: predicated region fallthrough
CT: control target
= control target key end

     0   :  { %vm72_vm0 = vcmask 523264   ;;  %v2460_v40 = vmov 0.0   ;;  %vm282_vm1 = vcmask 130048   ;;  %vm2461_vm2 = vmmov 0   ;;  %s2464_s19 = smov 80   ;;  %s2465_s28 = smov 16   ;;  %s2923_s0 = inlined_call_operand.vmem [shape: f32[2,8,64], index: 0, kind: input, shape index: {}]   ;;  %s2924_s6 = inlined_call_operand.vmem [shape: f32[64,64], index: 6, kind: input, shape index: {}]   ;;  %s2925_s5 = inlined_call_operand.vmem [shape: f32[64,32], index: 5, kind: input, shape index: {}]   ;;  %s2926_s1 = inlined_call_operand.vmem [shape: f32[2,8,64], index: 1, kind: input, shape index: {}]   ;;  %s2927_s3 = inlined_call_operand.vmem [shape: f32[1,64], index: 3, kind: input, shape index: {}]   ;;  %s2928_s4 = inlined_call_operand.vmem [shape: f32[1,64], index: 4, kind: input, shape index: {}]   ;;  %s2929_s7 = inlined_call_operand.vmem [shape: f32[32,64], index: 7, kind: input, shape index: {}]   ;;  %s2930_s11 = inlined_call_operand.vmem [shape: f32[64,64], index: 11, kind: input, shape index: {}]   ;;  %s2931_s10 = inlined_call_operand.vmem [shape: f32[64,32], index: 10, kind: input, shape index: {}]   ;;  %s2932_s2 = inlined_call_operand.vmem [shape: f32[2,8,64], index: 2, kind: input, shape index: {}]   ;;  %s2933_s8 = inlined_call_operand.vmem [shape: f32[1,64], index: 8, kind: input, shape index: {}]   ;;  %s2934_s9 = inlined_call_operand.vmem [shape: f32[1,64], index: 9, kind: input, shape index: {}]   ;;  %s2935_s14 = inlined_call_operand.vmem [shape: f32[2,2,8,8], index: 14, kind: output, shape index: {1}]   ;;  %s2936_s12 = inlined_call_operand.vmem [shape: f32[32,64], index: 12, kind: input, shape index: {}]   ;;  %s2937_s13 = inlined_call_operand.vmem [shape: f32[2,8,64], index: 13, kind: output, shape index: {0}]  }
   0x1   :  { %v2544_v0 = vld [vmem:[%s2923_s0] sm:$0xff]  ;;  %v2549_v1 = vld [vmem:[%s2923_s0 + $0x8] sm:$0xff]  ;;  %v62_v17 = vld [vmem:[%s2924_s6 + $0x10] sm:$0xff]  ;;  %vm435_vm3 = vcmask 64512   ;;  %vm950_vm4 = vcmask 261120  }
   0x2   :  { %v73_v2 = vsel %vm72_vm0, %v2544_v0, 0.0  ;;  %v76_v3 = vsel %vm72_vm0, %v2549_v1, 0.0  ;;  %v60_v14 = vld [vmem:[%s2924_s6] sm:$0xff]  ;;  %v61_v15 = vld [vmem:[%s2924_s6 + $0x8] sm:$0xff]  ;;  %v63_v18 = vld [vmem:[%s2924_s6 + $0x18] sm:$0xff] }
   0x3   :  { %74 = vadd.xlane.f32.xlu0 %v73_v2  ;;  %v2350_v16 = vpack.c.bf16 %v61_v15, %v60_v14  ;;  %v52_v19 = vld [vmem:[%s2925_s5] sm:$0xff]  ;;  %v2354_v20 = vpack.c.bf16 %v63_v18, %v62_v17  ;;  %v53_v21 = vld [vmem:[%s2925_s5 + $0x8] sm:$0xff]  ;;  %v54_v25 = vld [vmem:[%s2925_s5 + $0x10] sm:$0xff] }
   0x4   :  { %v2334_v22 = vpack.c.bf16 %v53_v21, %v52_v19  ;;  %v64_v23 = vld [vmem:[%s2924_s6 + $0x20] sm:$0xff]  ;;  %v65_v24 = vld [vmem:[%s2924_s6 + $0x28] sm:$0xff]  ;;  %v55_v27 = vld [vmem:[%s2925_s5 + $0x18] sm:$0xff] }
   0x5   :  { %2351 = vmatprep.subr.bf16.mxu1 %v2350_v16  ;;  %v2358_v26 = vpack.c.bf16 %v65_v24, %v64_v23  ;;  %v66_v28 = vld [vmem:[%s2924_s6 + $0x30] sm:$0xff]  ;;  %v67_v29 = vld [vmem:[%s2924_s6 + $0x38] sm:$0xff]  ;;  %v2338_v30 = vpack.c.bf16 %v55_v27, %v54_v25  ;;  %v56_v31 = vld [vmem:[%s2925_s5 + $0x20] sm:$0xff] }
   0x6   :  { %2353 = vmatpush3.bf16.msra.mxu1 %v2350_v16  ;;  %2335 = vmatprep.subr.bf16.mxu0 %v2334_v22  ;;  %v57_v32 = vld [vmem:[%s2925_s5 + $0x28] sm:$0xff]  ;;  %v48_v33 = vld [vmem:[%s2926_s1] sm:$0xff]  ;;  %v2362_v34 = vpack.c.bf16 %v67_v29, %v66_v28  ;;  %v58_v36 = vld [vmem:[%s2925_s5 + $0x30] sm:$0xff] }
   0x7   :  { %77 = vadd.xlane.f32.xlu0 %v76_v3  ;;  %2355 = vmatprep.subr.bf16.mxu1 %v2354_v20  ;;  %v2342_v35 = vpack.c.bf16 %v57_v32, %v56_v31  ;;  %v59_v37 = vld [vmem:[%s2925_s5 + $0x38] sm:$0xff]  ;;  %v49_v39 = vld [vmem:[%s2926_s1 + $0x8] sm:$0xff]  ;;  %v2030_v48 = vld [vmem:[%s2927_s3] ss:$0 sm:$0xff]  ;;  %s2462_s3 = smov 96  }
   0x8   :  { %2337 = vmatpush3.bf16.msra.mxu0 %v2334_v22  ;;  %2191 = vmatprep.mubr.msk.f32.mxu1 %vm72_vm0, %v48_v33  ;;  %v2346_v38 = vpack.c.bf16 %v59_v37, %v58_v36  ;;  %v2031_v50 = vld [vmem:[%s2928_s4] ss:$0 sm:$0xff]  ;;  %s2463_s4 = smov 112  }
   0x9   :  { %2339 = vmatprep.subr.bf16.mxu0 %v2338_v30 }
   0xa   :  { %2357 = vmatpush3.bf16.msra.mxu1 %v2354_v20 }
   0xb   :  { %2359 = vmatprep.subr.bf16.mxu1 %v2358_v26 }
   0xc   :  { %2341 = vmatpush3.bf16.msra.mxu0 %v2338_v30 }
   0xd   :  { %2343 = vmatprep.subr.bf16.mxu0 %v2342_v35 }
   0xe   :  { %2361 = vmatpush3.bf16.msra.mxu1 %v2358_v26 }
   0xf   :  { %2363 = vmatprep.subr.bf16.mxu1 %v2362_v34 }
  0x10   :  { %2345 = vmatpush3.bf16.msra.mxu0 %v2342_v35 }
  0x11   :  { %2347 = vmatprep.subr.bf16.mxu0 %v2346_v38 }
  0x12   :  { %2365 = vmatpush3.bf16.msra.mxu1 %v2362_v34 }
  0x13   :  { %2194 = vmatprep.subr.mxu1 %v2460_v40 }
  0x14   :  { %2349 = vmatpush3.bf16.msra.mxu0 %v2346_v38 }
  0x15   :  { %2192 = vmatmul.mubr.msk.f32.vlgmr.msra.gmra.mrb[0].mxu1 %vm72_vm0, %v49_v39  ;;  %2204 = vmatprep.subr.mxu0 %v2460_v40 }
  0x16   :  { %2196 = vmatprep.mubr.msk.f32.mxu1 %vm2461_vm2, %v2460_v40 }
  0x90   :  { %v75_v4 = vpop.xlane.xlu0 %74 }
  0x91   :  { %v80_v5 = vmul.f32 0.015625, %v75_v4 }
  0x93   :  { %v2556_v6 = vsub.f32 %v2544_v0, %v80_v5 }
  0x94   :  { %v78_v7 = vpop.xlane.xlu0 %77 }
  0x95   :  { %v81_v8 = vmul.f32 0.015625, %v78_v7  ;;  %v84_v9 = vmul.f32 %v2556_v6, %v2556_v6 }
  0x97   :  { %v2561_v10 = vsub.f32 %v2549_v1, %v81_v8  ;;  %v86_v11 = vsel %vm72_vm0, %v84_v9, 0.0 }
  0x98   :  { %87 = vadd.xlane.f32.xlu1 %v86_v11 }
  0x99   :  { %v85_v12 = vmul.f32 %v2561_v10, %v2561_v10 }
  0x9b   :  { %v89_v13 = vsel %vm72_vm0, %v85_v12, 0.0 }
  0x9c   :  { %90 = vadd.xlane.f32.xlu1 %v89_v13 }
  0xe8   :  { %v2193_v57 = vpop.f32.mrb[0].mxu1 }
  0xe9   :  { %v271_v58 = vpop.f32.mrb[1].mxu1  ;;  %v2644_v63 = vmax.f32 %v2193_v57, 0.0 }
  0xea   :  { %v2635_v59 = vmax.f32 %v271_v58, 0.0 }
  0xec   :  { %2195 = vmatpush3.xpose.msk.msra.mxu1 %vm282_vm1, %v2635_v59 }
  0xed   :  { %2199 = vmatprep.subr.mxu1 %v2460_v40 }
 0x125   :  { %v88_v41 = vpop.xlane.xlu1 %87 }
 0x126   :  { %v92_v42 = vmul.f32 0.015625, %v88_v41 }
 0x128   :  { %v94_v43 = vadd.f32 1e-06, %v92_v42 }
 0x129   :  { %v91_v44 = vpop.xlane.xlu1 %90 }
 0x12a   :  { %2420 = vrsqrt.f32 %v94_v43  ;;  %v93_v45 = vmul.f32 0.015625, %v91_v44 }
 0x12c   :  { %v95_v46 = vadd.f32 1e-06, %v93_v45 }
 0x12e   :  { %2422 = vrsqrt.f32 %v95_v46 }
 0x134   :  { %v2421_v47 = vpop.eup %2420 }
 0x135   :  { %v98_v49 = vmul.f32 %v2421_v47, %v2556_v6 }
 0x137   :  { %v106_v51 = vmul.f32 %v2030_v48, %v98_v49 }
 0x138   :  { %v2423_v52 = vpop.eup %2422 }
 0x139   :  { %v99_v53 = vmul.f32 %v2423_v52, %v2561_v10  ;;  %v114_v54 = vadd.f32 %v2031_v50, %v106_v51 }
 0x13b   :  { %v107_v55 = vmul.f32 %v2030_v48, %v99_v53  ;;  %2172 = vmatprep.mubr.msk.f32.mxu0 %vm72_vm0, %v114_v54 }
 0x13d   :  { %v115_v56 = vadd.f32 %v2031_v50, %v107_v55 }
 0x13f   :  { %2173 = vmatmul.mubr.msk.f32.vlgmr.msra.gmra.mrb[0].mxu0 %vm72_vm0, %v115_v56 }
 0x140   :  { %2206 = vmatprep.mubr.msk.f32.mxu0 %vm2461_vm2, %v2460_v40 }
 0x212   :  { %v2174_v60 = vpop.f32.mrb[0].mxu0 }
 0x213   :  { %v188_v61 = vpop.f32.mrb[1].mxu0  ;;  %v198_v2 = vmax.f32 %v2174_v60, 0.0 }
 0x214   :  { %v197_v62 = vmax.f32 %v188_v61, 0.0  ;;  %v68_v61 = vld [vmem:[%s2929_s7] sm:$0xff] }
 0x216   :  { %2197 = vmatmul.mubr.msk.f32.vlgmr.msra.gmra.mrb[2].mxu1 %vm282_vm1, %v197_v62 }
 0x217   :  { %2200 = vmatpush3.xpose.msk.msra.mxu1 %vm282_vm1, %v2644_v63  ;;  %2201 = vmatprep.mubr.msk.f32.mxu1 %vm2461_vm2, %v2460_v40 }
 0x218   :  { %2209 = vmatprep.subr.mxu1 %v2460_v40 }
 0x21a   :  { %2202 = vmatmul.mubr.msk.f32.vlgmr.msra.gmra.mrb[4].mxu1 %vm282_vm1, %v198_v2 }
 0x21b   :  { %2211 = vmatprep.mubr.msk.f32.mxu1 %vm2461_vm2, %v2460_v40 }
 0x2e9   :  { %v355_v3 = vpop.f32.mrb[2].mxu1 }
 0x2ea   :  { %v2198_v4 = vpop.f32.mrb[3].mxu1  ;;  %v436_v5 = vsel %vm435_vm3, %v355_v3, -inf }
 0x2eb   :  { %437 = vmax.xlane.f32.xlu0 %v436_v5 }
 0x2ed   :  { %v431_v6 = vpop.f32.mrb[4].mxu1 }
 0x2ee   :  { %v2203_v7 = vpop.f32.mrb[5].mxu1  ;;  %v439_v8 = vsel %vm435_vm3, %v431_v6, -inf }
 0x2ef   :  { %440 = vmax.xlane.f32.xlu1 %v439_v8 }
 0x300   :  { %534 = vrot.lane.b32.xlu1 %v2644_v63, %s2462_s3 }
 0x301   :  { %458 = vrot.lane.b32.xlu0 %v2635_v59, %s2462_s3 }
 0x304   :  { %612 = vrot.lane.b32.xlu1 %v2635_v59, %s2463_s4 }
 0x308   :  { %690 = vrot.lane.b32.xlu1 %v2644_v63, %s2463_s4 }
 0x378   :  { %v438_v9 = vpop.xlane.xlu0 %437 }
 0x379   :  { %v442_v10 = vsub.f32 %v355_v3, %v438_v9 }
 0x37b   :  { %v444_v11 = vmul.f32 1.442695, %v442_v10 }
 0x37c   :  { %v459_v12 = vpop.permute.xlu0 %458  ;;  %v441_v13 = vpop.xlane.xlu1 %440 }
 0x37d   :  { %2424 = vpow2.f32 %v444_v11  ;;  %v443_v14 = vsub.f32 %v431_v6, %v441_v13  ;;  %2205 = vmatpush3.msra.mxu0 %v459_v12 }
 0x37e   :  { %2214 = vmatprep.subr.mxu0 %v2460_v40 }
 0x37f   :  { %v446_v15 = vmul.f32 1.442695, %v443_v14 }
 0x380   :  { %v535_v16 = vpop.permute.xlu1 %534 }
 0x381   :  { %2426 = vpow2.f32 %v446_v15  ;;  %2210 = vmatpush3.msra.mxu1 %v535_v16 }
 0x382   :  { %2219 = vmatprep.subr.mxu1 %v2460_v40 }
 0x384   :  { %v613_v21 = vpop.permute.xlu1 %612 }
 0x387   :  { %v2425_v17 = vpop.eup %2424 }
 0x388   :  { %v448_v18 = vsel %vm435_vm3, %v2425_v17, 0.0  ;;  %v691_v22 = vpop.permute.xlu1 %690 }
 0x389   :  { %449 = vadd.xlane.f32.xlu0 %v448_v18 }
 0x38b   :  { %v2427_v19 = vpop.eup %2426 }
 0x38c   :  { %v451_v20 = vsel %vm435_vm3, %v2427_v19, 0.0 }
 0x38d   :  { %452 = vadd.xlane.f32.xlu1 %v451_v20 }
 0x39e   :  { %688 = vrot.lane.b32.xlu1 %v198_v2, %s2463_s4  ;;  %v71_v2 = vld [vmem:[%s2929_s7 + $0x18] sm:$0xff] }
 0x39f   :  { %610 = vrot.lane.b32.xlu0 %v197_v62, %s2463_s4 }
 0x416   :  { %v450_v23 = vpop.xlane.xlu0 %449 }
 0x417   :  { %2428 = vrcp.f32 %v450_v23 }
 0x41a   :  { %v453_v24 = vpop.xlane.xlu1 %452  ;;  %v611_v29 = vpop.permute.xlu0 %610 }
 0x41b   :  { %2430 = vrcp.f32 %v453_v24 }
 0x41e   :  { %v689_v30 = vpop.permute.xlu1 %688 }
 0x421   :  { %v2429_v25 = vpop.eup %2428 }
 0x422   :  { %v455_v26 = vmul.f32 %v2429_v25, %v2425_v17 }
 0x424   :  { %2207 = vmatmul.mubr.msk.f32.vlgmr.msra.gmra.mrb[2].mxu0 %vm435_vm3, %v455_v26  ;;  %v1046_v26 = vld [vmem:[%s2930_s11] sm:$0xff] }
 0x425   :  { %v2431_v27 = vpop.eup %2430  ;;  %2215 = vmatpush3.xpose.msk.msra.mxu0 %vm282_vm1, %v613_v21  ;;  %2216 = vmatprep.mubr.msk.f32.mxu0 %vm2461_vm2, %v2460_v40 }
 0x426   :  { %v457_v28 = vmul.f32 %v2431_v27, %v2427_v19  ;;  %2224 = vmatprep.subr.mxu0 %v2460_v40  ;;  %v1047_v27 = vld [vmem:[%s2930_s11 + $0x8] sm:$0xff] }
 0x428   :  { %2212 = vmatmul.mubr.msk.f32.vlgmr.msra.gmra.mrb[6].mxu1 %vm435_vm3, %v457_v28  ;;  %2217 = vmatmul.mubr.msk.f32.vlgmr.msra.gmra.mrb[4].mxu0 %vm282_vm1, %v611_v29  ;;  %v2390_v28 = vpack.c.bf16 %v1047_v27, %v1046_v26  ;;  %v1048_v29 = vld [vmem:[%s2930_s11 + $0x10] sm:$0xff] }
 0x429   :  { %2220 = vmatpush3.xpose.msk.msra.mxu1 %vm282_vm1, %v691_v22  ;;  %2221 = vmatprep.mubr.msk.f32.mxu1 %vm2461_vm2, %v2460_v40 }
 0x42a   :  { %2229 = vmatprep.subr.mxu1 %v2460_v40  ;;  %2226 = vmatprep.mubr.msk.f32.mxu0 %vm2461_vm2, %v2460_v40 }
 0x42c   :  { %2222 = vmatmul.mubr.msk.f32.vlgmr.msra.gmra.mrb[8].mxu1 %vm282_vm1, %v689_v30  ;;  %v1049_v30 = vld [vmem:[%s2930_s11 + $0x18] sm:$0xff] }
 0x42d   :  { %2231 = vmatprep.mubr.msk.f32.mxu1 %vm2461_vm2, %v2460_v40 }
 0x4f7   :  { %v2687_v31 = vpop.f32.mrb[2].mxu0 }
 0x4f8   :  { %v2208_v32 = vpop.f32.mrb[3].mxu0 }
 0x4f9   :  { %v2394_v32 = vpack.c.bf16 %v1049_v30, %v1048_v29 }
 0x4fb   :  { %v2689_v33 = vpop.f32.mrb[6].mxu1  ;;  %v684_v34 = vpop.f32.mrb[4].mxu0 }
 0x4fc   :  { %v2213_v35 = vpop.f32.mrb[7].mxu1  ;;  %v2218_v36 = vpop.f32.mrb[5].mxu0  ;;  %v766_v37 = vsel %vm435_vm3, %v684_v34, -inf }
 0x4fd   :  { %767 = vmax.xlane.f32.xlu0 %v766_v37  ;;  %v1050_v35 = vld [vmem:[%s2930_s11 + $0x20] sm:$0xff]  ;;  %v1051_v36 = vld [vmem:[%s2930_s11 + $0x28] sm:$0xff]  ;;  %v1040_v37 = vld [vmem:[%s2931_s10 + $0x10] sm:$0xff] }
 0x4ff   :  { %v762_v38 = vpop.f32.mrb[8].mxu1 }
 0x500   :  { %v2223_v39 = vpop.f32.mrb[9].mxu1  ;;  %v769_v41 = vsel %vm435_vm3, %v762_v38, -inf }
 0x501   :  { %770 = vmax.xlane.f32.xlu1 %v769_v41  ;;  %v1041_v39 = vld [vmem:[%s2931_s10 + $0x18] sm:$0xff] }
 0x502   :  { %v2378_v41 = vpack.c.bf16 %v1041_v39, %v1040_v37 }
 0x512   :  { %864 = vrot.lane.b32.xlu1 %v2644_v63, %s2464_s19  ;;  %v70_v63 = vld [vmem:[%s2929_s7 + $0x10] sm:$0xff] }
 0x513   :  { %v2370_v3 = vpack.c.bf16 %v71_v2, %v70_v63 }
 0x58a   :  { %v768_v42 = vpop.xlane.xlu0 %767 }
 0x58b   :  { %v772_v43 = vsub.f32 %v684_v34, %v768_v42  ;;  %v1052_v42 = vld [vmem:[%s2930_s11 + $0x30] sm:$0xff] }
 0x58d   :  { %v774_v44 = vmul.f32 1.442695, %v772_v43  ;;  %v1053_v43 = vld [vmem:[%s2930_s11 + $0x38] sm:$0xff] }
 0x58e   :  { %v771_v45 = vpop.xlane.xlu1 %770 }
 0x58f   :  { %2432 = vpow2.f32 %v774_v44  ;;  %v773_v46 = vsub.f32 %v762_v38, %v771_v45  ;;  %v2398_v38 = vpack.c.bf16 %v1051_v36, %v1050_v35  ;;  %v1042_v44 = vld [vmem:[%s2931_s10 + $0x20] sm:$0xff]  ;;  %v2402_v45 = vpack.c.bf16 %v1053_v43, %v1052_v42 }
 0x591   :  { %v776_v47 = vmul.f32 1.442695, %v773_v46  ;;  %v1043_v46 = vld [vmem:[%s2931_s10 + $0x28] sm:$0xff] }
 0x592   :  { %v865_v48 = vpop.permute.xlu1 %864 }
 0x593   :  { %2434 = vpow2.f32 %v776_v47  ;;  %2230 = vmatpush3.msra.mxu1 %v865_v48  ;;  %v2382_v47 = vpack.c.bf16 %v1043_v46, %v1042_v44  ;;  %v1044_v48 = vld [vmem:[%s2931_s10 + $0x30] sm:$0xff] }
 0x599   :  { %v2433_v49 = vpop.eup %2432 }
 0x59a   :  { %v778_v50 = vsel %vm435_vm3, %v2433_v49, 0.0 }
 0x59b   :  { %779 = vadd.xlane.f32.xlu0 %v778_v50  ;;  %v1034_v50 = vld [vmem:[%s2932_s2] sm:$0xff] }
 0x59d   :  { %v2435_v51 = vpop.eup %2434 }
 0x59e   :  { %v781_v52 = vsel %vm435_vm3, %v2435_v51, 0.0 }
 0x59f   :  { %782 = vadd.xlane.f32.xlu0 %v781_v52 }
 0x5b5   :  { %788 = vrot.lane.b32.xlu0 %v2635_v59, %s2464_s19  ;;  %v69_v59 = vld [vmem:[%s2929_s7 + $0x8] sm:$0xff] }
 0x5b6   :  { %v2366_v62 = vpack.c.bf16 %v69_v59, %v68_v61  ;;  %v2050_v61 = vld [vmem:[%s2933_s8] ss:$0 sm:$0xff] }
 0x628   :  { %v780_v53 = vpop.xlane.xlu0 %779 }
 0x629   :  { %2436 = vrcp.f32 %v780_v53 }
 0x62c   :  { %v783_v54 = vpop.xlane.xlu0 %782 }
 0x62d   :  { %2438 = vrcp.f32 %v783_v54 }
 0x630   :  { %v789_v55 = vpop.permute.xlu0 %788 }
 0x631   :  { %2225 = vmatpush3.msra.mxu0 %v789_v55 }
 0x632   :  { %2367 = vmatprep.subr.bf16.mxu0 %v2366_v62 }
 0x633   :  { %v2437_v56 = vpop.eup %2436 }
 0x634   :  { %v785_v57 = vmul.f32 %v2437_v56, %v2433_v49  ;;  %v1045_v49 = vld [vmem:[%s2931_s10 + $0x38] sm:$0xff] }
 0x635   :  { %v2386_v52 = vpack.c.bf16 %v1045_v49, %v1044_v48 }
 0x636   :  { %2227 = vmatmul.mubr.msk.f32.vlgmr.msra.gmra.mrb[6].mxu0 %vm435_vm3, %v785_v57 }
 0x637   :  { %v2439_v58 = vpop.eup %2438  ;;  %2369 = vmatpush3.bf16.msra.mxu0 %v2366_v62  ;;  %v2051_v62 = vld [vmem:[%s2934_s9] ss:$0 sm:$0xff] }
 0x638   :  { %v787_v60 = vmul.f32 %v2439_v58, %v2435_v51  ;;  %2371 = vmatprep.subr.bf16.mxu0 %v2370_v3  ;;  %v1035_v51 = vld [vmem:[%s2932_s2 + $0x8] sm:$0xff] }
 0x63a   :  { %2232 = vmatmul.mubr.msk.f32.vlgmr.msra.gmra.mrb[10].mxu1 %vm435_vm3, %v787_v60 }
 0x63b   :  { %2373 = vmatpush3.bf16.msra.mxu0 %v2370_v3 }
 0x63c   :  { %2391 = vmatprep.subr.bf16.mxu0 %v2390_v28 }
 0x709   :  { %v860_v4 = vpop.f32.mrb[6].mxu0 }
 0x70a   :  { %942 = vrot.lane.b32.xlu1 %v860_v4, %s2465_s28  ;;  %v2228_v5 = vpop.f32.mrb[7].mxu0 }
 0x70d   :  { %v936_v6 = vpop.f32.mrb[10].mxu1 }
 0x70e   :  { %944 = vrot.lane.b32.xlu1 %v936_v6, %s2465_s28  ;;  %v2233_v7 = vpop.f32.mrb[11].mxu1 }
 0x77c   :  { %v943_v8 = vpop.permute.xlu1 %942 }
 0x77d   :  { %v948_v9 = vsel %vm282_vm1, %v2687_v31, %v943_v8  ;;  %v1038_v31 = vld [vmem:[%s2931_s10] sm:$0xff] }
 0x77e   :  { %2242 = vmatprep.mubr.msk.f32.mxu0 %vm950_vm4, %v948_v9 }
 0x780   :  { %v945_v10 = vpop.permute.xlu1 %944 }
 0x781   :  { %v949_v11 = vsel %vm282_vm1, %v2689_v33, %v945_v10  ;;  %v1039_v33 = vld [vmem:[%s2931_s10 + $0x8] sm:$0xff] }
 0x782   :  { %2243 = vmatmul.mubr.msk.f32.vlgmr.msra.gmra.mrb[8].mxu0 %vm950_vm4, %v949_v11  ;;  %v2374_v34 = vpack.c.bf16 %v1039_v33, %v1038_v31 }
 0x783   :  { %2393 = vmatpush3.bf16.msra.mxu0 %v2390_v28  ;;  %2280 = vmatprep.mubr.msk.f32.mxu0 %vm72_vm0, %v1034_v50 }
 0x784   :  { %2395 = vmatprep.subr.bf16.mxu0 %v2394_v32  ;;  %2375 = vmatprep.subr.bf16.mxu1 %v2374_v34 }
 0x785   :  { %2377 = vmatpush3.bf16.msra.mxu1 %v2374_v34 }
 0x786   :  { %2379 = vmatprep.subr.bf16.mxu1 %v2378_v41 }
 0x787   :  { %2397 = vmatpush3.bf16.msra.mxu0 %v2394_v32 }
 0x788   :  { %2399 = vmatprep.subr.bf16.mxu0 %v2398_v38 }
 0x789   :  { %2381 = vmatpush3.bf16.msra.mxu1 %v2378_v41 }
 0x78a   :  { %2383 = vmatprep.subr.bf16.mxu1 %v2382_v47 }
 0x78b   :  { %2401 = vmatpush3.bf16.msra.mxu0 %v2398_v38 }
 0x78c   :  { %2403 = vmatprep.subr.bf16.mxu0 %v2402_v45 }
 0x78d   :  { %2385 = vmatpush3.bf16.msra.mxu1 %v2382_v47 }
 0x78e   :  { %2387 = vmatprep.subr.bf16.mxu1 %v2386_v52 }
 0x78f   :  { %2405 = vmatpush3.bf16.msra.mxu0 %v2402_v45 }
 0x790   :  { %2293 = vmatprep.subr.mxu0 %v2460_v40 }
 0x791   :  { %2389 = vmatpush3.bf16.msra.mxu1 %v2386_v52 }
 0x792   :  { %2281 = vmatmul.mubr.msk.f32.vlgmr.msra.gmra.mrb[10].mxu0 %vm72_vm0, %v1035_v51  ;;  %2283 = vmatprep.subr.mxu1 %v2460_v40 }
 0x793   :  { %2295 = vmatprep.mubr.msk.f32.mxu0 %vm2461_vm2, %v2460_v40 }
 0x855   :  { %v2244_v12 = vpop.f32.mrb[8].mxu0 }
 0x856   :  { %v2722_v13 = vadd.f32 %v2244_v12, %v2549_v1  ;;  %v1023_v14 = vpop.f32.mrb[9].mxu0 }
 0x857   :  { %v2725_v15 = vadd.f32 %v1023_v14, %v2544_v0 }
 0x858   :  { %v1061_v16 = vsel %vm72_vm0, %v2722_v13, 0.0 }
 0x859   :  { %1062 = vadd.xlane.f32.xlu1 %v1061_v16  ;;  %v1058_v17 = vsel %vm72_vm0, %v2725_v15, 0.0 }
 0x85a   :  { %1059 = vadd.xlane.f32.xlu0 %v1058_v17 }
 0x865   :  { %v2282_v7 = vpop.f32.mrb[10].mxu0 }
 0x866   :  { %v1255_v8 = vpop.f32.mrb[11].mxu0  ;;  %v2820_v14 = vmax.f32 %v2282_v7, 0.0 }
 0x867   :  { %v2815_v9 = vmax.f32 %v1255_v8, 0.0 }
 0x8e6   :  { %v1063_v18 = vpop.xlane.xlu1 %1062 }
 0x8e7   :  { %v1065_v19 = vmul.f32 0.015625, %v1063_v18  ;;  %v1060_v20 = vpop.xlane.xlu0 %1059 }
 0x8e8   :  { %v1064_v21 = vmul.f32 0.015625, %v1060_v20 }
 0x8e9   :  { %v2732_v22 = vsub.f32 %v2722_v13, %v1065_v19 }
 0x8ea   :  { %v2735_v1 = vsub.f32 %v2725_v15, %v1064_v21 }
 0x8eb   :  { %v1069_v24 = vmul.f32 %v2732_v22, %v2732_v22 }
 0x8ec   :  { %v1068_v0 = vmul.f32 %v2735_v1, %v2735_v1 }
 0x8ed   :  { %v1073_v25 = vsel %vm72_vm0, %v1069_v24, 0.0 }
 0x8ee   :  { %v1070_v23 = vsel %vm72_vm0, %v1068_v0, 0.0 }
 0x8ef   :  { %1071 = vadd.xlane.f32.xlu0 %v1070_v23 }
 0x8f3   :  { %1074 = vadd.xlane.f32.xlu0 %v1073_v25 }
 0x97c   :  { %v1072_v53 = vpop.xlane.xlu0 %1071 }
 0x97d   :  { %v1076_v54 = vmul.f32 0.015625, %v1072_v53 }
 0x97f   :  { %v1078_v55 = vadd.f32 1e-06, %v1076_v54 }
 0x980   :  { %v1075_v56 = vpop.xlane.xlu0 %1074 }
 0x981   :  { %2440 = vrsqrt.f32 %v1078_v55  ;;  %v1077_v57 = vmul.f32 0.015625, %v1075_v56 }
 0x983   :  { %v1079_v58 = vadd.f32 1e-06, %v1077_v57 }
 0x985   :  { %2442 = vrsqrt.f32 %v1079_v58 }
 0x98b   :  { %v2441_v60 = vpop.eup %2440 }
 0x98c   :  { %v1082_v59 = vmul.f32 %v2441_v60, %v2735_v1 }
 0x98e   :  { %v1090_v63 = vmul.f32 %v2050_v61, %v1082_v59 }
 0x98f   :  { %v2443_v2 = vpop.eup %2442 }
 0x990   :  { %v1083_v3 = vmul.f32 %v2443_v2, %v2732_v22  ;;  %v1098_v4 = vadd.f32 %v2051_v62, %v1090_v63 }
 0x992   :  { %v1091_v5 = vmul.f32 %v2050_v61, %v1083_v3  ;;  %2261 = vmatprep.mubr.msk.f32.mxu1 %vm72_vm0, %v1098_v4 }
 0x994   :  { %v1099_v6 = vadd.f32 %v2051_v62, %v1091_v5 }
 0x996   :  { %2262 = vmatmul.mubr.msk.f32.vlgmr.msra.gmra.mrb[12].mxu1 %vm72_vm0, %v1099_v6 }
 0x997   :  { %2285 = vmatprep.mubr.msk.f32.mxu1 %vm2461_vm2, %v2460_v40  ;;  %2284 = vmatpush3.xpose.msk.msra.mxu1 %vm282_vm1, %v2815_v9 }
 0x998   :  { %2288 = vmatprep.subr.mxu1 %v2460_v40 }
 0xa69   :  { %v2263_v10 = vpop.f32.mrb[12].mxu1 }
 0xa6a   :  { %v1172_v11 = vpop.f32.mrb[13].mxu1  ;;  %v1182_v16 = vmax.f32 %v2263_v10, 0.0  ;;  %v1054_v10 = vld [vmem:[%s2936_s12] sm:$0xff] }
 0xa6b   :  { %v1181_v12 = vmax.f32 %v1172_v11, 0.0 }
 0xa6d   :  { %2286 = vmatmul.mubr.msk.f32.vlgmr.msra.gmra.mrb[14].mxu1 %vm282_vm1, %v1181_v12 }
 0xa6e   :  { %2289 = vmatpush3.xpose.msk.msra.mxu1 %vm282_vm1, %v2820_v14  ;;  %2290 = vmatprep.mubr.msk.f32.mxu1 %vm2461_vm2, %v2460_v40 }
 0xa6f   :  { %2298 = vmatprep.subr.mxu1 %v2460_v40 }
 0xa71   :  { %2291 = vmatmul.mubr.msk.f32.vlgmr.msra.gmra.mrb[16].mxu1 %vm282_vm1, %v1182_v16 }
 0xa72   :  { %2300 = vmatprep.mubr.msk.f32.mxu1 %vm2461_vm2, %v2460_v40 }
 0xb40   :  { %v1338_v17 = vpop.f32.mrb[14].mxu1 }
 0xb41   :  { %2017 = vst.msk [vmem:[%s2935_s14] sm:$0xff] %vm435_vm3, %v1338_v17  ;;  %v2287_v18 = vpop.f32.mrb[15].mxu1  ;;  %v1418_v19 = vsel %vm435_vm3, %v1338_v17, -inf }
 0xb42   :  { %1419 = vmax.xlane.f32.xlu0 %v1418_v19 }
 0xb44   :  { %v1414_v20 = vpop.f32.mrb[16].mxu1 }
 0xb45   :  { %2018 = vst.msk [vmem:[%s2935_s14 + $0x10] sm:$0xff] %vm435_vm3, %v1414_v20  ;;  %v2292_v21 = vpop.f32.mrb[17].mxu1  ;;  %v1421_v22 = vsel %vm435_vm3, %v1414_v20, -inf }
 0xb46   :  { %1422 = vmax.xlane.f32.xlu1 %v1421_v22 }
 0xb57   :  { %1516 = vrot.lane.b32.xlu1 %v2820_v14, %s2462_s3 }
 0xb58   :  { %1440 = vrot.lane.b32.xlu0 %v2815_v9, %s2462_s3 }
 0xb5b   :  { %1594 = vrot.lane.b32.xlu1 %v2815_v9, %s2463_s4 }
 0xb5f   :  { %1672 = vrot.lane.b32.xlu1 %v2820_v14, %s2463_s4 }
 0xbcf   :  { %v1420_v1 = vpop.xlane.xlu0 %1419 }
 0xbd0   :  { %v1424_v0 = vsub.f32 %v1338_v17, %v1420_v1 }
 0xbd2   :  { %v1426_v23 = vmul.f32 1.442695, %v1424_v0 }
 0xbd3   :  { %v1441_v24 = vpop.permute.xlu0 %1440  ;;  %v1423_v25 = vpop.xlane.xlu1 %1422 }
 0xbd4   :  { %2444 = vpow2.f32 %v1426_v23  ;;  %v1425_v26 = vsub.f32 %v1414_v20, %v1423_v25  ;;  %2294 = vmatpush3.msra.mxu0 %v1441_v24 }
 0xbd5   :  { %2303 = vmatprep.subr.mxu0 %v2460_v40 }
 0xbd6   :  { %v1428_v27 = vmul.f32 1.442695, %v1425_v26 }
 0xbd7   :  { %v1517_v28 = vpop.permute.xlu1 %1516 }
 0xbd8   :  { %2446 = vpow2.f32 %v1428_v27  ;;  %2299 = vmatpush3.msra.mxu1 %v1517_v28 }
 0xbd9   :  { %2308 = vmatprep.subr.mxu1 %v2460_v40 }
 0xbdb   :  { %v1595_v33 = vpop.permute.xlu1 %1594 }
 0xbde   :  { %v2445_v29 = vpop.eup %2444 }
 0xbdf   :  { %v1430_v30 = vsel %vm435_vm3, %v2445_v29, 0.0  ;;  %v1673_v34 = vpop.permute.xlu1 %1672 }
 0xbe0   :  { %1431 = vadd.xlane.f32.xlu0 %v1430_v30 }
 0xbe2   :  { %v2447_v31 = vpop.eup %2446 }
 0xbe3   :  { %v1433_v32 = vsel %vm435_vm3, %v2447_v31, 0.0 }
 0xbe4   :  { %1434 = vadd.xlane.f32.xlu1 %v1433_v32 }
 0xbf5   :  { %1670 = vrot.lane.b32.xlu1 %v1182_v16, %s2463_s4 }
 0xbf6   :  { %1592 = vrot.lane.b32.xlu0 %v1181_v12, %s2463_s4  ;;  %v1056_v12 = vld [vmem:[%s2936_s12 + $0x10] sm:$0xff] }
 0xc6d   :  { %v1432_v35 = vpop.xlane.xlu0 %1431 }
 0xc6e   :  { %2448 = vrcp.f32 %v1432_v35 }
 0xc71   :  { %v1435_v36 = vpop.xlane.xlu1 %1434  ;;  %v1593_v42 = vpop.permute.xlu0 %1592 }
 0xc72   :  { %2450 = vrcp.f32 %v1435_v36 }
 0xc75   :  { %v1671_v43 = vpop.permute.xlu1 %1670 }
 0xc78   :  { %v2449_v37 = vpop.eup %2448 }
 0xc79   :  { %v1437_v38 = vmul.f32 %v2449_v37, %v2445_v29 }
 0xc7b   :  { %2296 = vmatmul.mubr.msk.f32.vlgmr.msra.gmra.mrb[12].mxu0 %vm435_vm3, %v1437_v38 }
 0xc7c   :  { %v2451_v39 = vpop.eup %2450  ;;  %2304 = vmatpush3.xpose.msk.msra.mxu0 %vm282_vm1, %v1595_v33  ;;  %2305 = vmatprep.mubr.msk.f32.mxu0 %vm2461_vm2, %v2460_v40 }
 0xc7d   :  { %v1439_v41 = vmul.f32 %v2451_v39, %v2447_v31  ;;  %2313 = vmatprep.subr.mxu0 %v2460_v40 }
 0xc7f   :  { %2301 = vmatmul.mubr.msk.f32.vlgmr.msra.gmra.mrb[18].mxu1 %vm435_vm3, %v1439_v41  ;;  %2306 = vmatmul.mubr.msk.f32.vlgmr.msra.gmra.mrb[14].mxu0 %vm282_vm1, %v1593_v42 }
 0xc80   :  { %2309 = vmatpush3.xpose.msk.msra.mxu1 %vm282_vm1, %v1673_v34  ;;  %2310 = vmatprep.mubr.msk.f32.mxu1 %vm2461_vm2, %v2460_v40 }
 0xc81   :  { %2318 = vmatprep.subr.mxu1 %v2460_v40  ;;  %2315 = vmatprep.mubr.msk.f32.mxu0 %vm2461_vm2, %v2460_v40 }
 0xc83   :  { %2311 = vmatmul.mubr.msk.f32.vlgmr.msra.gmra.mrb[20].mxu1 %vm282_vm1, %v1671_v43 }
 0xc84   :  { %2320 = vmatprep.mubr.msk.f32.mxu1 %vm2461_vm2, %v2460_v40 }
 0xd4e   :  { %v2871_v44 = vpop.f32.mrb[12].mxu0 }
 0xd4f   :  { %v2297_v45 = vpop.f32.mrb[13].mxu0 }
 0xd52   :  { %v2873_v46 = vpop.f32.mrb[18].mxu1  ;;  %v1666_v47 = vpop.f32.mrb[14].mxu0 }
 0xd53   :  { %2070 = vst.msk [vmem:[%s2935_s14 + $0x8] sm:$0xff] %vm435_vm3, %v1666_v47  ;;  %v2302_v48 = vpop.f32.mrb[19].mxu1  ;;  %v2307_v49 = vpop.f32.mrb[15].mxu0  ;;  %v1748_v50 = vsel %vm435_vm3, %v1666_v47, -inf }
 0xd54   :  { %1749 = vmax.xlane.f32.xlu0 %v1748_v50 }
 0xd56   :  { %v1744_v51 = vpop.f32.mrb[20].mxu1 }
 0xd57   :  { %2071 = vst.msk [vmem:[%s2935_s14 + $0x18] sm:$0xff] %vm435_vm3, %v1744_v51  ;;  %v2312_v40 = vpop.f32.mrb[21].mxu1  ;;  %v1751_v52 = vsel %vm435_vm3, %v1744_v51, -inf }
 0xd58   :  { %1752 = vmax.xlane.f32.xlu1 %v1751_v52 }
 0xd69   :  { %1846 = vrot.lane.b32.xlu1 %v2820_v14, %s2464_s19  ;;  %v1057_v14 = vld [vmem:[%s2936_s12 + $0x18] sm:$0xff] }
 0xd6a   :  { %v2410_v16 = vpack.c.bf16 %v1057_v14, %v1056_v12 }
 0xde1   :  { %v1750_v53 = vpop.xlane.xlu0 %1749 }
 0xde2   :  { %v1754_v54 = vsub.f32 %v1666_v47, %v1750_v53 }
 0xde4   :  { %v1756_v55 = vmul.f32 1.442695, %v1754_v54 }
 0xde5   :  { %v1753_v56 = vpop.xlane.xlu1 %1752 }
 0xde6   :  { %2452 = vpow2.f32 %v1756_v55  ;;  %v1755_v57 = vsub.f32 %v1744_v51, %v1753_v56 }
 0xde8   :  { %v1758_v58 = vmul.f32 1.442695, %v1755_v57 }
 0xde9   :  { %v1847_v60 = vpop.permute.xlu1 %1846 }
 0xdea   :  { %2454 = vpow2.f32 %v1758_v58  ;;  %2319 = vmatpush3.msra.mxu1 %v1847_v60 }
 0xdf0   :  { %v2453_v61 = vpop.eup %2452 }
 0xdf1   :  { %v1760_v59 = vsel %vm435_vm3, %v2453_v61, 0.0 }
 0xdf2   :  { %1761 = vadd.xlane.f32.xlu0 %v1760_v59 }
 0xdf4   :  { %v2455_v62 = vpop.eup %2454 }
 0xdf5   :  { %v1763_v63 = vsel %vm435_vm3, %v2455_v62, 0.0 }
 0xdf6   :  { %1764 = vadd.xlane.f32.xlu0 %v1763_v63 }
 0xe0c   :  { %1770 = vrot.lane.b32.xlu0 %v2815_v9, %s2464_s19  ;;  %v1055_v9 = vld [vmem:[%s2936_s12 + $0x8] sm:$0xff] }
 0xe0d   :  { %v2406_v11 = vpack.c.bf16 %v1055_v9, %v1054_v10 }
 0xe7f   :  { %v1762_v2 = vpop.xlane.xlu0 %1761 }
 0xe80   :  { %2456 = vrcp.f32 %v1762_v2 }
 0xe83   :  { %v1765_v3 = vpop.xlane.xlu0 %1764 }
 0xe84   :  { %2458 = vrcp.f32 %v1765_v3 }
 0xe87   :  { %v1771_v4 = vpop.permute.xlu0 %1770 }
 0xe88   :  { %2314 = vmatpush3.msra.mxu0 %v1771_v4 }
 0xe89   :  { %2407 = vmatprep.subr.bf16.mxu0 %v2406_v11 }
 0xe8a   :  { %v2457_v5 = vpop.eup %2456 }
 0xe8b   :  { %v1767_v6 = vmul.f32 %v2457_v5, %v2453_v61 }
 0xe8d   :  { %2316 = vmatmul.mubr.msk.f32.vlgmr.msra.gmra.mrb[16].mxu0 %vm435_vm3, %v1767_v6 }
 0xe8e   :  { %v2459_v7 = vpop.eup %2458  ;;  %2409 = vmatpush3.bf16.msra.mxu0 %v2406_v11 }
 0xe8f   :  { %v1769_v8 = vmul.f32 %v2459_v7, %v2455_v62  ;;  %2411 = vmatprep.subr.bf16.mxu0 %v2410_v16 }
 0xe91   :  { %2321 = vmatmul.mubr.msk.f32.vlgmr.msra.gmra.mrb[22].mxu1 %vm435_vm3, %v1769_v8 }
 0xe92   :  { %2413 = vmatpush3.bf16.msra.mxu0 %v2410_v16 }
 0xf60   :  { %v1842_v17 = vpop.f32.mrb[16].mxu0 }
 0xf61   :  { %1924 = vrot.lane.b32.xlu1 %v1842_v17, %s2465_s28  ;;  %v2317_v18 = vpop.f32.mrb[17].mxu0 }
 0xf64   :  { %v1918_v19 = vpop.f32.mrb[22].mxu1 }
 0xf65   :  { %1926 = vrot.lane.b32.xlu1 %v1918_v19, %s2465_s28  ;;  %v2322_v20 = vpop.f32.mrb[23].mxu1 }
 0xfd3   :  { %v1925_v21 = vpop.permute.xlu1 %1924 }
 0xfd4   :  { %v1930_v22 = vsel %vm282_vm1, %v2871_v44, %v1925_v21 }
 0xfd5   :  { %2331 = vmatprep.mubr.msk.f32.mxu0 %vm950_vm4, %v1930_v22 }
 0xfd7   :  { %v1927_v1 = vpop.permute.xlu1 %1926 }
 0xfd8   :  { %v1931_v0 = vsel %vm282_vm1, %v2873_v46, %v1927_v1 }
 0xfd9   :  { %2332 = vmatmul.mubr.msk.f32.vlgmr.msra.gmra.mrb[18].mxu0 %vm950_vm4, %v1931_v0 }
0x10ac   :  { %v2333_v23 = vpop.f32.mrb[18].mxu0 }
0x10ad   :  { %v2014_v24 = vadd.f32 %v2333_v23, %v2722_v13  ;;  %v2004_v25 = vpop.f32.mrb[19].mxu0 }
0x10ae   :  { %v2013_v26 = vadd.f32 %v2004_v25, %v2725_v15 }
0x10af   :  { %2016 = vst.msk [vmem:[%s2937_s13 + $0x8] sm:$0xff] %vm72_vm0, %v2014_v24 }
0x10b0   :  { %2015 = vst.msk [vmem:[%s2937_s13] sm:$0xff] %vm72_vm0, %v2013_v26 }

// kernel: lstm_attention_forward.5
= control target key start
LH: loop header
LB: loop body
LE: loop exit
PB: predicated region body
PF: predicated region fallthrough
CT: control target
= control target key end

     0   :  { %vm45_vm0 = vcmask 523264   ;;  %v2987_v0 = vmov 0.0   ;;  %vm2988_vm1 = vmmov 0   ;;  %vm1262_vm2 = vcmask 57344   ;;  %s3601_s1 = inlined_call_operand.vmem [shape: f32[16,8,64], index: 1, kind: input, shape index: {}]   ;;  %s3602_s0 = inlined_call_operand.vmem [shape: f32[16,1,64], index: 0, kind: input, shape index: {}]   ;;  %s3603_s3 = inlined_call_operand.vmem [shape: f32[16,1,8], index: 3, kind: output, shape index: {1}]   ;;  %s3604_s2 = inlined_call_operand.vmem [shape: f32[16,1,64], index: 2, kind: output, shape index: {0}]  }
   0x1   :  { %2761 = vmatprep.subr.mxu0 %v2987_v0  ;;  %v3013_v1 = vld [vmem:[%s3601_s1] sm:$0xff]  ;;  %2763 = vmatprep.mubr.msk.f32.mxu0 %vm2988_vm1, %v2987_v0  ;;  %v3020_v2 = vld [vmem:[%s3601_s1 + $0x8] sm:$0xff]  ;;  %v3034_v4 = vld [vmem:[%s3601_s1 + $0x10] sm:$0xff]  ;;  %vm1455_vm3 = vcmask 64512   ;;  %vm2624_vm4 = vcmask 516096  }
   0x2   :  { %2762 = vmatpush3.xpose.msk.msra.mxu0 %vm45_vm0, %v3013_v1  ;;  %v13_v3 = vld [vmem:[%s3602_s0] sm:$0x1]  ;;  %2766 = vmatprep.subr.mxu1 %v2987_v0  ;;  %v14_v5 = vld [vmem:[%s3602_s0 + $0x1] sm:$0x1]  ;;  %v3046_v6 = vld [vmem:[%s3601_s1 + $0x18] sm:$0xff] }
   0x3   :  { %2771 = vmatprep.subr.mxu0 %v2987_v0  ;;  %2767 = vmatpush3.xpose.msk.msra.mxu1 %vm45_vm0, %v3020_v2  ;;  %v15_v7 = vld [vmem:[%s3602_s0 + $0x2] sm:$0x1]  ;;  %v16_v9 = vld [vmem:[%s3602_s0 + $0x3] sm:$0x1]  ;;  %v3074_v10 = vld [vmem:[%s3601_s1 + $0x28] sm:$0xff] }
   0x4   :  { %2768 = vmatprep.mubr.msk.f32.mxu1 %vm2988_vm1, %v2987_v0  ;;  %2776 = vmatprep.subr.mxu1 %v2987_v0  ;;  %v3060_v8 = vld [vmem:[%s3601_s1 + $0x20] sm:$0xff]  ;;  %v3088_v12 = vld [vmem:[%s3601_s1 + $0x30] sm:$0xff]  ;;  %v3102_v14 = vld [vmem:[%s3601_s1 + $0x38] sm:$0xff] }
   0x5   :  { %2764 = vmatmul.mubr.msk.f32.vlgmr.msra.gmra.mrb[0].mxu0 %vm45_vm0, %v13_v3  ;;  %v17_v11 = vld [vmem:[%s3602_s0 + $0x4] sm:$0x1]  ;;  %v18_v13 = vld [vmem:[%s3602_s0 + $0x5] sm:$0x1]  ;;  %v19_v15 = vld [vmem:[%s3602_s0 + $0x6] sm:$0x1] }
   0x6   :  { %2772 = vmatpush3.xpose.msk.msra.mxu0 %vm45_vm0, %v3034_v4  ;;  %2773 = vmatprep.mubr.msk.f32.mxu0 %vm2988_vm1, %v2987_v0  ;;  %v3116_v16 = vld [vmem:[%s3601_s1 + $0x40] sm:$0xff]  ;;  %v3130_v18 = vld [vmem:[%s3601_s1 + $0x48] sm:$0xff]  ;;  %v3144_v20 = vld [vmem:[%s3601_s1 + $0x50] sm:$0xff] }
   0x7   :  { %2769 = vmatmul.mubr.msk.f32.vlgmr.msra.gmra.mrb[0].mxu1 %vm45_vm0, %v14_v5  ;;  %2781 = vmatprep.subr.mxu0 %v2987_v0  ;;  %v20_v17 = vld [vmem:[%s3602_s0 + $0x7] sm:$0x1]  ;;  %v21_v19 = vld [vmem:[%s3602_s0 + $0x8] sm:$0x1]  ;;  %v22_v21 = vld [vmem:[%s3602_s0 + $0x9] sm:$0x1] }
   0x8   :  { %2777 = vmatpush3.xpose.msk.msra.mxu1 %vm45_vm0, %v3046_v6  ;;  %2778 = vmatprep.mubr.msk.f32.mxu1 %vm2988_vm1, %v2987_v0  ;;  %v3158_v22 = vld [vmem:[%s3601_s1 + $0x58] sm:$0xff]  ;;  %v23_v23 = vld [vmem:[%s3602_s0 + $0xa] sm:$0x1]  ;;  %v3172_v24 = vld [vmem:[%s3601_s1 + $0x60] sm:$0xff] }
   0x9   :  { %2774 = vmatmul.mubr.msk.f32.vlgmr.msra.gmra.mrb[2].mxu0 %vm45_vm0, %v15_v7  ;;  %2786 = vmatprep.subr.mxu1 %v2987_v0  ;;  %v24_v25 = vld [vmem:[%s3602_s0 + $0xb] sm:$0x1]  ;;  %v25_v27 = vld [vmem:[%s3602_s0 + $0xc] sm:$0x1]  ;;  %v3200_v28 = vld [vmem:[%s3601_s1 + $0x70] sm:$0xff] }
   0xa   :  { %2782 = vmatpush3.xpose.msk.msra.mxu0 %vm45_vm0, %v3060_v8  ;;  %2783 = vmatprep.mubr.msk.f32.mxu0 %vm2988_vm1, %v2987_v0  ;;  %v3186_v26 = vld [vmem:[%s3601_s1 + $0x68] sm:$0xff]  ;;  %v3214_v30 = vld [vmem:[%s3601_s1 + $0x78] sm:$0xff] }
   0xb   :  { %2779 = vmatmul.mubr.msk.f32.vlgmr.msra.gmra.mrb[2].mxu1 %vm45_vm0, %v16_v9  ;;  %2791 = vmatprep.subr.mxu0 %v2987_v0  ;;  %v26_v29 = vld [vmem:[%s3602_s0 + $0xd] sm:$0x1]  ;;  %v27_v31 = vld [vmem:[%s3602_s0 + $0xe] sm:$0x1]  ;;  %v28_v32 = vld [vmem:[%s3602_s0 + $0xf] sm:$0x1] }
   0xc   :  { %2787 = vmatpush3.xpose.msk.msra.mxu1 %vm45_vm0, %v3074_v10  ;;  %2788 = vmatprep.mubr.msk.f32.mxu1 %vm2988_vm1, %v2987_v0 }
   0xd   :  { %2784 = vmatmul.mubr.msk.f32.vlgmr.msra.gmra.mrb[4].mxu0 %vm45_vm0, %v17_v11  ;;  %2796 = vmatprep.subr.mxu1 %v2987_v0 }
   0xe   :  { %2792 = vmatpush3.xpose.msk.msra.mxu0 %vm45_vm0, %v3088_v12  ;;  %2793 = vmatprep.mubr.msk.f32.mxu0 %vm2988_vm1, %v2987_v0 }
   0xf   :  { %2789 = vmatmul.mubr.msk.f32.vlgmr.msra.gmra.mrb[4].mxu1 %vm45_vm0, %v18_v13  ;;  %2801 = vmatprep.subr.mxu0 %v2987_v0 }
  0x10   :  { %2797 = vmatpush3.xpose.msk.msra.mxu1 %vm45_vm0, %v3102_v14  ;;  %2798 = vmatprep.mubr.msk.f32.mxu1 %vm2988_vm1, %v2987_v0 }
  0x11   :  { %2794 = vmatmul.mubr.msk.f32.vlgmr.msra.gmra.mrb[6].mxu0 %vm45_vm0, %v19_v15  ;;  %2806 = vmatprep.subr.mxu1 %v2987_v0 }
  0x12   :  { %2802 = vmatpush3.xpose.msk.msra.mxu0 %vm45_vm0, %v3116_v16  ;;  %2803 = vmatprep.mubr.msk.f32.mxu0 %vm2988_vm1, %v2987_v0 }
  0x13   :  { %2799 = vmatmul.mubr.msk.f32.vlgmr.msra.gmra.mrb[6].mxu1 %vm45_vm0, %v20_v17  ;;  %2811 = vmatprep.subr.mxu0 %v2987_v0 }
  0x14   :  { %2807 = vmatpush3.xpose.msk.msra.mxu1 %vm45_vm0, %v3130_v18  ;;  %2808 = vmatprep.mubr.msk.f32.mxu1 %vm2988_vm1, %v2987_v0 }
  0x15   :  { %2804 = vmatmul.mubr.msk.f32.vlgmr.msra.gmra.mrb[8].mxu0 %vm45_vm0, %v21_v19  ;;  %2816 = vmatprep.subr.mxu1 %v2987_v0 }
  0x16   :  { %2812 = vmatpush3.xpose.msk.msra.mxu0 %vm45_vm0, %v3144_v20  ;;  %2813 = vmatprep.mubr.msk.f32.mxu0 %vm2988_vm1, %v2987_v0 }
  0x17   :  { %2809 = vmatmul.mubr.msk.f32.vlgmr.msra.gmra.mrb[8].mxu1 %vm45_vm0, %v22_v21  ;;  %2821 = vmatprep.subr.mxu0 %v2987_v0 }
  0x18   :  { %2817 = vmatpush3.xpose.msk.msra.mxu1 %vm45_vm0, %v3158_v22  ;;  %2818 = vmatprep.mubr.msk.f32.mxu1 %vm2988_vm1, %v2987_v0 }
  0x19   :  { %2814 = vmatmul.mubr.msk.f32.vlgmr.msra.gmra.mrb[10].mxu0 %vm45_vm0, %v23_v23  ;;  %2826 = vmatprep.subr.mxu1 %v2987_v0 }
  0x1a   :  { %2822 = vmatpush3.xpose.msk.msra.mxu0 %vm45_vm0, %v3172_v24  ;;  %2823 = vmatprep.mubr.msk.f32.mxu0 %vm2988_vm1, %v2987_v0 }
  0x1b   :  { %2819 = vmatmul.mubr.msk.f32.vlgmr.msra.gmra.mrb[10].mxu1 %vm45_vm0, %v24_v25  ;;  %2831 = vmatprep.subr.mxu0 %v2987_v0 }
  0x1c   :  { %2827 = vmatpush3.xpose.msk.msra.mxu1 %vm45_vm0, %v3186_v26  ;;  %2828 = vmatprep.mubr.msk.f32.mxu1 %vm2988_vm1, %v2987_v0 }
  0x1d   :  { %2824 = vmatmul.mubr.msk.f32.vlgmr.msra.gmra.mrb[12].mxu0 %vm45_vm0, %v25_v27  ;;  %2836 = vmatprep.subr.mxu1 %v2987_v0 }
  0x1e   :  { %2832 = vmatpush3.xpose.msk.msra.mxu0 %vm45_vm0, %v3200_v28  ;;  %2833 = vmatprep.mubr.msk.f32.mxu0 %vm2988_vm1, %v2987_v0 }
  0x1f   :  { %2829 = vmatmul.mubr.msk.f32.vlgmr.msra.gmra.mrb[12].mxu1 %vm45_vm0, %v26_v29  ;;  %2841 = vmatprep.subr.mxu0 %v2987_v0 }
  0x20   :  { %2837 = vmatpush3.xpose.msk.msra.mxu1 %vm45_vm0, %v3214_v30  ;;  %2838 = vmatprep.mubr.msk.f32.mxu1 %vm2988_vm1, %v2987_v0 }
  0x21   :  { %2834 = vmatmul.mubr.msk.f32.vlgmr.msra.gmra.mrb[14].mxu0 %vm45_vm0, %v27_v31  ;;  %2846 = vmatprep.subr.mxu1 %v2987_v0 }
  0x22   :  { %2842 = vmatpush3.msra.mxu0 %v3013_v1  ;;  %2843 = vmatprep.mubr.msk.f32.mxu0 %vm2988_vm1, %v2987_v0 }
  0x23   :  { %2839 = vmatmul.mubr.msk.f32.vlgmr.msra.gmra.mrb[14].mxu1 %vm45_vm0, %v28_v32  ;;  %2851 = vmatprep.subr.mxu0 %v2987_v0 }
  0x24   :  { %2847 = vmatpush3.msra.mxu1 %v3020_v2  ;;  %2848 = vmatprep.mubr.msk.f32.mxu1 %vm2988_vm1, %v2987_v0 }
  0x25   :  { %2856 = vmatprep.subr.mxu1 %v2987_v0 }
  0xd8   :  { %v3243_v33 = vpop.f32.mrb[0].mxu0 }
  0xd9   :  { %v2765_v34 = vpop.f32.mrb[1].mxu0  ;;  %v1263_v35 = vsel %vm1262_vm2, %v3243_v33, -inf }
  0xda   :  { %1264 = vmax.xlane.f32.xlu0 %v1263_v35  ;;  %v3247_v36 = vpop.f32.mrb[0].mxu1 }
  0xdb   :  { %v2770_v37 = vpop.f32.mrb[1].mxu1  ;;  %v1266_v38 = vsel %vm1262_vm2, %v3247_v36, -inf }
  0xdc   :  { %v3251_v39 = vpop.f32.mrb[2].mxu0 }
  0xdd   :  { %v2775_v40 = vpop.f32.mrb[3].mxu0  ;;  %v1269_v41 = vsel %vm1262_vm2, %v3251_v39, -inf }
  0xde   :  { %1267 = vmax.xlane.f32.xlu0 %v1266_v38  ;;  %1270 = vmax.xlane.f32.xlu1 %v1269_v41  ;;  %v3255_v42 = vpop.f32.mrb[2].mxu1 }
  0xdf   :  { %v2780_v43 = vpop.f32.mrb[3].mxu1  ;;  %v1272_v44 = vsel %vm1262_vm2, %v3255_v42, -inf }
  0xe0   :  { %v3259_v45 = vpop.f32.mrb[4].mxu0 }
  0xe1   :  { %v1275_v46 = vsel %vm1262_vm2, %v3259_v45, -inf  ;;  %v2785_v47 = vpop.f32.mrb[5].mxu0 }
  0xe2   :  { %1273 = vmax.xlane.f32.xlu1 %v1272_v44  ;;  %1276 = vmax.xlane.f32.xlu0 %v1275_v46  ;;  %v3263_v48 = vpop.f32.mrb[4].mxu1 }
  0xe3   :  { %v2790_v49 = vpop.f32.mrb[5].mxu1  ;;  %v1278_v50 = vsel %vm1262_vm2, %v3263_v48, -inf }
  0xe4   :  { %v3267_v51 = vpop.f32.mrb[6].mxu0 }
  0xe5   :  { %v1281_v52 = vsel %vm1262_vm2, %v3267_v51, -inf  ;;  %v2795_v53 = vpop.f32.mrb[7].mxu0 }
  0xe6   :  { %1279 = vmax.xlane.f32.xlu1 %v1278_v50  ;;  %1282 = vmax.xlane.f32.xlu0 %v1281_v52  ;;  %v3271_v54 = vpop.f32.mrb[6].mxu1 }
  0xe7   :  { %v2800_v55 = vpop.f32.mrb[7].mxu1  ;;  %v1284_v56 = vsel %vm1262_vm2, %v3271_v54, -inf }
  0xe8   :  { %v3275_v57 = vpop.f32.mrb[8].mxu0 }
  0xe9   :  { %v1287_v58 = vsel %vm1262_vm2, %v3275_v57, -inf  ;;  %v2805_v59 = vpop.f32.mrb[9].mxu0 }
  0xea   :  { %1285 = vmax.xlane.f32.xlu1 %v1284_v56  ;;  %1288 = vmax.xlane.f32.xlu0 %v1287_v58  ;;  %v3279_v60 = vpop.f32.mrb[8].mxu1 }
  0xeb   :  { %v2810_v61 = vpop.f32.mrb[9].mxu1  ;;  %v1290_v62 = vsel %vm1262_vm2, %v3279_v60, -inf }
  0xec   :  { %v3283_v63 = vpop.f32.mrb[10].mxu0 }
  0xed   :  { %v1293_v1 = vsel %vm1262_vm2, %v3283_v63, -inf  ;;  %v2815_v2 = vpop.f32.mrb[11].mxu0 }
  0xee   :  { %1291 = vmax.xlane.f32.xlu1 %v1290_v62  ;;  %1294 = vmax.xlane.f32.xlu0 %v1293_v1  ;;  %v3287_v3 = vpop.f32.mrb[10].mxu1 }
  0xef   :  { %v2820_v5 = vpop.f32.mrb[11].mxu1  ;;  %v1296_v7 = vsel %vm1262_vm2, %v3287_v3, -inf }
  0xf0   :  { %v3291_v9 = vpop.f32.mrb[12].mxu0 }
  0xf1   :  { %v1299_v11 = vsel %vm1262_vm2, %v3291_v9, -inf  ;;  %v2825_v13 = vpop.f32.mrb[13].mxu0 }
  0xf2   :  { %1297 = vmax.xlane.f32.xlu1 %v1296_v7  ;;  %1300 = vmax.xlane.f32.xlu0 %v1299_v11  ;;  %v3295_v15 = vpop.f32.mrb[12].mxu1 }
  0xf3   :  { %v2830_v17 = vpop.f32.mrb[13].mxu1  ;;  %v1302_v19 = vsel %vm1262_vm2, %v3295_v15, -inf }
  0xf4   :  { %v3299_v21 = vpop.f32.mrb[14].mxu0 }
  0xf5   :  { %v1305_v23 = vsel %vm1262_vm2, %v3299_v21, -inf  ;;  %v2835_v25 = vpop.f32.mrb[15].mxu0 }
  0xf6   :  { %1303 = vmax.xlane.f32.xlu1 %v1302_v19  ;;  %1306 = vmax.xlane.f32.xlu0 %v1305_v23  ;;  %v3303_v27 = vpop.f32.mrb[14].mxu1 }
  0xf7   :  { %v2840_v29 = vpop.f32.mrb[15].mxu1  ;;  %v1308_v31 = vsel %vm1262_vm2, %v3303_v27, -inf }
  0xfa   :  { %1309 = vmax.xlane.f32.xlu1 %v1308_v31 }
 0x167   :  { %v1265_v32 = vpop.xlane.xlu0 %1264 }
 0x168   :  { %v1311_v34 = vsub.f32 %v3243_v33, %v1265_v32 }
 0x16a   :  { %v1327_v35 = vmul.f32 1.442695, %v1311_v34 }
 0x16b   :  { %v1268_v37 = vpop.xlane.xlu0 %1267  ;;  %v1271_v38 = vpop.xlane.xlu1 %1270 }
 0x16c   :  { %2923 = vpow2.f32 %v1327_v35  ;;  %v1312_v40 = vsub.f32 %v3247_v36, %v1268_v37  ;;  %v1313_v41 = vsub.f32 %v3251_v39, %v1271_v38 }
 0x16e   :  { %v1329_v43 = vmul.f32 1.442695, %v1312_v40  ;;  %v1331_v44 = vmul.f32 1.442695, %v1313_v41 }
 0x16f   :  { %v1274_v46 = vpop.xlane.xlu1 %1273  ;;  %v1277_v47 = vpop.xlane.xlu0 %1276 }
 0x170   :  { %2925 = vpow2.f32 %v1329_v43  ;;  %v1314_v49 = vsub.f32 %v3255_v42, %v1274_v46  ;;  %v1315_v50 = vsub.f32 %v3259_v45, %v1277_v47 }
 0x171   :  { %2927 = vpow2.f32 %v1331_v44 }
 0x172   :  { %v1333_v52 = vmul.f32 1.442695, %v1314_v49  ;;  %v1335_v33 = vmul.f32 1.442695, %v1315_v50 }
 0x173   :  { %v1280_v53 = vpop.xlane.xlu1 %1279  ;;  %v1283_v55 = vpop.xlane.xlu0 %1282 }
 0x174   :  { %2929 = vpow2.f32 %v1333_v52  ;;  %v1316_v56 = vsub.f32 %v3263_v48, %v1280_v53  ;;  %v1317_v36 = vsub.f32 %v3267_v51, %v1283_v55 }
 0x175   :  { %2931 = vpow2.f32 %v1335_v33 }
 0x176   :  { %v3314_v39 = vpop.eup %2923  ;;  %v1337_v58 = vmul.f32 1.442695, %v1316_v56  ;;  %v1339_v59 = vmul.f32 1.442695, %v1317_v36 }
 0x177   :  { %v1286_v61 = vpop.xlane.xlu1 %1285  ;;  %v1289_v62 = vpop.xlane.xlu0 %1288  ;;  %v1359_v42 = vsel %vm1262_vm2, %v3314_v39, 0.0 }
 0x178   :  { %2933 = vpow2.f32 %v1337_v58  ;;  %v1318_v45 = vsub.f32 %v3271_v54, %v1286_v61  ;;  %v1319_v1 = vsub.f32 %v3275_v57, %v1289_v62  ;;  %1360 = vadd.xlane.f32.xlu0 %v1359_v42 }
 0x179   :  { %2935 = vpow2.f32 %v1339_v59 }
 0x17a   :  { %v3320_v48 = vpop.eup %2925  ;;  %v1341_v51 = vmul.f32 1.442695, %v1318_v45  ;;  %v1343_v2 = vmul.f32 1.442695, %v1319_v1 }
 0x17b   :  { %v3322_v5 = vpop.eup %2927  ;;  %v1292_v7 = vpop.xlane.xlu1 %1291  ;;  %v1362_v13 = vsel %vm1262_vm2, %v3320_v48, 0.0 }
 0x17c   :  { %v1295_v11 = vpop.xlane.xlu0 %1294  ;;  %2937 = vpow2.f32 %v1341_v51  ;;  %v1320_v17 = vsub.f32 %v3279_v60, %v1292_v7  ;;  %1363 = vadd.xlane.f32.xlu1 %v1362_v13  ;;  %v1365_v57 = vsel %vm1262_vm2, %v3322_v5, 0.0 }
 0x17d   :  { %v1321_v54 = vsub.f32 %v3283_v63, %v1295_v11  ;;  %2939 = vpow2.f32 %v1343_v2  ;;  %1366 = vadd.xlane.f32.xlu0 %v1365_v57 }
 0x17e   :  { %v3330_v19 = vpop.eup %2929  ;;  %v1345_v23 = vmul.f32 1.442695, %v1320_v17 }
 0x17f   :  { %v1347_v25 = vmul.f32 1.442695, %v1321_v54  ;;  %v3332_v29 = vpop.eup %2931  ;;  %v1298_v31 = vpop.xlane.xlu1 %1297  ;;  %v1368_v34 = vsel %vm1262_vm2, %v3330_v19, 0.0 }
 0x180   :  { %v1301_v32 = vpop.xlane.xlu0 %1300  ;;  %2941 = vpow2.f32 %v1345_v23  ;;  %v1322_v60 = vsub.f32 %v3287_v3, %v1298_v31  ;;  %1369 = vadd.xlane.f32.xlu1 %v1368_v34  ;;  %v1371_v35 = vsel %vm1262_vm2, %v3332_v29, 0.0 }
 0x181   :  { %v1323_v63 = vsub.f32 %v3291_v9, %v1301_v32  ;;  %2943 = vpow2.f32 %v1347_v25  ;;  %1372 = vadd.xlane.f32.xlu0 %v1371_v35 }
 0x182   :  { %v3340_v37 = vpop.eup %2933  ;;  %v1349_v38 = vmul.f32 1.442695, %v1322_v60 }
 0x183   :  { %v1351_v40 = vmul.f32 1.442695, %v1323_v63  ;;  %v3342_v41 = vpop.eup %2935  ;;  %v1304_v43 = vpop.xlane.xlu1 %1303  ;;  %v1374_v46 = vsel %vm1262_vm2, %v3340_v37, 0.0 }
 0x184   :  { %v1307_v44 = vpop.xlane.xlu0 %1306  ;;  %2945 = vpow2.f32 %v1349_v38  ;;  %v1324_v3 = vsub.f32 %v3295_v15, %v1304_v43  ;;  %1375 = vadd.xlane.f32.xlu1 %v1374_v46  ;;  %v1377_v47 = vsel %vm1262_vm2, %v3342_v41, 0.0 }
 0x185   :  { %v1325_v9 = vsub.f32 %v3299_v21, %v1307_v44  ;;  %2947 = vpow2.f32 %v1351_v40  ;;  %1378 = vadd.xlane.f32.xlu0 %v1377_v47 }
 0x186   :  { %v3350_v49 = vpop.eup %2937  ;;  %v1353_v50 = vmul.f32 1.442695, %v1324_v3 }
 0x187   :  { %v1355_v52 = vmul.f32 1.442695, %v1325_v9  ;;  %v3352_v33 = vpop.eup %2939  ;;  %v1310_v53 = vpop.xlane.xlu1 %1309  ;;  %v1380_v55 = vsel %vm1262_vm2, %v3350_v49, 0.0 }
 0x188   :  { %2949 = vpow2.f32 %v1353_v50  ;;  %v1326_v15 = vsub.f32 %v3303_v27, %v1310_v53  ;;  %1381 = vadd.xlane.f32.xlu1 %v1380_v55  ;;  %v1383_v21 = vsel %vm1262_vm2, %v3352_v33, 0.0 }
 0x189   :  { %2951 = vpow2.f32 %v1355_v52  ;;  %1384 = vadd.xlane.f32.xlu0 %v1383_v21 }
 0x18a   :  { %v3359_v56 = vpop.eup %2941  ;;  %v1357_v36 = vmul.f32 1.442695, %v1326_v15 }
 0x18b   :  { %v3361_v58 = vpop.eup %2943  ;;  %v1386_v59 = vsel %vm1262_vm2, %v3359_v56, 0.0 }
 0x18c   :  { %2953 = vpow2.f32 %v1357_v36  ;;  %1387 = vadd.xlane.f32.xlu1 %v1386_v59  ;;  %v1389_v61 = vsel %vm1262_vm2, %v3361_v58, 0.0 }
 0x18d   :  { %1390 = vadd.xlane.f32.xlu0 %v1389_v61 }
 0x18e   :  { %v3367_v27 = vpop.eup %2945 }
 0x18f   :  { %v3369_v62 = vpop.eup %2947  ;;  %v1392_v42 = vsel %vm1262_vm2, %v3367_v27, 0.0 }
 0x190   :  { %1393 = vadd.xlane.f32.xlu1 %v1392_v42  ;;  %v1395_v45 = vsel %vm1262_vm2, %v3369_v62, 0.0 }
 0x191   :  { %1396 = vadd.xlane.f32.xlu0 %v1395_v45 }
 0x192   :  { %v3375_v1 = vpop.eup %2949 }
 0x193   :  { %v3377_v51 = vpop.eup %2951  ;;  %v1398_v2 = vsel %vm1262_vm2, %v3375_v1, 0.0 }
 0x194   :  { %1399 = vadd.xlane.f32.xlu1 %v1398_v2  ;;  %v1401_v7 = vsel %vm1262_vm2, %v3377_v51, 0.0 }
 0x195   :  { %1402 = vadd.xlane.f32.xlu0 %v1401_v7 }
 0x196   :  { %v3383_v11 = vpop.eup %2953 }
 0x197   :  { %v1404_v13 = vsel %vm1262_vm2, %v3383_v11, 0.0 }
 0x198   :  { %1405 = vadd.xlane.f32.xlu1 %v1404_v13 }
 0x205   :  { %v1361_v17 = vpop.xlane.xlu0 %1360 }
 0x206   :  { %2955 = vrcp.f32 %v1361_v17 }
 0x209   :  { %v1364_v54 = vpop.xlane.xlu1 %1363 }
 0x20a   :  { %2957 = vrcp.f32 %v1364_v54  ;;  %v1367_v57 = vpop.xlane.xlu0 %1366 }
 0x20b   :  { %2959 = vrcp.f32 %v1367_v57 }
 0x20d   :  { %v1370_v23 = vpop.xlane.xlu1 %1369 }
 0x20e   :  { %2961 = vrcp.f32 %v1370_v23  ;;  %v1373_v25 = vpop.xlane.xlu0 %1372 }
 0x20f   :  { %2963 = vrcp.f32 %v1373_v25 }
 0x210   :  { %v2956_v31 = vpop.eup %2955 }
 0x211   :  { %v1408_v32 = vmul.f32 %v2956_v31, %v3314_v39  ;;  %v1376_v34 = vpop.xlane.xlu1 %1375 }
 0x212   :  { %2965 = vrcp.f32 %v1376_v34  ;;  %v1379_v60 = vpop.xlane.xlu0 %1378 }
 0x213   :  { %1439 = vst.msk [vmem:[%s3603_s3] sm:$0x1] %vm1262_vm2, %v1408_v32  ;;  %2967 = vrcp.f32 %v1379_v60  ;;  %2844 = vmatmul.mubr.msk.f32.vlgmr.msra.gmra.mrb[16].mxu0 %vm1455_vm3, %v1408_v32 }
 0x214   :  { %v2958_v63 = vpop.eup %2957  ;;  %2852 = vmatpush3.msra.mxu0 %v3034_v4  ;;  %2853 = vmatprep.mubr.msk.f32.mxu0 %vm2988_vm1, %v2987_v0 }
 0x215   :  { %v2960_v35 = vpop.eup %2959  ;;  %v1410_v39 = vmul.f32 %v2958_v63, %v3320_v48  ;;  %v1382_v38 = vpop.xlane.xlu1 %1381  ;;  %2861 = vmatprep.subr.mxu0 %v2987_v0 }
 0x216   :  { %v1412_v40 = vmul.f32 %v2960_v35, %v3322_v5  ;;  %2969 = vrcp.f32 %v1382_v38  ;;  %v1385_v43 = vpop.xlane.xlu0 %1384 }
 0x217   :  { %1440 = vst.msk [vmem:[%s3603_s3 + $0x1] sm:$0x1] %vm1262_vm2, %v1410_v39  ;;  %2971 = vrcp.f32 %v1385_v43  ;;  %2849 = vmatmul.mubr.msk.f32.vlgmr.msra.gmra.mrb[16].mxu1 %vm1455_vm3, %v1410_v39 }
 0x218   :  { %v2962_v4 = vpop.eup %2961  ;;  %1441 = vst.msk [vmem:[%s3603_s3 + $0x2] sm:$0x1] %vm1262_vm2, %v1412_v40  ;;  %2854 = vmatmul.mubr.msk.f32.vlgmr.msra.gmra.mrb[18].mxu0 %vm1455_vm3, %v1412_v40  ;;  %2857 = vmatpush3.msra.mxu1 %v3046_v6 }
 0x219   :  { %v2964_v48 = vpop.eup %2963  ;;  %v1414_v5 = vmul.f32 %v2962_v4, %v3330_v19  ;;  %v1388_v44 = vpop.xlane.xlu1 %1387  ;;  %2858 = vmatprep.mubr.msk.f32.mxu1 %vm2988_vm1, %v2987_v0  ;;  %2862 = vmatpush3.msra.mxu0 %v3060_v8 }
 0x21a   :  { %v1416_v46 = vmul.f32 %v2964_v48, %v3332_v29  ;;  %2973 = vrcp.f32 %v1388_v44  ;;  %v1391_v3 = vpop.xlane.xlu0 %1390  ;;  %2863 = vmatprep.mubr.msk.f32.mxu0 %vm2988_vm1, %v2987_v0  ;;  %2866 = vmatprep.subr.mxu1 %v2987_v0 }
 0x21b   :  { %1442 = vst.msk [vmem:[%s3603_s3 + $0x3] sm:$0x1] %vm1262_vm2, %v1414_v5  ;;  %2975 = vrcp.f32 %v1391_v3  ;;  %2859 = vmatmul.mubr.msk.f32.vlgmr.msra.gmra.mrb[18].mxu1 %vm1455_vm3, %v1414_v5  ;;  %2871 = vmatprep.subr.mxu0 %v2987_v0 }
 0x21c   :  { %v2966_v6 = vpop.eup %2965  ;;  %1443 = vst.msk [vmem:[%s3603_s3 + $0x4] sm:$0x1] %vm1262_vm2, %v1416_v46  ;;  %2864 = vmatmul.mubr.msk.f32.vlgmr.msra.gmra.mrb[20].mxu0 %vm1455_vm3, %v1416_v46  ;;  %2867 = vmatpush3.msra.mxu1 %v3074_v10 }
 0x21d   :  { %v2968_v8 = vpop.eup %2967  ;;  %v1418_v19 = vmul.f32 %v2966_v6, %v3340_v37  ;;  %v1394_v29 = vpop.xlane.xlu1 %1393  ;;  %2868 = vmatprep.mubr.msk.f32.mxu1 %vm2988_vm1, %v2987_v0  ;;  %2872 = vmatpush3.msra.mxu0 %v3088_v12 }
 0x21e   :  { %v1420_v9 = vmul.f32 %v2968_v8, %v3342_v41  ;;  %2977 = vrcp.f32 %v1394_v29  ;;  %v1397_v47 = vpop.xlane.xlu0 %1396  ;;  %2873 = vmatprep.mubr.msk.f32.mxu0 %vm2988_vm1, %v2987_v0  ;;  %2876 = vmatprep.subr.mxu1 %v2987_v0 }
 0x21f   :  { %1444 = vst.msk [vmem:[%s3603_s3 + $0x5] sm:$0x1] %vm1262_vm2, %v1418_v19  ;;  %2979 = vrcp.f32 %v1397_v47  ;;  %2869 = vmatmul.mubr.msk.f32.vlgmr.msra.gmra.mrb[20].mxu1 %vm1455_vm3, %v1418_v19  ;;  %2881 = vmatprep.subr.mxu0 %v2987_v0 }
 0x220   :  { %v2970_v10 = vpop.eup %2969  ;;  %1445 = vst.msk [vmem:[%s3603_s3 + $0x6] sm:$0x1] %vm1262_vm2, %v1420_v9  ;;  %2874 = vmatmul.mubr.msk.f32.vlgmr.msra.gmra.mrb[22].mxu0 %vm1455_vm3, %v1420_v9  ;;  %2877 = vmatpush3.msra.mxu1 %v3102_v14 }
 0x221   :  { %v2972_v12 = vpop.eup %2971  ;;  %v1422_v37 = vmul.f32 %v2970_v10, %v3350_v49  ;;  %v1400_v41 = vpop.xlane.xlu1 %1399  ;;  %2878 = vmatprep.mubr.msk.f32.mxu1 %vm2988_vm1, %v2987_v0  ;;  %2882 = vmatpush3.msra.mxu0 %v3116_v16 }
 0x222   :  { %v1424_v50 = vmul.f32 %v2972_v12, %v3352_v33  ;;  %2981 = vrcp.f32 %v1400_v41  ;;  %v1403_v52 = vpop.xlane.xlu0 %1402  ;;  %2883 = vmatprep.mubr.msk.f32.mxu0 %vm2988_vm1, %v2987_v0  ;;  %2886 = vmatprep.subr.mxu1 %v2987_v0 }
 0x223   :  { %1446 = vst.msk [vmem:[%s3603_s3 + $0x7] sm:$0x1] %vm1262_vm2, %v1422_v37  ;;  %2983 = vrcp.f32 %v1403_v52  ;;  %2879 = vmatmul.mubr.msk.f32.vlgmr.msra.gmra.mrb[22].mxu1 %vm1455_vm3, %v1422_v37  ;;  %2891 = vmatprep.subr.mxu0 %v2987_v0 }
 0x224   :  { %v2974_v14 = vpop.eup %2973  ;;  %1447 = vst.msk [vmem:[%s3603_s3 + $0x8] sm:$0x1] %vm1262_vm2, %v1424_v50  ;;  %2884 = vmatmul.mubr.msk.f32.vlgmr.msra.gmra.mrb[24].mxu0 %vm1455_vm3, %v1424_v50  ;;  %2887 = vmatpush3.msra.mxu1 %v3130_v18 }
 0x225   :  { %v2976_v16 = vpop.eup %2975  ;;  %v1426_v49 = vmul.f32 %v2974_v14, %v3359_v56  ;;  %v1406_v33 = vpop.xlane.xlu1 %1405  ;;  %2888 = vmatprep.mubr.msk.f32.mxu1 %vm2988_vm1, %v2987_v0  ;;  %2892 = vmatpush3.msra.mxu0 %v3144_v20 }
 0x226   :  { %v1428_v53 = vmul.f32 %v2976_v16, %v3361_v58  ;;  %2985 = vrcp.f32 %v1406_v33  ;;  %2893 = vmatprep.mubr.msk.f32.mxu0 %vm2988_vm1, %v2987_v0  ;;  %2896 = vmatprep.subr.mxu1 %v2987_v0 }
 0x227   :  { %1448 = vst.msk [vmem:[%s3603_s3 + $0x9] sm:$0x1] %vm1262_vm2, %v1426_v49  ;;  %2889 = vmatmul.mubr.msk.f32.vlgmr.msra.gmra.mrb[24].mxu1 %vm1455_vm3, %v1426_v49  ;;  %2901 = vmatprep.subr.mxu0 %v2987_v0 }
 0x228   :  { %v2978_v18 = vpop.eup %2977  ;;  %1449 = vst.msk [vmem:[%s3603_s3 + $0xa] sm:$0x1] %vm1262_vm2, %v1428_v53  ;;  %2894 = vmatmul.mubr.msk.f32.vlgmr.msra.gmra.mrb[26].mxu0 %vm1455_vm3, %v1428_v53  ;;  %2897 = vmatpush3.msra.mxu1 %v3158_v22 }
 0x229   :  { %v2980_v20 = vpop.eup %2979  ;;  %v1430_v55 = vmul.f32 %v2978_v18, %v3367_v27  ;;  %2898 = vmatprep.mubr.msk.f32.mxu1 %vm2988_vm1, %v2987_v0  ;;  %2902 = vmatpush3.msra.mxu0 %v3172_v24 }
 0x22a   :  { %v1432_v15 = vmul.f32 %v2980_v20, %v3369_v62  ;;  %2903 = vmatprep.mubr.msk.f32.mxu0 %vm2988_vm1, %v2987_v0  ;;  %2906 = vmatprep.subr.mxu1 %v2987_v0 }
 0x22b   :  { %1450 = vst.msk [vmem:[%s3603_s3 + $0xb] sm:$0x1] %vm1262_vm2, %v1430_v55  ;;  %2899 = vmatmul.mubr.msk.f32.vlgmr.msra.gmra.mrb[26].mxu1 %vm1455_vm3, %v1430_v55  ;;  %2911 = vmatprep.subr.mxu0 %v2987_v0 }
 0x22c   :  { %v2982_v22 = vpop.eup %2981  ;;  %1451 = vst.msk [vmem:[%s3603_s3 + $0xc] sm:$0x1] %vm1262_vm2, %v1432_v15  ;;  %2904 = vmatmul.mubr.msk.f32.vlgmr.msra.gmra.mrb[28].mxu0 %vm1455_vm3, %v1432_v15  ;;  %2907 = vmatpush3.msra.mxu1 %v3186_v26 }
 0x22d   :  { %v2984_v24 = vpop.eup %2983  ;;  %v1434_v21 = vmul.f32 %v2982_v22, %v3375_v1  ;;  %2908 = vmatprep.mubr.msk.f32.mxu1 %vm2988_vm1, %v2987_v0  ;;  %2912 = vmatpush3.msra.mxu0 %v3200_v28 }
 0x22e   :  { %v1436_v56 = vmul.f32 %v2984_v24, %v3377_v51  ;;  %2913 = vmatprep.mubr.msk.f32.mxu0 %vm2988_vm1, %v2987_v0  ;;  %2916 = vmatprep.subr.mxu1 %v2987_v0 }
 0x22f   :  { %1452 = vst.msk [vmem:[%s3603_s3 + $0xd] sm:$0x1] %vm1262_vm2, %v1434_v21  ;;  %2909 = vmatmul.mubr.msk.f32.vlgmr.msra.gmra.mrb[28].mxu1 %vm1455_vm3, %v1434_v21 }
 0x230   :  { %v2986_v26 = vpop.eup %2985  ;;  %1453 = vst.msk [vmem:[%s3603_s3 + $0xe] sm:$0x1] %vm1262_vm2, %v1436_v56  ;;  %2914 = vmatmul.mubr.msk.f32.vlgmr.msra.gmra.mrb[30].mxu0 %vm1455_vm3, %v1436_v56  ;;  %2917 = vmatpush3.msra.mxu1 %v3214_v30 }
 0x231   :  { %v1438_v28 = vmul.f32 %v2986_v26, %v3383_v11  ;;  %2918 = vmatprep.mubr.msk.f32.mxu1 %vm2988_vm1, %v2987_v0 }
 0x233   :  { %1454 = vst.msk [vmem:[%s3603_s3 + $0xf] sm:$0x1] %vm1262_vm2, %v1438_v28  ;;  %2919 = vmatmul.mubr.msk.f32.vlgmr.msra.gmra.mrb[30].mxu1 %vm1455_vm3, %v1438_v28 }
 0x2e6   :  { %v1525_v36 = vpop.f32.mrb[16].mxu0 }
 0x2e7   :  { %2625 = vst.msk [vmem:[%s3604_s2] sm:$0x1] %vm2624_vm4, %v1525_v36  ;;  %v2845_v30 = vpop.f32.mrb[17].mxu0 }
 0x2ea   :  { %v1598_v58 = vpop.f32.mrb[16].mxu1 }
 0x2eb   :  { %2626 = vst.msk [vmem:[%s3604_s2 + $0x1] sm:$0x1] %vm2624_vm4, %v1598_v58  ;;  %v1671_v0 = vpop.f32.mrb[18].mxu0  ;;  %v2850_v59 = vpop.f32.mrb[17].mxu1 }
 0x2ec   :  { %2627 = vst.msk [vmem:[%s3604_s2 + $0x2] sm:$0x1] %vm2624_vm4, %v1671_v0  ;;  %v2855_v61 = vpop.f32.mrb[19].mxu0 }
 0x2ee   :  { %v1744_v27 = vpop.f32.mrb[18].mxu1 }
 0x2ef   :  { %2628 = vst.msk [vmem:[%s3604_s2 + $0x3] sm:$0x1] %vm2624_vm4, %v1744_v27  ;;  %v1817_v62 = vpop.f32.mrb[20].mxu0  ;;  %v2860_v42 = vpop.f32.mrb[19].mxu1 }
 0x2f0   :  { %2629 = vst.msk [vmem:[%s3604_s2 + $0x4] sm:$0x1] %vm2624_vm4, %v1817_v62  ;;  %v2865_v45 = vpop.f32.mrb[21].mxu0 }
 0x2f2   :  { %v1890_v1 = vpop.f32.mrb[20].mxu1 }
 0x2f3   :  { %2630 = vst.msk [vmem:[%s3604_s2 + $0x5] sm:$0x1] %vm2624_vm4, %v1890_v1  ;;  %v1963_v51 = vpop.f32.mrb[22].mxu0  ;;  %v2870_v2 = vpop.f32.mrb[21].mxu1 }
 0x2f4   :  { %2631 = vst.msk [vmem:[%s3604_s2 + $0x6] sm:$0x1] %vm2624_vm4, %v1963_v51  ;;  %v2875_v7 = vpop.f32.mrb[23].mxu0 }
 0x2f6   :  { %v2036_v11 = vpop.f32.mrb[22].mxu1 }
 0x2f7   :  { %2632 = vst.msk [vmem:[%s3604_s2 + $0x7] sm:$0x1] %vm2624_vm4, %v2036_v11  ;;  %v2109_v13 = vpop.f32.mrb[24].mxu0  ;;  %v2880_v17 = vpop.f32.mrb[23].mxu1 }
 0x2f8   :  { %2633 = vst.msk [vmem:[%s3604_s2 + $0x8] sm:$0x1] %vm2624_vm4, %v2109_v13  ;;  %v2885_v54 = vpop.f32.mrb[25].mxu0 }
 0x2fa   :  { %v2182_v57 = vpop.f32.mrb[24].mxu1 }
 0x2fb   :  { %2634 = vst.msk [vmem:[%s3604_s2 + $0x9] sm:$0x1] %vm2624_vm4, %v2182_v57  ;;  %v2255_v23 = vpop.f32.mrb[26].mxu0  ;;  %v2890_v25 = vpop.f32.mrb[25].mxu1 }
 0x2fc   :  { %2635 = vst.msk [vmem:[%s3604_s2 + $0xa] sm:$0x1] %vm2624_vm4, %v2255_v23  ;;  %v2895_v31 = vpop.f32.mrb[27].mxu0 }
 0x2fe   :  { %v2328_v32 = vpop.f32.mrb[26].mxu1 }
 0x2ff   :  { %2636 = vst.msk [vmem:[%s3604_s2 + $0xb] sm:$0x1] %vm2624_vm4, %v2328_v32  ;;  %v2401_v34 = vpop.f32.mrb[28].mxu0  ;;  %v2900_v60 = vpop.f32.mrb[27].mxu1 }
 0x300   :  { %2637 = vst.msk [vmem:[%s3604_s2 + $0xc] sm:$0x1] %vm2624_vm4, %v2401_v34  ;;  %v2905_v63 = vpop.f32.mrb[29].mxu0 }
 0x302   :  { %v2474_v35 = vpop.f32.mrb[28].mxu1 }
 0x303   :  { %2638 = vst.msk [vmem:[%s3604_s2 + $0xd] sm:$0x1] %vm2624_vm4, %v2474_v35  ;;  %v2547_v39 = vpop.f32.mrb[30].mxu0  ;;  %v2910_v38 = vpop.f32.mrb[29].mxu1 }
 0x304   :  { %2639 = vst.msk [vmem:[%s3604_s2 + $0xe] sm:$0x1] %vm2624_vm4, %v2547_v39  ;;  %v2915_v40 = vpop.f32.mrb[31].mxu0 }
 0x306   :  { %v2620_v43 = vpop.f32.mrb[30].mxu1 }
 0x307   :  { %2640 = vst.msk [vmem:[%s3604_s2 + $0xf] sm:$0x1] %vm2624_vm4, %v2620_v43  ;;  %v2920_v4 = vpop.f32.mrb[31].mxu1 }

</bundles_post_ra>
